<compile_context>
chip_gen: v6e
topology: v6e:2x2x1
jax: 0.10.0
libtpu: 0.0.40
codegen_flags: <defaults>
</compile_context>

<pallas_src>
import functools
import math

import jax
import jax.numpy as jnp
from jax import lax
from jax.experimental import pallas as pl
from jax.experimental.pallas import tpu as pltpu


# ---------------------------- Pallas kernel ----------------------------

def _duc_conv_bn_relu_kernel(x_ref, w_ref, s_ref, b_ref, o_ref):
    """Fused 3x3 'same' conv + folded BN (+conv bias) + ReLU.

    x_ref : (1, H+2, W+2, Cin)   bf16, padded (halo) input tile
    w_ref : (9, Cin, CN)         bf16, per-tap weights (tap = dy*3 + dx)
    s_ref : (1, CN)              f32,  folded BN scale
    b_ref : (1, CN)              f32,  folded BN bias (+ conv bias)
    o_ref : (1, H, W, CN)        f32,  output tile
    """
    H = o_ref.shape[1]
    W = o_ref.shape[2]
    cin = w_ref.shape[1]

    acc = None
    # 9 shifted matmuls on the resident halo tile -- no im2col materialization.
    for tap in range(9):
        dy, dx = tap // 3, tap % 3
        a = x_ref[0, dy:dy + H, dx:dx + W, :].reshape(H * W, cin)     # bf16
        part = jnp.dot(a, w_ref[tap], preferred_element_type=jnp.float32)
        acc = part if acc is None else acc + part

    y = acc * s_ref[...] + b_ref[...]          # folded BN epilogue (f32)
    y = jnp.maximum(y, 0.0)                    # ReLU
    o_ref[...] = y.reshape(o_ref.shape).astype(o_ref.dtype)


# ---------------------------- kernel wrapper ----------------------------

def duc_conv_bn_relu(x_nhwc, w_taps, scale, bias):
    """Fused conv3x3(same) + BN + ReLU.

    x_nhwc : (B, H, W, Cin) float32
    w_taps : (9, Cin, Cout)  (tap = kh*3 + kw, matching PyTorch OIHW weights)
    scale, bias : (Cout,) folded BN scale / bias (conv bias already folded in)
    Returns (B, H, W, Cpad) float32 with Cpad = ceil(Cout/128)*128; the real
    channels are [..., :Cout].
    """
    B, H, W, Cin = x_nhwc.shape
    Cout = w_taps.shape[-1]
    Cpad = max(128, ((Cout + 127) // 128) * 128)        # lane-dense N
    cn_block = 256 if (Cpad % 256 == 0 and Cpad >= 256) else 128

    # Pad weights / scale / bias on the output-channel axis; cast to bf16.
    w_p = jnp.zeros((9, Cin, Cpad), jnp.bfloat16)
    w_p = w_p.at[:, :, :Cout].set(w_taps.astype(jnp.bfloat16))
    s_p = jnp.zeros((1, Cpad), jnp.float32).at[:, :Cout].set(
        scale.reshape(1, -1).astype(jnp.float32))
    b_p = jnp.zeros((1, Cpad), jnp.float32).at[:, :Cout].set(
        bias.reshape(1, -1).astype(jnp.float32))

    # 'same' padding halo; bf16 activations for the MXU.
    xp = jnp.pad(x_nhwc, ((0, 0), (1, 1), (1, 1), (0, 0))).astype(jnp.bfloat16)
    Hp, Wp = H + 2, W + 2

    grid = (B, Cpad // cn_block)
    return pl.pallas_call(
        _duc_conv_bn_relu_kernel,
        out_shape=jax.ShapeDtypeStruct((B, H, W, Cpad), jnp.float32),
        grid=grid,
        in_specs=[
            pl.BlockSpec((1, Hp, Wp, Cin), lambda b, j: (b, 0, 0, 0)),
            pl.BlockSpec((9, Cin, cn_block), lambda b, j: (0, 0, j)),
            pl.BlockSpec((1, cn_block), lambda b, j: (0, j)),
            pl.BlockSpec((1, cn_block), lambda b, j: (0, j)),
        ],
        out_specs=pl.BlockSpec((1, H, W, cn_block), lambda b, j: (b, 0, 0, j)),
        compiler_params=pltpu.CompilerParams(
            dimension_semantics=("parallel", "parallel")),
    )(xp, w_p, s_p, b_p)


# ---------------------------- JAX glue ----------------------------

def _pixel_shuffle_nhwc_to_nchw(y_nhwc, r):
    """PixelShuffle(r) on NHWC (PyTorch channel ordering), returning NCHW."""
    B, H, W, C = y_nhwc.shape
    Cps = C // (r * r)
    y = y_nhwc.reshape(B, H, W, Cps, r, r)
    y = y.transpose(0, 1, 4, 2, 5, 3)          # (B, H, r, W, r, Cps)
    y = y.reshape(B, H * r, W * r, Cps)
    return y.transpose(0, 3, 1, 2)             # NCHW


def duc_forward(x_nchw, params, upscale_factor):
    """DUC forward: conv3x3 -> BN -> ReLU -> PixelShuffle.  In/out NCHW."""
    planes = params['w_taps'].shape[-1]
    x = jnp.transpose(x_nchw, (0, 2, 3, 1)).astype(jnp.float32)   # NHWC
    y = duc_conv_bn_relu(x, params['w_taps'], params['scale'], params['bias'])
    y = y[..., :planes]                        # drop lane padding
    return _pixel_shuffle_nhwc_to_nchw(y, upscale_factor)


# ---------------------------- parameters ----------------------------

def init_params(key, inplanes, planes, eps=1e-5):
    k = jax.random.split(key, 6)
    fan_in = inplanes * 9
    wb = math.sqrt(6.0 / fan_in)               # ~ kaiming_uniform
    w_oihw = jax.random.uniform(k[0], (planes, inplanes, 3, 3), jnp.float32,
                                minval=-wb, maxval=wb)
    bb = 1.0 / math.sqrt(fan_in)
    b_conv = jax.random.uniform(k[1], (planes,), jnp.float32, minval=-bb, maxval=bb)

    # eval-mode BatchNorm running stats / affine params
    gamma = 1.0 + 0.1 * jax.random.normal(k[2], (planes,), jnp.float32)
    beta = 0.1 * jax.random.normal(k[3], (planes,), jnp.float32)
    mean = 0.1 * jax.random.normal(k[4], (planes,), jnp.float32)
    var = jax.random.uniform(k[5], (planes,), jnp.float32, minval=0.5, maxval=1.5)

    scale = gamma / jnp.sqrt(var + eps)
    bias = beta - mean * scale + b_conv * scale     # fold conv bias + BN shift

    # (O,I,kh,kw) -> (kh,kw,I,O) -> (9, I, O); tap = kh*3 + kw
    w_taps = jnp.transpose(w_oihw, (2, 3, 1, 0)).reshape(9, inplanes, planes)

    return {'w_taps': w_taps, 'scale': scale, 'bias': bias,
            'w_oihw': w_oihw, 'b_conv': b_conv,
            'gamma': gamma, 'beta': beta, 'mean': mean, 'var': var}


# ---------------------------- reference (for checking) ----------------------------

def reference_forward(x_nchw, p, r, eps=1e-5):
    # Same bf16-rounded inputs as the kernel path, f32 accumulation.
    xb = x_nchw.astype(jnp.bfloat16).astype(jnp.float32)
    wb = p['w_oihw'].astype(jnp.bfloat16).astype(jnp.float32)
    y = lax.conv_general_dilated(xb, wb, (1, 1), ((1, 1), (1, 1)),
                                 dimension_numbers=('NCHW', 'OIHW', 'NCHW'),
                                 precision=lax.Precision.HIGHEST)
    y = y + p['b_conv'][None, :, None, None]
    scale = p['gamma'] / jnp.sqrt(p['var'] + eps)
    y = (y - p['mean'][None, :, None, None]) * scale[None, :, None, None] \
        + p['beta'][None, :, None, None]
    y = jnp.maximum(y, 0.0)
    B, C, H, W = y.shape
    Cps = C // (r * r)
    y = y.reshape(B, Cps, r, r, H, W).transpose(0, 1, 4, 2, 5, 3)
    return y.reshape(B, Cps, H * r, W * r)


# ---------------------------- main ----------------------------

if __name__ == "__main__":
    key = jax.random.PRNGKey(0)
    kx, kp = jax.random.split(key)

    B, inplanes, H, W = 2, 4, 16, 16
    planes = 16                     # conv output channels (divisible by r^2)
    upscale = 2

    x = jax.random.normal(kx, (B, inplanes, H, W), jnp.float32)
    params = init_params(kp, inplanes, planes)

    fwd = jax.jit(functools.partial(duc_forward, upscale_factor=upscale))
    y = fwd(x, params)
    jax.block_until_ready(y)

    assert y.shape == (B, planes // (upscale ** 2), H * upscale, W * upscale)
    assert bool(jnp.all(jnp.isfinite(y)))
    assert bool(jnp.all(y >= 0.0))            # final ReLU

    y_ref = reference_forward(x, params, upscale)
    max_err = float(jnp.max(jnp.abs(y - y_ref)))
    assert max_err < 2e-2, f"max abs err vs reference: {max_err}"

    print("KERNEL_OK")
</pallas_src>

<mosaic_0001>
module attributes {stable_mosaic.version = 11 : i64} {
  func.func @_duc_conv_bn_relu_kernel(%arg0: i32, %arg1: i32, %arg2: memref<1x18x18x4xbf16, #tpu.memory_space<vmem>>, %arg3: memref<9x4x128xbf16, #tpu.memory_space<vmem>>, %arg4: memref<1x128xf32, #tpu.memory_space<vmem>>, %arg5: memref<1x128xf32, #tpu.memory_space<vmem>>, %arg6: memref<1x16x16x128xf32, #tpu.memory_space<vmem>>) attributes {dimension_semantics = [#tpu.dimension_semantics<parallel>, #tpu.dimension_semantics<parallel>], iteration_bounds = array<i64: 2, 1>, scalar_prefetch = 0 : i64, scratch_operands = 0 : i64, tpu.core_type = #tpu.core_type<tc>, window_params = [{transform_indices = @transform_0, window_bounds = array<i64: 1, 18, 18, 4>}, {transform_indices = @transform_1, window_bounds = array<i64: 9, 4, 128>}, {transform_indices = @transform_2, window_bounds = array<i64: 1, 128>}, {transform_indices = @transform_3, window_bounds = array<i64: 1, 128>}, {transform_indices = @transform_4, window_bounds = array<i64: 1, 16, 16, 128>}]} {
    %c0 = arith.constant 0 : index
    %c0_0 = arith.constant 0 : index
    %c0_1 = arith.constant 0 : index
    %c0_2 = arith.constant 0 : index
    %0 = vector.load %arg2[%c0, %c0_0, %c0_1, %c0_2] : memref<1x18x18x4xbf16, #tpu.memory_space<vmem>>, vector<1x16x16x4xbf16>
    %1 = vector.shape_cast %0 : vector<1x16x16x4xbf16> to vector<16x16x4xbf16>
    %2 = vector.shape_cast %1 : vector<16x16x4xbf16> to vector<256x4xbf16>
    %c0_3 = arith.constant 0 : index
    %c0_4 = arith.constant 0 : index
    %c0_5 = arith.constant 0 : index
    %3 = vector.load %arg3[%c0_3, %c0_4, %c0_5] : memref<9x4x128xbf16, #tpu.memory_space<vmem>>, vector<1x4x128xbf16>
    %4 = vector.shape_cast %3 : vector<1x4x128xbf16> to vector<4x128xbf16>
    %cst = arith.constant dense<0.000000e+00> : vector<256x128xf32>
    %5 = tpu.matmul %2, %4, %cst {dimension_numbers = #tpu.dot_dimension_numbers<[1], [0], [0], [1], [0, 0, 1, 1], [], []>} : vector<256x4xbf16>, vector<4x128xbf16>, vector<256x128xf32> -> vector<256x128xf32>
    %c0_6 = arith.constant 0 : index
    %c0_7 = arith.constant 0 : index
    %c1 = arith.constant 1 : index
    %c0_8 = arith.constant 0 : index
    %6 = vector.load %arg2[%c0_6, %c0_7, %c1, %c0_8] : memref<1x18x18x4xbf16, #tpu.memory_space<vmem>>, vector<1x16x16x4xbf16>
    %7 = vector.shape_cast %6 : vector<1x16x16x4xbf16> to vector<16x16x4xbf16>
    %8 = vector.shape_cast %7 : vector<16x16x4xbf16> to vector<256x4xbf16>
    %c1_9 = arith.constant 1 : index
    %c0_10 = arith.constant 0 : index
    %c0_11 = arith.constant 0 : index
    %9 = vector.load %arg3[%c1_9, %c0_10, %c0_11] : memref<9x4x128xbf16, #tpu.memory_space<vmem>>, vector<1x4x128xbf16>
    %10 = vector.shape_cast %9 : vector<1x4x128xbf16> to vector<4x128xbf16>
    %cst_12 = arith.constant dense<0.000000e+00> : vector<256x128xf32>
    %11 = tpu.matmul %8, %10, %cst_12 {dimension_numbers = #tpu.dot_dimension_numbers<[1], [0], [0], [1], [0, 0, 1, 1], [], []>} : vector<256x4xbf16>, vector<4x128xbf16>, vector<256x128xf32> -> vector<256x128xf32>
    %12 = arith.addf %5, %11 : vector<256x128xf32>
    %c0_13 = arith.constant 0 : index
    %c0_14 = arith.constant 0 : index
    %c2 = arith.constant 2 : index
    %c0_15 = arith.constant 0 : index
    %13 = vector.load %arg2[%c0_13, %c0_14, %c2, %c0_15] : memref<1x18x18x4xbf16, #tpu.memory_space<vmem>>, vector<1x16x16x4xbf16>
    %14 = vector.shape_cast %13 : vector<1x16x16x4xbf16> to vector<16x16x4xbf16>
    %15 = vector.shape_cast %14 : vector<16x16x4xbf16> to vector<256x4xbf16>
    %c2_16 = arith.constant 2 : index
    %c0_17 = arith.constant 0 : index
    %c0_18 = arith.constant 0 : index
    %16 = vector.load %arg3[%c2_16, %c0_17, %c0_18] : memref<9x4x128xbf16, #tpu.memory_space<vmem>>, vector<1x4x128xbf16>
    %17 = vector.shape_cast %16 : vector<1x4x128xbf16> to vector<4x128xbf16>
    %cst_19 = arith.constant dense<0.000000e+00> : vector<256x128xf32>
    %18 = tpu.matmul %15, %17, %cst_19 {dimension_numbers = #tpu.dot_dimension_numbers<[1], [0], [0], [1], [0, 0, 1, 1], [], []>} : vector<256x4xbf16>, vector<4x128xbf16>, vector<256x128xf32> -> vector<256x128xf32>
    %19 = arith.addf %12, %18 : vector<256x128xf32>
    %c0_20 = arith.constant 0 : index
    %c1_21 = arith.constant 1 : index
    %c0_22 = arith.constant 0 : index
    %c0_23 = arith.constant 0 : index
    %20 = vector.load %arg2[%c0_20, %c1_21, %c0_22, %c0_23] : memref<1x18x18x4xbf16, #tpu.memory_space<vmem>>, vector<1x16x16x4xbf16>
    %21 = vector.shape_cast %20 : vector<1x16x16x4xbf16> to vector<16x16x4xbf16>
    %22 = vector.shape_cast %21 : vector<16x16x4xbf16> to vector<256x4xbf16>
    %c3 = arith.constant 3 : index
    %c0_24 = arith.constant 0 : index
    %c0_25 = arith.constant 0 : index
    %23 = vector.load %arg3[%c3, %c0_24, %c0_25] : memref<9x4x128xbf16, #tpu.memory_space<vmem>>, vector<1x4x128xbf16>
    %24 = vector.shape_cast %23 : vector<1x4x128xbf16> to vector<4x128xbf16>
    %cst_26 = arith.constant dense<0.000000e+00> : vector<256x128xf32>
    %25 = tpu.matmul %22, %24, %cst_26 {dimension_numbers = #tpu.dot_dimension_numbers<[1], [0], [0], [1], [0, 0, 1, 1], [], []>} : vector<256x4xbf16>, vector<4x128xbf16>, vector<256x128xf32> -> vector<256x128xf32>
    %26 = arith.addf %19, %25 : vector<256x128xf32>
    %c0_27 = arith.constant 0 : index
    %c1_28 = arith.constant 1 : index
    %c1_29 = arith.constant 1 : index
    %c0_30 = arith.constant 0 : index
    %27 = vector.load %arg2[%c0_27, %c1_28, %c1_29, %c0_30] : memref<1x18x18x4xbf16, #tpu.memory_space<vmem>>, vector<1x16x16x4xbf16>
    %28 = vector.shape_cast %27 : vector<1x16x16x4xbf16> to vector<16x16x4xbf16>
    %29 = vector.shape_cast %28 : vector<16x16x4xbf16> to vector<256x4xbf16>
    %c4 = arith.constant 4 : index
    %c0_31 = arith.constant 0 : index
    %c0_32 = arith.constant 0 : index
    %30 = vector.load %arg3[%c4, %c0_31, %c0_32] : memref<9x4x128xbf16, #tpu.memory_space<vmem>>, vector<1x4x128xbf16>
    %31 = vector.shape_cast %30 : vector<1x4x128xbf16> to vector<4x128xbf16>
    %cst_33 = arith.constant dense<0.000000e+00> : vector<256x128xf32>
    %32 = tpu.matmul %29, %31, %cst_33 {dimension_numbers = #tpu.dot_dimension_numbers<[1], [0], [0], [1], [0, 0, 1, 1], [], []>} : vector<256x4xbf16>, vector<4x128xbf16>, vector<256x128xf32> -> vector<256x128xf32>
    %33 = arith.addf %26, %32 : vector<256x128xf32>
    %c0_34 = arith.constant 0 : index
    %c1_35 = arith.constant 1 : index
    %c2_36 = arith.constant 2 : index
    %c0_37 = arith.constant 0 : index
    %34 = vector.load %arg2[%c0_34, %c1_35, %c2_36, %c0_37] : memref<1x18x18x4xbf16, #tpu.memory_space<vmem>>, vector<1x16x16x4xbf16>
    %35 = vector.shape_cast %34 : vector<1x16x16x4xbf16> to vector<16x16x4xbf16>
    %36 = vector.shape_cast %35 : vector<16x16x4xbf16> to vector<256x4xbf16>
    %c5 = arith.constant 5 : index
    %c0_38 = arith.constant 0 : index
    %c0_39 = arith.constant 0 : index
    %37 = vector.load %arg3[%c5, %c0_38, %c0_39] : memref<9x4x128xbf16, #tpu.memory_space<vmem>>, vector<1x4x128xbf16>
    %38 = vector.shape_cast %37 : vector<1x4x128xbf16> to vector<4x128xbf16>
    %cst_40 = arith.constant dense<0.000000e+00> : vector<256x128xf32>
    %39 = tpu.matmul %36, %38, %cst_40 {dimension_numbers = #tpu.dot_dimension_numbers<[1], [0], [0], [1], [0, 0, 1, 1], [], []>} : vector<256x4xbf16>, vector<4x128xbf16>, vector<256x128xf32> -> vector<256x128xf32>
    %40 = arith.addf %33, %39 : vector<256x128xf32>
    %c0_41 = arith.constant 0 : index
    %c2_42 = arith.constant 2 : index
    %c0_43 = arith.constant 0 : index
    %c0_44 = arith.constant 0 : index
    %41 = vector.load %arg2[%c0_41, %c2_42, %c0_43, %c0_44] : memref<1x18x18x4xbf16, #tpu.memory_space<vmem>>, vector<1x16x16x4xbf16>
    %42 = vector.shape_cast %41 : vector<1x16x16x4xbf16> to vector<16x16x4xbf16>
    %43 = vector.shape_cast %42 : vector<16x16x4xbf16> to vector<256x4xbf16>
    %c6 = arith.constant 6 : index
    %c0_45 = arith.constant 0 : index
    %c0_46 = arith.constant 0 : index
    %44 = vector.load %arg3[%c6, %c0_45, %c0_46] : memref<9x4x128xbf16, #tpu.memory_space<vmem>>, vector<1x4x128xbf16>
    %45 = vector.shape_cast %44 : vector<1x4x128xbf16> to vector<4x128xbf16>
    %cst_47 = arith.constant dense<0.000000e+00> : vector<256x128xf32>
    %46 = tpu.matmul %43, %45, %cst_47 {dimension_numbers = #tpu.dot_dimension_numbers<[1], [0], [0], [1], [0, 0, 1, 1], [], []>} : vector<256x4xbf16>, vector<4x128xbf16>, vector<256x128xf32> -> vector<256x128xf32>
    %47 = arith.addf %40, %46 : vector<256x128xf32>
    %c0_48 = arith.constant 0 : index
    %c2_49 = arith.constant 2 : index
    %c1_50 = arith.constant 1 : index
    %c0_51 = arith.constant 0 : index
    %48 = vector.load %arg2[%c0_48, %c2_49, %c1_50, %c0_51] : memref<1x18x18x4xbf16, #tpu.memory_space<vmem>>, vector<1x16x16x4xbf16>
    %49 = vector.shape_cast %48 : vector<1x16x16x4xbf16> to vector<16x16x4xbf16>
    %50 = vector.shape_cast %49 : vector<16x16x4xbf16> to vector<256x4xbf16>
    %c7 = arith.constant 7 : index
    %c0_52 = arith.constant 0 : index
    %c0_53 = arith.constant 0 : index
    %51 = vector.load %arg3[%c7, %c0_52, %c0_53] : memref<9x4x128xbf16, #tpu.memory_space<vmem>>, vector<1x4x128xbf16>
    %52 = vector.shape_cast %51 : vector<1x4x128xbf16> to vector<4x128xbf16>
    %cst_54 = arith.constant dense<0.000000e+00> : vector<256x128xf32>
    %53 = tpu.matmul %50, %52, %cst_54 {dimension_numbers = #tpu.dot_dimension_numbers<[1], [0], [0], [1], [0, 0, 1, 1], [], []>} : vector<256x4xbf16>, vector<4x128xbf16>, vector<256x128xf32> -> vector<256x128xf32>
    %54 = arith.addf %47, %53 : vector<256x128xf32>
    %c0_55 = arith.constant 0 : index
    %c2_56 = arith.constant 2 : index
    %c2_57 = arith.constant 2 : index
    %c0_58 = arith.constant 0 : index
    %55 = vector.load %arg2[%c0_55, %c2_56, %c2_57, %c0_58] : memref<1x18x18x4xbf16, #tpu.memory_space<vmem>>, vector<1x16x16x4xbf16>
    %56 = vector.shape_cast %55 : vector<1x16x16x4xbf16> to vector<16x16x4xbf16>
    %57 = vector.shape_cast %56 : vector<16x16x4xbf16> to vector<256x4xbf16>
    %c8 = arith.constant 8 : index
    %c0_59 = arith.constant 0 : index
    %c0_60 = arith.constant 0 : index
    %58 = vector.load %arg3[%c8, %c0_59, %c0_60] : memref<9x4x128xbf16, #tpu.memory_space<vmem>>, vector<1x4x128xbf16>
    %59 = vector.shape_cast %58 : vector<1x4x128xbf16> to vector<4x128xbf16>
    %cst_61 = arith.constant dense<0.000000e+00> : vector<256x128xf32>
    %60 = tpu.matmul %57, %59, %cst_61 {dimension_numbers = #tpu.dot_dimension_numbers<[1], [0], [0], [1], [0, 0, 1, 1], [], []>} : vector<256x4xbf16>, vector<4x128xbf16>, vector<256x128xf32> -> vector<256x128xf32>
    %61 = arith.addf %54, %60 : vector<256x128xf32>
    %c0_62 = arith.constant 0 : index
    %c0_63 = arith.constant 0 : index
    %62 = vector.load %arg4[%c0_62, %c0_63] : memref<1x128xf32, #tpu.memory_space<vmem>>, vector<1x128xf32>
    %63 = vector.broadcast %62 : vector<1x128xf32> to vector<256x128xf32>
    %64 = arith.mulf %61, %63 : vector<256x128xf32>
    %c0_64 = arith.constant 0 : index
    %c0_65 = arith.constant 0 : index
    %65 = vector.load %arg5[%c0_64, %c0_65] : memref<1x128xf32, #tpu.memory_space<vmem>>, vector<1x128xf32>
    %66 = vector.broadcast %65 : vector<1x128xf32> to vector<256x128xf32>
    %67 = arith.addf %64, %66 : vector<256x128xf32>
    %cst_66 = arith.constant 0.000000e+00 : f32
    %68 = vector.broadcast %cst_66 : f32 to vector<256x128xf32>
    %69 = arith.maximumf %67, %68 : vector<256x128xf32>
    %70 = vector.shape_cast %69 : vector<256x128xf32> to vector<1x16x16x128xf32>
    %c0_67 = arith.constant 0 : index
    %c0_68 = arith.constant 0 : index
    %c0_69 = arith.constant 0 : index
    %c0_70 = arith.constant 0 : index
    %71 = vector.load %arg6[%c0_67, %c0_68, %c0_69, %c0_70] : memref<1x16x16x128xf32, #tpu.memory_space<vmem>>, vector<1x16x16x128xf32>
    tpu.vector_store %arg6[%c0_67, %c0_68, %c0_69, %c0_70], %70 {strides = array<i32>} : memref<1x16x16x128xf32, #tpu.memory_space<vmem>>, vector<1x16x16x128xf32>,
    return
  }
  func.func @transform_0(%arg0: i32, %arg1: i32) -> (i32, i32, i32, i32) {
    %c0_i32 = arith.constant 0 : i32
    %c0_i32_0 = arith.constant 0 : i32
    %c0_i32_1 = arith.constant 0 : i32
    %c0_i32_2 = arith.constant 0 : i32
    return %arg0, %c0_i32, %c0_i32_0, %c0_i32_1 : i32, i32, i32, i32
  }
  func.func @transform_1(%arg0: i32, %arg1: i32) -> (i32, i32, i32) {
    %c0_i32 = arith.constant 0 : i32
    %c0_i32_0 = arith.constant 0 : i32
    %c0_i32_1 = arith.constant 0 : i32
    return %c0_i32, %c0_i32_0, %arg1 : i32, i32, i32
  }
  func.func @transform_2(%arg0: i32, %arg1: i32) -> (i32, i32) {
    %c0_i32 = arith.constant 0 : i32
    %c0_i32_0 = arith.constant 0 : i32
    return %c0_i32, %arg1 : i32, i32
  }
  func.func @transform_3(%arg0: i32, %arg1: i32) -> (i32, i32) {
    %c0_i32 = arith.constant 0 : i32
    %c0_i32_0 = arith.constant 0 : i32
    return %c0_i32, %arg1 : i32, i32
  }
  func.func @transform_4(%arg0: i32, %arg1: i32) -> (i32, i32, i32, i32) {
    %c0_i32 = arith.constant 0 : i32
    %c0_i32_0 = arith.constant 0 : i32
    %c0_i32_1 = arith.constant 0 : i32
    return %arg0, %c0_i32, %c0_i32_0, %arg1 : i32, i32, i32, i32
  }
}

</mosaic_0001>

<bundles_post_ra>
// kernel: duc_forward.1
= control target key start
LH: loop header
LB: loop body
LE: loop exit
PB: predicated region body
PF: predicated region fallthrough
CT: control target
= control target key end

     0   :  { %s6229_s15 = smov 0   ;;  %s6231_s16 = smov 0   ;;  %s8927_s0 = inlined_call_operand.vmem [shape: bf16[2,18,18,4], index: 0, kind: input, shape index: {}]   ;;  %s8928_s1 = inlined_call_operand.vmem [shape: bf16[9,4,128], index: 1, kind: input, shape index: {}]   ;;  %s8929_s2 = inlined_call_operand.vmem [shape: f32[1,128], index: 2, kind: input, shape index: {}]   ;;  %s8930_s3 = inlined_call_operand.vmem [shape: f32[1,128], index: 3, kind: input, shape index: {}]   ;;  %s8931_s4 = inlined_call_operand.vmem [shape: f32[2,16,16,128], index: 4, kind: output, shape index: {}]  }
   0x1   :  { %s6233_s17 = smov 0  }
   0x2 LB: > { %s26_s18 = sadd.s32 1, %s6198_s16  ;;  %p5089_p0 = scmp.ge.s32.totalorder %s6202_s17, 1  ;;  %s6202_s17 = sphi %s6233_s17, %s14_s17   ;;  %s6198_s16 = sphi %s6231_s16, %s9207_s16   ;;  %s6194_s15 = sphi %s6229_s15, %s9206_s15  }
   0x3   : > { %p28_p1 = scmp.ge.s32.totalorder %s26_s18, 2  ;;  %p201_p2 = scmp.lt.s32.totalorder %s6202_s17, 3 }
   0x5   : > { %s9209_s18 = smov (%p28_p1, %s26_s18), 0  ;;  %p202_p3 = pnand %p5089_p0, %p201_p2 }
   0x7   : > { %205 = sbr.rel (%p202_p3) target bundleno = 559 (0x22f), region = 36 }
   0xc   : > { %v5093_v0 = vld [vmem:[%s8928_s1 + $0x2] sm:$0x3]  ;;  %vm799_vm0 = vcmask 1041408   ;;  %p240_p4 = scmp.lt.s32.totalorder %s6194_s15, 1  ;;  %v296_v2 = vld [vmem:[%s8928_s1] sm:$0x3] }
   0xd   : > { %6096 = vmatprep.subr.msk.bf16.mxu1 %vm799_vm0, %v5093_v0  ;;  %6095 = vmatprep.subr.msk.bf16.mxu0 %vm799_vm0, %v5093_v0  ;;  %v801_v1 = vsel %vm799_vm0, %v5093_v0, 0  ;;  %v5174_v3 = vld [vmem:[%s8928_s1 + $0x4] sm:$0x3]  ;;  %vm313_vm1 = vsmask.f32 3328  ;;  %v6270_v4 = vsel %vm799_vm0, %v296_v2, 0 }
   0xe   : > { %6094 = vmatpush3.bf16.msra.mxu1 %v801_v1  ;;  %5788 = vmatpush3.bf16.msra.mxu0 %v801_v1  ;;  %s9211_s15 = smov (!%p240_p4, %s6194_s15), 1  ;;  %vm314_vm2 = vsmask.f32 7440  ;;  %vm750_vm3 = vcmask 31744   ;;  %v6296_v16 = vsel %vm799_vm0, %v5174_v3, 0  ;;  %vm1304_vm5 = vcmask 1042432  }
   0xf   : > { %6097 = vmatprep.subr.msk.bf16.mxu1 %vm799_vm0, %v296_v2  ;;  %6098 = vmatprep.subr.msk.bf16.mxu0 %vm799_vm0, %v5174_v3  ;;  %s6105_s25 = smul.u32 216, %s9211_s15  ;;  %vm6311_vm4 = vmor %vm313_vm1, %vm314_vm2  ;;  %vm1305_vm6 = vcmask 1046532   ;;  %s5633_s23 = sshll.u32 %s9211_s15, 8 }
  0x10   : > { %vm6597_vm7 = vmor %vm1304_vm5, %vm1305_vm6 }
  0x11   : > { %s6267_s28 = scalar_lea.vmem %s8927_s0, %s6105_s25  ;;  %s8749_s25 = scalar_lea.vmem %s8931_s4, %s5633_s23 }
  0x12   : > { %v6273_v5 = vld [vmem:[%s6267_s28] sm:$0xf]  ;;  %v6276_v6 = vld [vmem:[%s6267_s28 + $0x4] sm:$0xf]  ;;  %v6279_v7 = vld [vmem:[%s6267_s28 + $0x8] sm:$0x1] }
  0x13   : > { %v317_v8 = vshrl.u32 %v6273_v5, 16  ;;  %v320_v9 = vshll.u32 %v6273_v5, 16  ;;  %v326_v10 = vshll.u32 %v6276_v6, 16  ;;  %v330_v11 = vshrl.u32 %v6276_v6, 16  ;;  %v6286_v12 = vld [vmem:[%s6267_s28 + $0x60] sm:$0xf] }
  0x14   : > { %v336_v13 = vshll.u32 %v6279_v7, 16  ;;  %v6290_v14 = vld [vmem:[%s6267_s28 + $0x64] sm:$0xf]  ;;  %v6293_v15 = vld [vmem:[%s6267_s28 + $0x68] sm:$0x1]  ;;  %v509_v22 = vshrl.u32 %v6286_v12, 16 }
  0x15   : > { %v319_v17 = vrot.slane %v317_v8, 4  ;;  %v322_v18 = vrot.slane %v320_v9, 5  ;;  %v328_v19 = vrot.slane %v326_v10, 5  ;;  %v332_v20 = vrot.slane %v330_v11, 4  ;;  %v6304_v29 = vld [vmem:[%s6267_s28 + $0xc] sm:$0xf] }
  0x16   : > { %v338_v21 = vrot.slane %v336_v13, 5  ;;  %v512_v23 = vshll.u32 %v6286_v12, 16  ;;  %v518_v24 = vshll.u32 %v6290_v14, 16  ;;  %v522_v27 = vshrl.u32 %v6290_v14, 16  ;;  %v6307_v30 = vld [vmem:[%s6267_s28 + $0x10] sm:$0xf] }
  0x17   : > { %v323_v25 = vor.u32 %v322_v18, %v319_v17  ;;  %v333_v26 = vor.u32 %v332_v20, %v328_v19  ;;  %v528_v28 = vshll.u32 %v6293_v15, 16  ;;  %v511_v33 = vrot.slane %v509_v22, 4  ;;  %v6317_v41 = vld [vmem:[%s6267_s28 + $0x14] sm:$0x1]  ;;  %v6328_v53 = vld [vmem:[%s6267_s28 + $0x6c] sm:$0xf] }
  0x18   : > { %v514_v34 = vrot.slane %v512_v23, 5  ;;  %v520_v35 = vrot.slane %v518_v24, 5  ;;  %v524_v38 = vrot.slane %v522_v27, 4  ;;  %v341_v42 = vshrl.u32 %v6304_v29, 16  ;;  %v6332_v58 = vld [vmem:[%s6267_s28 + $0x70] sm:$0xf] }
  0x19   : > { %v324_v36 = vrot.slane %v323_v25, 4  ;;  %v334_v37 = vrot.slane %v333_v26, 4  ;;  %v530_v39 = vrot.slane %v528_v28, 5  ;;  %v344_v43 = vshll.u32 %v6304_v29, 16  ;;  %v6340_v63 = vld [vmem:[%s6267_s28 + $0x74] sm:$0x1] }
  0x1a   : > { %v515_v40 = vor.u32 %v514_v34, %v511_v33  ;;  %v350_v44 = vshll.u32 %v6307_v30, 16  ;;  %v525_v47 = vor.u32 %v524_v38, %v520_v35  ;;  %v354_v48 = vshrl.u32 %v6307_v30, 16  ;;  %v6346_v8 = vld [vmem:[%s6267_s28 + $0x18] sm:$0xf]  ;;  %v6359_v25 = vld [vmem:[%s6267_s28 + $0x20] sm:$0x1] }
  0x1b   : > { %v329_v45 = vsel %vm6311_vm4, %v324_v36, %v328_v19  ;;  %v339_v46 = vsel %vm6311_vm4, %v334_v37, %v338_v21  ;;  %v343_v51 = vrot.slane %v341_v42, 4  ;;  %v346_v52 = vrot.slane %v344_v43, 5  ;;  %v6353_v21 = vld [vmem:[%s6267_s28 + $0x1c] sm:$0xf] }
  0x1c   : > { %v5094_v49 = vcombine.low %v329_v45, %v339_v46  ;;  %v516_v50 = vrot.slane %v515_v40, 4  ;;  %v526_v54 = vrot.slane %v525_v47, 4  ;;  %v352_v55 = vrot.slane %v350_v44, 5  ;;  %v6372_v40 = vld [vmem:[%s8928_s1 + $0x8] sm:$0x3] }
  0x1d   : > { %v356_v56 = vrot.slane %v354_v48, 4  ;;  %v360_v57 = vshll.u32 %v6317_v41, 16  ;;  %v347_v60 = vor.u32 %v346_v52, %v343_v51  ;;  %v533_v3 = vshrl.u32 %v6328_v53, 16  ;;  %v6377_v46 = vld [vmem:[%s6267_s28 + $0x7c] sm:$0xf] }
  0x1e   : > { %5789 = vmatprep.mubr.msk.bf16.mxu0 %vm750_vm3, %v5094_v49  ;;  %v521_v59 = vsel %vm6311_vm4, %v516_v50, %v520_v35  ;;  %v531_v0 = vsel %vm6311_vm4, %v526_v54, %v530_v39  ;;  %v536_v11 = vshll.u32 %v6328_v53, 16  ;;  %v542_v13 = vshll.u32 %v6332_v58, 16  ;;  %v6366_v35 = vld [vmem:[%s6267_s28 + $0x78] sm:$0xf] }
  0x1f   : > { %v357_v1 = vor.u32 %v356_v56, %v352_v55  ;;  %v362_v2 = vrot.slane %v360_v57, 5  ;;  %v5102_v9 = vcombine.low %v521_v59, %v531_v0  ;;  %v348_v10 = vrot.slane %v347_v60, 4  ;;  %v6384_v56 = vld [vmem:[%s6267_s28 + $0x80] sm:$0x1] }
  0x20   : > { %v535_v18 = vrot.slane %v533_v3, 4  ;;  %v546_v19 = vshrl.u32 %v6332_v58, 16  ;;  %v552_v20 = vshll.u32 %v6340_v63, 16  ;;  %v538_v23 = vrot.slane %v536_v11, 5  ;;  %8967 = vst [vmem:[#allocation2_spill] sm:$0xff] %v6384_v56 }
  0x21   : > { %v358_v17 = vrot.slane %v357_v1, 4  ;;  %5805 = vmatprep.mubr.msk.bf16.mxu1 %vm750_vm3, %v5102_v9  ;;  %v353_v22 = vsel %vm6311_vm4, %v348_v10, %v352_v55  ;;  %v544_v24 = vrot.slane %v542_v13, 5  ;;  %v365_v26 = vshrl.u32 %v6346_v8, 16  ;;  %v6390_v1 = vld [vmem:[%s6267_s28 + $0x24] sm:$0xf] }
  0x22   : > { %v548_v28 = vrot.slane %v546_v19, 4  ;;  %v554_v33 = vrot.slane %v552_v20, 5  ;;  %v368_v34 = vshll.u32 %v6346_v8, 16  ;;  %v539_v37 = vor.u32 %v538_v23, %v535_v18  ;;  %v6398_v10 = vld [vmem:[%s6267_s28 + $0x28] sm:$0xf] }
  0x23   : > { %v363_v27 = vsel %vm6311_vm4, %v358_v17, %v362_v2  ;;  %v367_v38 = vrot.slane %v365_v26, 4  ;;  %v374_v39 = vshll.u32 %v6353_v21, 16  ;;  %v378_v44 = vshrl.u32 %v6353_v21, 16  ;;  %v6404_v19 = vld [vmem:[%s8928_s1 + $0x6] sm:$0x3] }
  0x24   : > { %v5095_v36 = vcombine.low %v353_v22, %v363_v27  ;;  %v549_v42 = vor.u32 %v548_v28, %v544_v24  ;;  %v370_v43 = vrot.slane %v368_v34, 5  ;;  %v384_v45 = vshll.u32 %v6359_v25, 16 }
  0x25   : > { %v540_v47 = vrot.slane %v539_v37, 4  ;;  %v376_v48 = vrot.slane %v374_v39, 5  ;;  %v557_v49 = vshrl.u32 %v6366_v35, 16  ;;  %v560_v50 = vshll.u32 %v6366_v35, 16 }
  0x26   : > { %5790 = vmatmul.mubr.msk.bf16.vlgmr.msra.gmra.mxu0 %vm750_vm3, %v5095_v36  ;;  %v550_v51 = vrot.slane %v549_v42, 4  ;;  %v371_v52 = vor.u32 %v370_v43, %v367_v38  ;;  %v380_v54 = vrot.slane %v378_v44, 4  ;;  %v386_v55 = vrot.slane %v384_v45, 5  ;;  %v6416_v36 = vld [vmem:[%s6267_s28 + $0x84] sm:$0xf] }
  0x27   : > { %5856 = vmatpush3.bf16.msra.mxu0 %v6296_v16  ;;  %v545_v57 = vsel %vm6311_vm4, %v540_v47, %v544_v24  ;;  %v559_v59 = vrot.slane %v557_v49, 4  ;;  %v562_v60 = vrot.slane %v560_v50, 5  ;;  %v566_v0 = vshll.u32 %v6377_v46, 16  ;;  %v6409_v24 = vld [vmem:[%s6267_s28 + $0x2c] sm:$0x1] }
  0x28   : > { %6100 = vmatprep.subr.msk.bf16.mxu0 %vm799_vm0, %v6372_v40  ;;  %v555_v16 = vsel %vm6311_vm4, %v550_v51, %v554_v33  ;;  %v372_v2 = vrot.slane %v371_v52, 4  ;;  %v381_v3 = vor.u32 %v380_v54, %v376_v48  ;;  %v570_v9 = vshrl.u32 %v6377_v46, 16  ;;  %v6423_v43 = vld [vmem:[%s6267_s28 + $0x88] sm:$0xf]  ;;  %v6431_v51 = vld [vmem:[%s6267_s28 + $0x8c] sm:$0x1] }
  0x29   : > { %v5103_v11 = vcombine.low %v545_v57, %v555_v16  ;;  %v563_v13 = vor.u32 %v562_v60, %v559_v59  ;;  %v568_v17 = vrot.slane %v566_v0, 5  ;;  %v576_v18 = vshll.u32 %v6384_v56, 16  ;;  %8968 = vst [vmem:[#allocation3_spill] sm:$0xff] %v6431_v51  ;;  %v6439_v60 = vld [vmem:[%s6267_s28 + $0x30] sm:$0xf] }
  0x2a   : > { %v377_v20 = vsel %vm6311_vm4, %v372_v2, %v376_v48  ;;  %v382_v22 = vrot.slane %v381_v3, 4  ;;  %v572_v23 = vrot.slane %v570_v9, 4  ;;  %v389_v26 = vshrl.u32 %v6390_v1, 16  ;;  %v6444_v9 = vld [vmem:[%s6267_s28 + $0x34] sm:$0xf] }
  0x2b   : > { %5806 = vmatmul.mubr.msk.bf16.vlgmr.msra.gmra.mxu1 %vm750_vm3, %v5103_v11  ;;  %v564_v27 = vrot.slane %v563_v13, 4  ;;  %v578_v28 = vrot.slane %v576_v18, 5  ;;  %v392_v33 = vshll.u32 %v6390_v1, 16  ;;  %v398_v34 = vshll.u32 %v6398_v10, 16 }
  0x2c   : > { %5822 = vmatpush3.bf16.msra.mxu1 %v6270_v4  ;;  %v387_v37 = vsel %vm6311_vm4, %v382_v22, %v386_v55  ;;  %v573_v38 = vor.u32 %v572_v23, %v568_v17  ;;  %v391_v39 = vrot.slane %v389_v26, 4  ;;  %v402_v42 = vshrl.u32 %v6398_v10, 16 }
  0x2d   : > { %v5096_v44 = vcombine.low %v377_v20, %v387_v37  ;;  %v569_v45 = vsel %vm6311_vm4, %v564_v27, %v568_v17  ;;  %v394_v47 = vrot.slane %v392_v33, 5  ;;  %v400_v48 = vrot.slane %v398_v34, 5  ;;  %6099 = vmatprep.subr.msk.bf16.mxu1 %vm799_vm0, %v6404_v19  ;;  %v6452_v33 = vld [vmem:[%s6267_s28 + $0x38] sm:$0x1] }
  0x2e   : > { %v574_v4 = vrot.slane %v573_v38, 4  ;;  %v404_v49 = vrot.slane %v402_v42, 4  ;;  %v408_v50 = vshll.u32 %v6409_v24, 16  ;;  %v581_v52 = vshrl.u32 %v6416_v36, 16  ;;  %v6457_v38 = vld [vmem:[%s6267_s28 + $0x90] sm:$0xf] }
  0x2f   : > { %5793 = vmatprep.mubr.msk.bf16.mxu0 %vm750_vm3, %v5096_v44  ;;  %v395_v54 = vor.u32 %v394_v47, %v391_v39  ;;  %v584_v55 = vshll.u32 %v6416_v36, 16  ;;  %v590_v57 = vshll.u32 %v6423_v43, 16  ;;  %v594_v59 = vshrl.u32 %v6423_v43, 16  ;;  %8969 = vst [vmem:[#allocation4_spill] sm:$0xff] %v6457_v38  ;;  %v6462_v47 = vld [vmem:[%s6267_s28 + $0x94] sm:$0xf] }
  0x30   : > { %v579_v0 = vsel %vm6311_vm4, %v574_v4, %v578_v28  ;;  %v405_v16 = vor.u32 %v404_v49, %v400_v48  ;;  %v410_v2 = vrot.slane %v408_v50, 5  ;;  %v583_v3 = vrot.slane %v581_v52, 4  ;;  %8970 = vst [vmem:[#allocation5_spill] sm:$0xff] %v6462_v47 }
  0x31   : > { %v5104_v11 = vcombine.low %v569_v45, %v579_v0  ;;  %v396_v13 = vrot.slane %v395_v54, 4  ;;  %v586_v17 = vrot.slane %v584_v55, 5  ;;  %v592_v18 = vrot.slane %v590_v57, 5 }
  0x32   : > { %v406_v20 = vrot.slane %v405_v16, 4  ;;  %v596_v22 = vrot.slane %v594_v59, 4  ;;  %v600_v23 = vshll.u32 %v6431_v51, 16  ;;  %v413_v26 = vshrl.u32 %v6439_v60, 16  ;;  %v6471_v16 = vld [vmem:[%s6267_s28 + $0x98] sm:$0x1] }
  0x33   : > { %5809 = vmatprep.mubr.msk.bf16.mxu1 %vm750_vm3, %v5104_v11  ;;  %v401_v27 = vsel %vm6311_vm4, %v396_v13, %v400_v48  ;;  %v587_v28 = vor.u32 %v586_v17, %v583_v3  ;;  %v416_v34 = vshll.u32 %v6439_v60, 16  ;;  %v422_v37 = vshll.u32 %v6444_v9, 16  ;;  %8971 = vst [vmem:[#allocation6_spill] sm:$0xff] %v6471_v16  ;;  %v6476_v11 = vld [vmem:[%s6267_s28 + $0x3c] sm:$0xf] }
  0x34   : > { %v411_v39 = vsel %vm6311_vm4, %v406_v20, %v410_v2  ;;  %v597_v42 = vor.u32 %v596_v22, %v592_v18  ;;  %v602_v44 = vrot.slane %v600_v23, 5  ;;  %v415_v45 = vrot.slane %v413_v26, 4  ;;  %v6481_v23 = vld [vmem:[%s6267_s28 + $0x40] sm:$0xf]  ;;  %v1257_v51 = vld [vmem:[%s6267_s28 + $0xc] sm:$0xe] }
  0x35   : > { %v5097_v48 = vcombine.low %v401_v27, %v411_v39  ;;  %v588_v4 = vrot.slane %v587_v28, 4  ;;  %v418_v49 = vrot.slane %v416_v34, 5  ;;  %v424_v50 = vrot.slane %v422_v37, 5 }
  0x36   : > { %v598_v52 = vrot.slane %v597_v42, 4  ;;  %v426_v54 = vshrl.u32 %v6444_v9, 16  ;;  %v432_v55 = vshll.u32 %v6452_v33, 16  ;;  %v605_v57 = vshrl.u32 %v6457_v38, 16 }
  0x37   : > { %5794 = vmatmul.mubr.msk.bf16.gmra.mxu0 %vm750_vm3, %v5097_v48  ;;  %v593_v59 = vsel %vm6311_vm4, %v588_v4, %v592_v18  ;;  %v419_v0 = vor.u32 %v418_v49, %v415_v45  ;;  %v608_v2 = vshll.u32 %v6457_v38, 16  ;;  %v614_v3 = vshll.u32 %v6462_v47, 16  ;;  %v6490_v48 = vld [vmem:[%s6267_s28 + $0x44] sm:$0x1] }
  0x38   : > { %v603_v13 = vsel %vm6311_vm4, %v598_v52, %v602_v44  ;;  %v428_v17 = vrot.slane %v426_v54, 4  ;;  %v434_v20 = vrot.slane %v432_v55, 5  ;;  %v607_v22 = vrot.slane %v605_v57, 4  ;;  %v6495_v52 = vld [vmem:[%s6267_s28 + $0x9c] sm:$0xf] }
  0x39   : > { %v5105_v18 = vcombine.low %v593_v59, %v603_v13  ;;  %v420_v26 = vrot.slane %v419_v0, 4  ;;  %v610_v27 = vrot.slane %v608_v2, 5  ;;  %v616_v28 = vrot.slane %v614_v3, 5  ;;  %8972 = vst [vmem:[#allocation7_spill] sm:$0xff] %v6495_v52  ;;  %v6499_v13 = vld [vmem:[%s6267_s28 + $0xa0] sm:$0xf] }
  0x3a   : > { %v429_v34 = vor.u32 %v428_v17, %v424_v50  ;;  %v618_v37 = vshrl.u32 %v6462_v47, 16  ;;  %v624_v39 = vshll.u32 %v6471_v16, 16  ;;  %v437_v42 = vshrl.u32 %v6476_v11, 16  ;;  %8973 = vst [vmem:[#allocation8_spill] sm:$0xff] %v6499_v13 }
  0x3b   : > { %5810 = vmatmul.mubr.msk.bf16.gmra.mxu1 %vm750_vm3, %v5105_v18  ;;  %v425_v44 = vsel %vm6311_vm4, %v420_v26, %v424_v50  ;;  %v611_v45 = vor.u32 %v610_v27, %v607_v22  ;;  %v440_v4 = vshll.u32 %v6476_v11, 16  ;;  %v446_v49 = vshll.u32 %v6481_v23, 16  ;;  %v6505_v26 = vld [vmem:[%s6267_s28 + $0xa4] sm:$0x1] }
  0x3c   : > { %v430_v54 = vrot.slane %v429_v34, 4  ;;  %v620_v55 = vrot.slane %v618_v37, 4  ;;  %v626_v57 = vrot.slane %v624_v39, 5  ;;  %v439_v59 = vrot.slane %v437_v42, 4  ;;  %8974 = vst [vmem:[#allocation9_spill] sm:$0xff] %v6505_v26 }
  0x3d   : > { %v612_v0 = vrot.slane %v611_v45, 4  ;;  %v442_v2 = vrot.slane %v440_v4, 5  ;;  %v448_v3 = vrot.slane %v446_v49, 5  ;;  %v450_v50 = vshrl.u32 %v6481_v23, 16  ;;  %v6509_v34 = vld [vmem:[%s6267_s28 + $0x48] sm:$0xf] }
  0x3e   : > { %v435_v17 = vsel %vm6311_vm4, %v430_v54, %v434_v20  ;;  %v621_v22 = vor.u32 %v620_v55, %v616_v28  ;;  %v456_v18 = vshll.u32 %v6490_v48, 16  ;;  %v629_v27 = vshrl.u32 %v6495_v52, 16 }
  0x3f   : > { %v5098_v37 = vcombine.low %v425_v44, %v435_v17  ;;  %v617_v39 = vsel %vm6311_vm4, %v612_v0, %v616_v28  ;;  %v443_v42 = vor.u32 %v442_v2, %v439_v59  ;;  %v452_v45 = vrot.slane %v450_v50, 4  ;;  %v6518_v17 = vld [vmem:[%s6267_s28 + $0x4c] sm:$0xf]  ;;  %v6524_v2 = vld [vmem:[%s6267_s28 + $0x50] sm:$0x1] }
  0x40   : > { %v622_v4 = vrot.slane %v621_v22, 4  ;;  %v458_v49 = vrot.slane %v456_v18, 5  ;;  %v631_v20 = vrot.slane %v629_v27, 4  ;;  %v632_v54 = vshll.u32 %v6495_v52, 16 }
  0x41   : > { %5797 = vmatprep.mubr.msk.bf16.mxu0 %vm750_vm3, %v5098_v37  ;;  %v444_v55 = vrot.slane %v443_v42, 4  ;;  %v453_v62 = vor.u32 %v452_v45, %v448_v3  ;;  %v638_v32 = vshll.u32 %v6499_v13, 16  ;;  %v642_v44 = vshrl.u32 %v6499_v13, 16  ;;  %v6530_v42 = vld [vmem:[%s6267_s28 + $0xa8] sm:$0xf] }
  0x42   : > { %v627_v28 = vsel %vm6311_vm4, %v622_v4, %v626_v57  ;;  %v634_v59 = vrot.slane %v632_v54, 5  ;;  %v648_v0 = vshll.u32 %v6505_v26, 16  ;;  %v461_v50 = vshrl.u32 %v6509_v34, 16  ;;  %8975 = vst [vmem:[#allocation10_spill] sm:$0xff] %v6530_v42 }
  0x43   : > { %v5106_v22 = vcombine.low %v617_v39, %v627_v28  ;;  %v449_v18 = vsel %vm6311_vm4, %v444_v55, %v448_v3  ;;  %v454_v27 = vrot.slane %v453_v62, 4  ;;  %v640_v37 = vrot.slane %v638_v32, 5 }
  0x44   : > { %v635_v45 = vor.u32 %v634_v59, %v631_v20  ;;  %v644_v61 = vrot.slane %v642_v44, 4  ;;  %v650_v57 = vrot.slane %v648_v0, 5  ;;  %v463_v4 = vrot.slane %v461_v50, 4  ;;  %v6540_v44 = vld [vmem:[%s6267_s28 + $0xac] sm:$0xf] }
  0x45   : > { %5813 = vmatprep.mubr.msk.bf16.mxu1 %vm750_vm3, %v5106_v22  ;;  %v459_v54 = vsel %vm6311_vm4, %v454_v27, %v458_v49  ;;  %v464_v39 = vshll.u32 %v6509_v34, 16  ;;  %v470_v28 = vshll.u32 %v6518_v17, 16  ;;  %v474_v62 = vshrl.u32 %v6518_v17, 16  ;;  %8976 = vst [vmem:[#allocation11_spill] sm:$0xff] %v6540_v44  ;;  %v6543_v22 = vld [vmem:[%s6267_s28 + $0xb0] sm:$0x1] }
  0x46   : > { %v5099_v3 = vcombine.low %v449_v18, %v459_v54  ;;  %v636_v32 = vrot.slane %v635_v45, 4  ;;  %v645_v55 = vor.u32 %v644_v61, %v640_v37  ;;  %v480_v20 = vshll.u32 %v6524_v2, 16  ;;  %8977 = vst [vmem:[#allocation12_spill] sm:$0xff] %v6543_v22 }
  0x47   : > { %v466_v59 = vrot.slane %v464_v39, 5  ;;  %v472_v0 = vrot.slane %v470_v28, 5  ;;  %v476_v50 = vrot.slane %v474_v62, 4  ;;  %v653_v49 = vshrl.u32 %v6530_v42, 16  ;;  %v6552_v62 = vld [vmem:[%s6267_s28 + $0x54] sm:$0xf] }
  0x48   : > { %5798 = vmatmul.mubr.msk.bf16.gmra.mxu0 %vm750_vm3, %v5099_v3  ;;  %v641_v18 = vsel %vm6311_vm4, %v636_v32, %v640_v37  ;;  %v646_v27 = vrot.slane %v645_v55, 4  ;;  %v482_v61 = vrot.slane %v480_v20, 5  ;;  %v656_v45 = vshll.u32 %v6530_v42, 16  ;;  %v6559_v55 = vld [vmem:[%s6267_s28 + $0x58] sm:$0xf] }
  0x49   : > { %v467_v54 = vor.u32 %v466_v59, %v463_v4  ;;  %v477_v56 = vor.u32 %v476_v50, %v472_v0  ;;  %v655_v39 = vrot.slane %v653_v49, 4  ;;  %v662_v28 = vshll.u32 %v6540_v44, 16  ;;  %v6562_v49 = vld [vmem:[%s6267_s28 + $0x5c] sm:$0x1] }
  0x4a   : > { %v651_v3 = vsel %vm6311_vm4, %v646_v27, %v650_v57  ;;  %v658_v26 = vrot.slane %v656_v45, 5  ;;  %v666_v37 = vshrl.u32 %v6540_v44, 16  ;;  %v672_v32 = vshll.u32 %v6543_v22, 16  ;;  %v1256_v22 = vld [vmem:[%s6267_s28] sm:$0xe] }
  0x4b   : > { %v5107_v4 = vcombine.low %v641_v18, %v651_v3  ;;  %v468_v20 = vrot.slane %v467_v54, 4  ;;  %v478_v59 = vrot.slane %v477_v56, 4  ;;  %v664_v50 = vrot.slane %v662_v28, 5  ;;  %v6573_v54 = vld [vmem:[%s6267_s28 + $0xb4] sm:$0xf] }
  0x4c   : > { %v659_v42 = vor.u32 %v658_v26, %v655_v39  ;;  %v668_v52 = vrot.slane %v666_v37, 4  ;;  %v674_v13 = vrot.slane %v672_v32, 5  ;;  %v485_v57 = vshrl.u32 %v6552_v62, 16  ;;  %8978 = vst [vmem:[#allocation13_spill] sm:$0xff] %v6573_v54  ;;  %v6576_v37 = vld [vmem:[%s6267_s28 + $0xb8] sm:$0xf] }
  0x4d   : > { %5814 = vmatmul.mubr.msk.bf16.gmra.mxu1 %vm750_vm3, %v5107_v4  ;;  %v473_v27 = vsel %vm6311_vm4, %v468_v20, %v472_v0  ;;  %v483_v18 = vsel %vm6311_vm4, %v478_v59, %v482_v61  ;;  %v488_v56 = vshll.u32 %v6552_v62, 16  ;;  %v494_v45 = vshll.u32 %v6559_v55, 16  ;;  %v6581_v61 = vld [vmem:[%s6267_s28 + $0xbc] sm:$0x1] }
  0x4e   : > { %v5100_v26 = vcombine.low %v473_v27, %v483_v18  ;;  %v660_v39 = vrot.slane %v659_v42, 4  ;;  %v669_v28 = vor.u32 %v668_v52, %v664_v50  ;;  %v487_v3 = vrot.slane %v485_v57, 4 }
  0x4f   : > { %v490_v32 = vrot.slane %v488_v56, 5  ;;  %v496_v4 = vrot.slane %v494_v45, 5  ;;  %v498_v0 = vshrl.u32 %v6559_v55, 16  ;;  %v504_v20 = vshll.u32 %v6562_v49, 16 }
  0x50   : > { %5801 = vmatprep.mubr.msk.bf16.mxu0 %vm750_vm3, %v5100_v26  ;;  %v665_v59 = vsel %vm6311_vm4, %v660_v39, %v664_v50  ;;  %v670_v27 = vrot.slane %v669_v28, 4  ;;  %v677_v52 = vshrl.u32 %v6573_v54, 16  ;;  %v680_v42 = vshll.u32 %v6573_v54, 16 }
  0x51   : > { %v491_v57 = vor.u32 %v490_v32, %v487_v3  ;;  %v500_v18 = vrot.slane %v498_v0, 4  ;;  %v506_v56 = vrot.slane %v504_v20, 5  ;;  %v686_v45 = vshll.u32 %v6576_v37, 16 }
  0x52   : > { %v675_v44 = vsel %vm6311_vm4, %v670_v27, %v674_v13  ;;  %v679_v16 = vrot.slane %v677_v52, 4  ;;  %v682_v26 = vrot.slane %v680_v42, 5  ;;  %v690_v38 = vshrl.u32 %v6576_v37, 16 }
  0x53   : > { %v5108_v50 = vcombine.low %v665_v59, %v675_v44  ;;  %v492_v39 = vrot.slane %v491_v57, 4  ;;  %v501_v28 = vor.u32 %v500_v18, %v496_v4  ;;  %v688_v47 = vrot.slane %v686_v45, 5  ;;  %v1258_v57 = vld [vmem:[%s6267_s28 + $0x18] sm:$0xe] }
  0x54   : > { %v683_v54 = vor.u32 %v682_v26, %v679_v16  ;;  %v692_v3 = vrot.slane %v690_v38, 4  ;;  %v696_v32 = vshll.u32 %v6581_v61, 16  ;;  %v5158_v13 = vrot.slane %v1256_v22, 9 }
  0x55   : > { %5817 = vmatprep.mubr.msk.bf16.mxu1 %vm750_vm3, %v5108_v50  ;;  %v497_v44 = vsel %vm6311_vm4, %v492_v39, %v496_v4  ;;  %v502_v20 = vrot.slane %v501_v28, 4  ;;  %v1309_v59 = vrot.slane %v6276_v6, 5  ;;  %v5127_v38 = vcombine.low %v6304_v29, %v6307_v30 }
  0x56   : > { %v684_v16 = vrot.slane %v683_v54, 4  ;;  %v693_v27 = vor.u32 %v692_v3, %v688_v47  ;;  %v698_v52 = vrot.slane %v696_v32, 5  ;;  %v5159_v42 = vrot.slane %v1257_v51, 9 }
  0x57   : > { %v507_v18 = vsel %vm6311_vm4, %v502_v20, %v506_v56  ;;  %v1310_v22 = vsel %vm6597_vm7, %v5158_v13, %v1309_v59  ;;  %v1311_v45 = vrot.slane %v1309_v59, 4  ;;  %v8981_v4 = vrot.slane %v6307_v30, 5 }
  0x58   : > { %v5101_v50 = vcombine.low %v497_v44, %v507_v18  ;;  %v689_v54 = vsel %vm6311_vm4, %v684_v16, %v688_v47  ;;  %v694_v39 = vrot.slane %v693_v27, 4  ;;  %v5126_v51 = vcombine.low %v6273_v5, %v6276_v6  ;;  %v1259_v27 = vld [vmem:[%s6267_s28 + $0x24] sm:$0xe] }
  0x59   : > { %v1318_v26 = vrot.slane %v8981_v4, 4  ;;  %v8982_v28 = vrot.slane %v6279_v7, 5  ;;  %v8983_v3 = vmov %v8981_v4  ;;  %v5128_v13 = vcombine.low %v6346_v8, %v6353_v21  ;;  %v1261_v4 = vld [vmem:[%s6267_s28 + $0x3c] sm:$0xe] }
  0x5a   : > { %v1317_v32 = vsel %vm6597_vm7, %v5159_v42, %v8983_v3  ;;  %v5160_v44 = vrot.slane %v1258_v57, 9  ;;  %5802 = vmatmul.mubr.msk.bf16.gmra.mxu0 %vm750_vm3, %v5101_v50  ;;  %v699_v47 = vsel %vm6311_vm4, %v694_v39, %v698_v52  ;;  %v8984_v6 = vrot.slane %v6317_v41, 5  ;;  %v1260_v42 = vld [vmem:[%s6267_s28 + $0x30] sm:$0xe]  ;;  %v1262_v39 = vld [vmem:[%s6267_s28 + $0x48] sm:$0xe] }
  0x5b   : > { %v1313_v56 = vsel %vm6597_vm7, %v1311_v45, %v8982_v28  ;;  %v1323_v20 = vrot.slane %v6353_v21, 5  ;;  %v5109_v59 = vcombine.low %v689_v54, %v699_v47  ;;  %v1326_v16 = vrot.slane %v6359_v25, 5  ;;  %v1263_v47 = vld [vmem:[%s6267_s28 + $0x54] sm:$0xe]  ;;  %v6892_v21 = vld [vmem:[%s6267_s28 + $0x2c] sm:$0x1] }
  0x5c   : > { %v5175_v5 = vcombine.low %v1310_v22, %v1313_v56  ;;  %v1320_v7 = vsel %vm6597_vm7, %v1318_v26, %v8984_v6  ;;  %v1877_v52 = vsel %vm799_vm0, %v6404_v19, 0  ;;  %v1330_v18 = vrot.slane %v6398_v10, 5 }
  0x5d   : > { %v1324_v41 = vsel %vm6597_vm7, %v5160_v44, %v1323_v20  ;;  %v1325_v57 = vrot.slane %v1323_v20, 4  ;;  %5818 = vmatmul.mubr.msk.bf16.gmra.mxu1 %vm750_vm3, %v5109_v59  ;;  %v5176_v22 = vcombine.low %v1317_v32, %v1320_v7  ;;  %v2603_v25 = vsel %vm799_vm0, %v6372_v40, 0 }
  0x5e   : > { %5857 = vmatprep.mubr.msk.bf16.mxu0 %vm750_vm3, %v5175_v5  ;;  %v1337_v45 = vrot.slane %v6444_v9, 5  ;;  %5823 = vmatprep.mubr.msk.bf16.mxu1 %vm750_vm3, %v5126_v51  ;;  %v5161_v26 = vrot.slane %v1259_v27, 9  ;;  %v1333_v50 = vrot.slane %v6409_v24, 5  ;;  %v5162_v54 = vrot.slane %v1260_v42, 9  ;;  %v6664_v24 = vld [vmem:[%s8928_s1 + $0xc] sm:$0x3] }
  0x5f   : > { %v1327_v19 = vsel %vm6597_vm7, %v1325_v57, %v1326_v16  ;;  %v1332_v56 = vrot.slane %v1330_v18, 4  ;;  %v1340_v32 = vrot.slane %v6452_v33, 5  ;;  %v5163_v44 = vrot.slane %v1261_v4, 9 }
  0x60   : > { %v5177_v28 = vcombine.low %v1324_v41, %v1327_v19  ;;  %v1339_v3 = vrot.slane %v1337_v45, 4  ;;  %v1344_v40 = vrot.slane %v6481_v23, 5  ;;  %v1368_v5 = vrot.slane %v6293_v15, 5 }
  0x61   : > { %v1347_v51 = vrot.slane %v6490_v48, 5  ;;  %v5164_v6 = vrot.slane %v1262_v39, 9  ;;  %v1351_v7 = vrot.slane %v6518_v17, 5  ;;  %v5129_v33 = vcombine.low %v6390_v1, %v6398_v10  ;;  %v1264_v1 = vld [vmem:[%s6267_s28 + $0x60] sm:$0xe] }
  0x62   : > { %5858 = vmatmul.mubr.msk.bf16.vlgmr.msra.gmra.mxu0 %vm750_vm3, %v5176_v22  ;;  %v1331_v20 = vsel %vm6597_vm7, %v5161_v26, %v1330_v18  ;;  %v1346_v59 = vrot.slane %v1344_v40, 4  ;;  %v1354_v16 = vrot.slane %v6524_v2, 5  ;;  %v1334_v48 = vsel %vm6597_vm7, %v1332_v56, %v1333_v50  ;;  %v6692_v22 = vld [vmem:[%s8928_s1 + $0xa] sm:$0x3]  ;;  %v6717_v50 = vld [vmem:[%s6267_s28 + $0x6c] sm:$0xe] }
  0x63   : > { %5924 = vmatpush3.bf16.msra.mxu0 %v2603_v25  ;;  %5861 = vmatprep.mubr.msk.bf16.mxu0 %vm750_vm3, %v5177_v28  ;;  %v1338_v27 = vsel %vm6597_vm7, %v5162_v54, %v1337_v45  ;;  %v1341_v42 = vsel %vm6597_vm7, %v1339_v3, %v1340_v32  ;;  %v1353_v41 = vrot.slane %v1351_v7, 4  ;;  %v6682_v10 = vsel %vm6597_vm7, %v5163_v44, %v1344_v40  ;;  %v1267_v39 = vld [vmem:[%s6267_s28 + $0x84] sm:$0xe]  ;;  %v6746_v44 = vld [vmem:[%s6267_s28 + $0x78] sm:$0xe] }
  0x64   : > { %v6686_v2 = vsel %vm6597_vm7, %v5164_v6, %v1351_v7  ;;  %v5165_v57 = vrot.slane %v1263_v47, 9  ;;  %v1358_v18 = vrot.slane %v6559_v55, 5  ;;  %6102 = vmatprep.subr.msk.bf16.mxu0 %vm799_vm0, %v6664_v24  ;;  %v6702_v25 = vsel %vm6597_vm7, %v1346_v59, %v1347_v51  ;;  %v1268_v40 = vld [vmem:[%s6267_s28 + $0x90] sm:$0xe] }
  0x65   : > { %5824 = vmatmul.mubr.msk.bf16.vlgmr.msra.gmra.mxu1 %vm750_vm3, %v5127_v38  ;;  %v6706_v45 = vsel %vm6597_vm7, %v1353_v41, %v1354_v16  ;;  %v1361_v4 = vrot.slane %v6562_v49, 5  ;;  %v1365_v19 = vrot.slane %v6290_v14, 5  ;;  %v5178_v29 = vcombine.low %v1331_v20, %v1334_v48  ;;  %v8985_v48 = vld [vmem:[#allocation3_spill] sm:$0xff] }
  0x66   : > { %5890 = vmatpush3.bf16.msra.mxu1 %v1877_v52  ;;  %5827 = vmatprep.mubr.msk.bf16.mxu1 %vm750_vm3, %v5128_v13  ;;  %v5130_v30 = vcombine.low %v6439_v60, %v6444_v9  ;;  %v1360_v38 = vrot.slane %v1358_v18, 4  ;;  %v5166_v26 = vrot.slane %v1264_v1, 9  ;;  %v5179_v49 = vcombine.low %v1338_v27, %v1341_v42  ;;  %v1269_v42 = vld [vmem:[%s6267_s28 + $0x9c] sm:$0xe] }
  0x67   : > { %v5131_v52 = vcombine.low %v6476_v11, %v6481_v23  ;;  %v5132_v8 = vcombine.low %v6509_v34, %v6518_v17  ;;  %6101 = vmatprep.subr.msk.bf16.mxu1 %vm799_vm0, %v6692_v22  ;;  %v5180_v60 = vcombine.low %v6682_v10, %v6702_v25  ;;  %v5181_v9 = vcombine.low %v6686_v2, %v6706_v45  ;;  %v8986_v10 = vld [vmem:[#allocation5_spill] sm:$0xff]  ;;  %v8987_v2 = vld [vmem:[#allocation4_spill] sm:$0xff] }
  0x68   : > { %v1367_v54 = vrot.slane %v1365_v19, 4  ;;  %v6736_v28 = vsel %vm6597_vm7, %v5165_v57, %v1358_v18  ;;  %v6740_v56 = vsel %vm6597_vm7, %v1360_v38, %v1361_v4  ;;  %v5167_v32 = vrot.slane %v6717_v50, 9  ;;  %v1270_v18 = vld [vmem:[%s6267_s28 + $0xa8] sm:$0xe]  ;;  %v8989_v38 = vld [vmem:[#allocation8_spill] sm:$0xff] }
  0x69   : > { %v6752_v47 = vsel %vm6597_vm7, %v5166_v26, %v1365_v19  ;;  %v1372_v51 = vrot.slane %v6332_v58, 5  ;;  %v1375_v6 = vrot.slane %v6340_v63, 5  ;;  %v5169_v59 = vrot.slane %v1267_v39, 9  ;;  %v8988_v19 = vld [vmem:[#allocation6_spill] sm:$0xff]  ;;  %v8990_v26 = vld [vmem:[#allocation7_spill] sm:$0xff] }
  0x6a   : > { %5862 = vmatmul.mubr.msk.bf16.gmra.mxu0 %vm750_vm3, %v5178_v29  ;;  %v1386_v16 = vrot.slane %v6423_v43, 5  ;;  %v1389_v27 = vrot.slane %v8985_v48, 5  ;;  %v5182_v41 = vcombine.low %v6736_v28, %v6740_v56  ;;  %v6770_v63 = vsel %vm6597_vm7, %v1367_v54, %v1368_v5  ;;  %v8992_v48 = vld [vmem:[#allocation11_spill] sm:$0xff] }
  0x6b   : > { %5865 = vmatprep.mubr.msk.bf16.mxu0 %vm750_vm3, %v5179_v49  ;;  %v5168_v1 = vrot.slane %v6746_v44, 9  ;;  %v5170_v4 = vrot.slane %v1268_v40, 9  ;;  %v1393_v15 = vrot.slane %v8986_v10, 5  ;;  %v1374_v5 = vrot.slane %v1372_v51, 4  ;;  %v5272_v57 = vld [vmem:[%s6267_s28 + $0xc] sm:$0xf] }
  0x6c   : > { %v6779_v25 = vsel %vm6597_vm7, %v5169_v59, %v1386_v16  ;;  %v1388_v45 = vrot.slane %v1386_v16, 4  ;;  %v1396_v29 = vrot.slane %v8988_v19, 5  ;;  %v5171_v49 = vrot.slane %v1269_v42, 9  ;;  %v8991_v59 = vld [vmem:[#allocation9_spill] sm:$0xff]  ;;  %v8993_v42 = vld [vmem:[#allocation10_spill] sm:$0xff] }
  0x6d   : > { %5828 = vmatmul.mubr.msk.bf16.gmra.mxu1 %vm750_vm3, %v5129_v33  ;;  %v1379_v33 = vrot.slane %v6377_v46, 5  ;;  %v6793_v39 = vsel %vm6597_vm7, %v5170_v4, %v1393_v15  ;;  %v1395_v44 = vrot.slane %v1393_v15, 4  ;;  %v1400_v40 = vrot.slane %v8989_v38, 5  ;;  %v8994_v15 = vld [vmem:[#allocation12_spill] sm:$0xff] }
  0x6e   : > { %5831 = vmatprep.mubr.msk.bf16.mxu1 %vm750_vm3, %v5130_v30  ;;  %v6789_v54 = vsel %vm6597_vm7, %v1388_v45, %v1389_v27  ;;  %v1403_v16 = vrot.slane %v8991_v59, 5  ;;  %v5172_v45 = vrot.slane %v1270_v18, 9  ;;  %v1407_v4 = vrot.slane %v8992_v48, 5 }
  0x6f   : > { %v6803_v27 = vsel %vm6597_vm7, %v1395_v44, %v1396_v29  ;;  %v1410_v50 = vrot.slane %v8994_v15, 5  ;;  %v6813_v19 = vsel %vm6597_vm7, %v5171_v49, %v1400_v40  ;;  %v1402_v7 = vrot.slane %v1400_v40, 4  ;;  %v8995_v29 = vld [vmem:[#allocation13_spill] sm:$0xff]  ;;  %v8996_v15 = vld [vmem:[#allocation2_spill] sm:$0xff]  ;;  %v6828_v49 = vld [vmem:[%s6267_s28 + $0x10] sm:$0xf] }
  0x70   : > { %v6820_v18 = vsel %vm6597_vm7, %v5167_v32, %v1372_v51  ;;  %v6825_v59 = vsel %vm6597_vm7, %v5172_v45, %v1407_v4  ;;  %v1409_v30 = vrot.slane %v1407_v4, 4  ;;  %v5275_v40 = vld [vmem:[%s6267_s28 + $0x18] sm:$0xf]  ;;  %v1381_v20 = vrot.slane %v1379_v33, 4 }
  0x71   : > { %v2121_v44 = vshrl.u32 %v5272_v57, 16  ;;  %v2124_v32 = vshll.u32 %v5272_v57, 16  ;;  %v5183_v51 = vcombine.low %v6752_v47, %v6770_v63  ;;  %v6843_v45 = vsel %vm6597_vm7, %v1374_v5, %v1375_v6  ;;  %v1271_v57 = vld [vmem:[%s6267_s28 + $0xb4] sm:$0xe]  ;;  %v6864_v47 = vld [vmem:[%s6267_s28 + $0x14] sm:$0x1] }
  0x72   : > { %5866 = vmatmul.mubr.msk.bf16.gmra.mxu0 %vm750_vm3, %v5180_v60  ;;  %v1382_v60 = vrot.slane %v8996_v15, 5  ;;  %v6858_v11 = vsel %vm6597_vm7, %v5168_v1, %v1379_v33  ;;  %v2130_v6 = vshll.u32 %v6828_v49, 16  ;;  %v5276_v63 = vld [vmem:[%s6267_s28 + $0x1c] sm:$0xf]  ;;  %v2134_v17 = vshrl.u32 %v6828_v49, 16 }
  0x73   : > { %5869 = vmatprep.mubr.msk.bf16.mxu0 %vm750_vm3, %v5181_v9  ;;  %v6833_v9 = vsel %vm6597_vm7, %v1402_v7, %v1403_v16  ;;  %v6849_v7 = vsel %vm6597_vm7, %v1409_v30, %v1410_v50  ;;  %v2123_v5 = vrot.slane %v2121_v44, 4  ;;  %v2126_v34 = vrot.slane %v2124_v32, 5  ;;  %v5278_v15 = vld [vmem:[%s6267_s28 + $0x24] sm:$0xf]  ;;  %v6877_v44 = vld [vmem:[%s6267_s28 + $0x28] sm:$0xf] }
  0x74   : > { %v2145_v50 = vshrl.u32 %v5275_v40, 16  ;;  %v1383_v1 = vsel %vm6597_vm7, %v1381_v20, %v1382_v60  ;;  %v5173_v33 = vrot.slane %v1271_v57, 9  ;;  %v6872_v30 = vrot.slane %v2130_v6, 5 }
  0x75   : > { %5832 = vmatmul.mubr.msk.bf16.gmra.mxu1 %vm750_vm3, %v5131_v52  ;;  %v1414_v52 = vrot.slane %v6576_v37, 5  ;;  %v2148_v16 = vshll.u32 %v5275_v40, 16  ;;  %v1417_v23 = vrot.slane %v6581_v61, 5  ;;  %v2136_v4 = vrot.slane %v2134_v17, 4 }
  0x76   : > { %5835 = vmatprep.mubr.msk.bf16.mxu1 %vm750_vm3, %v5132_v8  ;;  %v5277_v8 = vld [vmem:[%s6267_s28 + $0x20] sm:$0x1]  ;;  %v2147_v3 = vrot.slane %v2145_v50, 4  ;;  %v2154_v13 = vshll.u32 %v5276_v63, 16  ;;  %v2140_v20 = vshll.u32 %v6864_v47, 16  ;;  %v2158_v57 = vshrl.u32 %v5276_v63, 16 }
  0x77   : > { %v1416_v32 = vrot.slane %v1414_v52, 4  ;;  %v2150_v60 = vrot.slane %v2148_v16, 5  ;;  %v5184_v61 = vcombine.low %v6820_v18, %v6843_v45  ;;  %v5185_v40 = vcombine.low %v6858_v11, %v1383_v1 }
  0x78   : > { %v2127_v6 = vor.u32 %v2126_v34, %v2123_v5  ;;  %v6888_v17 = vrot.slane %v2154_v13, 5  ;;  %v2137_v28 = vor.u32 %v2136_v4, %v6872_v30  ;;  %v2164_v50 = vshll.u32 %v5277_v8, 16  ;;  %v6915_v5 = vld [vmem:[%s6267_s28 + $0x34] sm:$0xf] }
  0x79   : > { %v2151_v56 = vor.u32 %v2150_v60, %v2147_v3  ;;  %v6900_v18 = vsel %vm6597_vm7, %v5173_v33, %v1414_v52  ;;  %v2169_v13 = vshrl.u32 %v5278_v15, 16  ;;  %v2172_v45 = vshll.u32 %v5278_v15, 16  ;;  %v5281_v52 = vld [vmem:[%s6267_s28 + $0x30] sm:$0xf] }
  0x7a   : > { %5870 = vmatmul.mubr.msk.bf16.gmra.mxu0 %vm750_vm3, %v5182_v41  ;;  %v2160_v41 = vrot.slane %v2158_v57, 4  ;;  %v2178_v11 = vshll.u32 %v6877_v44, 16  ;;  %v8998_v3 = vcombine.low %v6286_v12, %v6290_v14  ;;  %v6909_v4 = vsel %vm6597_vm7, %v1416_v32, %v1417_v23 }
  0x7b   : > { %5873 = vmatprep.mubr.msk.bf16.mxu0 %vm750_vm3, %v5183_v51  ;;  %v8997_v51 = vcombine.low %v6552_v62, %v6559_v55  ;;  %v2142_v62 = vrot.slane %v2140_v20, 5  ;;  %v2182_v63 = vshrl.u32 %v6877_v44, 16  ;;  %v2128_v34 = vrot.slane %v2127_v6, 4 }
  0x7c   : > { %v2161_v55 = vor.u32 %v2160_v41, %v6888_v17  ;;  %v2171_v8 = vrot.slane %v2169_v13, 4  ;;  %v2174_v1 = vrot.slane %v2172_v45, 5  ;;  %v6917_v33 = vrot.slane %v2178_v11, 5  ;;  %v6923_v41 = vld [vmem:[%s6267_s28 + $0x38] sm:$0x1] }
  0x7d   : > { %5836 = vmatmul.mubr.msk.bf16.gmra.mxu1 %vm750_vm3, %v8997_v51  ;;  %v2138_v12 = vrot.slane %v2137_v28, 4  ;;  %v2152_v14 = vrot.slane %v2151_v56, 4  ;;  %v2166_v16 = vrot.slane %v2164_v50, 5  ;;  %v2184_v23 = vrot.slane %v2182_v63, 4  ;;  %v5284_v13 = vld [vmem:[%s6267_s28 + $0x3c] sm:$0xf] }
  0x7e   : > { %5839 = vmatprep.mubr.msk.bf16.mxu1 %vm750_vm3, %v8998_v3  ;;  %v2162_v15 = vrot.slane %v2161_v55, 4  ;;  %v2188_v32 = vshll.u32 %v6892_v21, 16  ;;  %v2193_v20 = vshrl.u32 %v5281_v52, 16  ;;  %v2196_v60 = vshll.u32 %v5281_v52, 16 }
  0x7f   : > { %v2175_v57 = vor.u32 %v2174_v1, %v2171_v8  ;;  %v2185_v6 = vor.u32 %v2184_v23, %v6917_v33  ;;  %v2202_v28 = vshll.u32 %v6915_v5, 16  ;;  %v2206_v56 = vshrl.u32 %v6915_v5, 16  ;;  %v5287_v8 = vld [vmem:[%s6267_s28 + $0x48] sm:$0xf]  ;;  %v6950_v1 = vld [vmem:[%s6267_s28 + $0x4c] sm:$0xf] }
  0x80   : > { %v2195_v50 = vrot.slane %v2193_v20, 4  ;;  %v2198_v51 = vrot.slane %v2196_v60, 5  ;;  %v8999_v3 = vcombine.low %v6328_v53, %v6332_v58  ;;  %v5190_v55 = vcombine.low %v6900_v18, %v6909_v4 }
  0x81   : > { %v6929_v45 = vrot.slane %v2202_v28, 5  ;;  %v2208_v11 = vrot.slane %v2206_v56, 4  ;;  %v2143_v63 = vsel %vm6311_vm4, %v2138_v12, %v2142_v62  ;;  %v2157_v52 = vsel %vm6311_vm4, %v2152_v14, %v6888_v17 }
  0x82   : > { %5874 = vmatmul.mubr.msk.bf16.gmra.mxu0 %vm750_vm3, %v5184_v61  ;;  %v6932_v61 = vld [vmem:[%s6267_s28 + $0x40] sm:$0xf]  ;;  %v9000_v53 = vcombine.low %v6366_v35, %v6377_v46  ;;  %v2167_v58 = vsel %vm6311_vm4, %v2162_v15, %v2166_v16  ;;  %v2176_v23 = vrot.slane %v2175_v57, 4  ;;  %v2199_v20 = vor.u32 %v2198_v51, %v2195_v50  ;;  %v6984_v50 = vld [vmem:[%s6267_s28 + $0x44] sm:$0x1] }
  0x83   : > { %5877 = vmatprep.mubr.msk.bf16.mxu0 %vm750_vm3, %v5185_v40  ;;  %v2133_v40 = vsel %vm6311_vm4, %v2128_v34, %v6872_v30  ;;  %v2186_v30 = vrot.slane %v2185_v6, 4  ;;  %v2190_v34 = vrot.slane %v2188_v32, 5  ;;  %v2212_v62 = vshll.u32 %v6923_v41, 16  ;;  %v5290_v51 = vld [vmem:[%s6267_s28 + $0x54] sm:$0xf] }
  0x84   : > { %v2217_v12 = vshrl.u32 %v5284_v13, 16  ;;  %v2220_v17 = vshll.u32 %v5284_v13, 16  ;;  %v6961_v14 = vsel %vm799_vm0, %v6692_v22, 0  ;;  %v2209_v35 = vor.u32 %v2208_v11, %v6929_v45 }
  0x85   : > { %5840 = vmatmul.mubr.msk.bf16.gmra.mxu1 %vm750_vm3, %v8999_v3  ;;  %v2226_v46 = vshll.u32 %v6932_v61, 16  ;;  %v2230_v16 = vshrl.u32 %v6932_v61, 16  ;;  %v6966_v15 = vcombine.low %v2133_v40, %v2143_v63  ;;  %v6970_v32 = vsel %vm799_vm0, %v6664_v24, 0  ;;  %v6993_v40 = vld [vmem:[%s6267_s28 + $0x58] sm:$0xf] }
  0x86   : > { %5843 = vmatprep.mubr.msk.bf16.mxu1 %vm750_vm3, %v9000_v53  ;;  %v2241_v60 = vshrl.u32 %v5287_v8, 16  ;;  %v2244_v57 = vshll.u32 %v5287_v8, 16  ;;  %v9001_v6 = vcombine.low %v6779_v25, %v6789_v54  ;;  %v6976_v22 = vcombine.low %v2157_v52, %v2167_v58  ;;  %v6998_v8 = vld [vmem:[%s6267_s28 + $0x50] sm:$0x1] }
  0x87   : > { %v2181_v28 = vsel %vm6311_vm4, %v2176_v23, %v6917_v33  ;;  %v2191_v56 = vsel %vm6311_vm4, %v2186_v30, %v2190_v34  ;;  %v2250_v24 = vshll.u32 %v6950_v1, 16  ;;  %v9002_v25 = vcombine.low %v6793_v39, %v6803_v27  ;;  %v5293_v34 = vld [vmem:[%s6267_s28 + $0x60] sm:$0xf] }
  0x88   : > { %v2200_v54 = vrot.slane %v2199_v20, 4  ;;  %v2214_v13 = vrot.slane %v2212_v62, 5  ;;  %v2219_v11 = vrot.slane %v2217_v12, 4  ;;  %v2222_v3 = vrot.slane %v2220_v17, 5 }
  0x89   : > { %v2210_v33 = vrot.slane %v2209_v35, 4  ;;  %v6995_v63 = vrot.slane %v2226_v46, 5  ;;  %v2232_v52 = vrot.slane %v2230_v16, 4  ;;  %v2254_v53 = vshrl.u32 %v6950_v1, 16  ;;  %v7015_v35 = vld [vmem:[%s6267_s28 + $0x5c] sm:$0x1] }
  0x8a   : > { %5878 = vmatmul.mubr.msk.bf16.gmra.mxu0 %vm750_vm3, %v9001_v6  ;;  %v9003_v39 = vcombine.low %v6416_v36, %v6423_v43  ;;  %v2243_v27 = vrot.slane %v2241_v60, 4  ;;  %v2246_v58 = vrot.slane %v2244_v57, 5  ;;  %v2265_v23 = vshrl.u32 %v5290_v51, 16 }
  0x8b   : > { %5881 = vmatprep.mubr.msk.bf16.mxu0 %vm750_vm3, %v9002_v25  ;;  %v2268_v30 = vshll.u32 %v5290_v51, 16  ;;  %v9004_v20 = vcombine.low %v8987_v2, %v8986_v10  ;;  %v7010_v62 = vcombine.low %v2181_v28, %v2191_v56  ;;  %v7012_v12 = vrot.slane %v2250_v24, 5  ;;  %v7028_v28 = vld [vmem:[%s6267_s28 + $0x64] sm:$0xf] }
  0x8c   : > { %v2256_v17 = vrot.slane %v2254_v53, 4  ;;  %v2274_v36 = vshll.u32 %v6993_v40, 16  ;;  %v2236_v43 = vshll.u32 %v6984_v50, 16  ;;  %v2267_v46 = vrot.slane %v2265_v23, 4 }
  0x8d   : > { %5844 = vmatmul.mubr.msk.bf16.gmra.mxu1 %vm750_vm3, %v9003_v39  ;;  %v2270_v16 = vrot.slane %v2268_v30, 5  ;;  %v2278_v60 = vshrl.u32 %v6993_v40, 16  ;;  %v2205_v10 = vsel %vm6311_vm4, %v2200_v54, %v6929_v45  ;;  %v2215_v2 = vsel %vm6311_vm4, %v2210_v33, %v2214_v13  ;;  %v7050_v30 = vld [vmem:[%s6267_s28 + $0x68] sm:$0x1] }
  0x8e   : > { %5847 = vmatprep.mubr.msk.bf16.mxu1 %vm750_vm3, %v9004_v20  ;;  %v2223_v57 = vor.u32 %v2222_v3, %v2219_v11  ;;  %v7025_v6 = vrot.slane %v2274_v36, 5  ;;  %v2233_v56 = vor.u32 %v2232_v52, %v6995_v63  ;;  %v2247_v24 = vor.u32 %v2246_v58, %v2243_v27  ;;  %v5296_v3 = vld [vmem:[%s6267_s28 + $0x6c] sm:$0xf]  ;;  %v7047_v27 = vld [vmem:[%s6267_s28 + $0x70] sm:$0xf] }
  0x8f   : > { %v2260_v51 = vshll.u32 %v6998_v8, 16  ;;  %v2280_v25 = vrot.slane %v2278_v60, 4  ;;  %v9005_v53 = vcombine.low %v6813_v19, %v6833_v9  ;;  %v2257_v45 = vor.u32 %v2256_v17, %v7012_v12 }
  0x90   : > { %v2271_v54 = vor.u32 %v2270_v16, %v2267_v46  ;;  %v2289_v13 = vshrl.u32 %v5293_v34, 16  ;;  %v2292_v11 = vshll.u32 %v5293_v34, 16  ;;  %v9006_v33 = vcombine.low %v6825_v59, %v6849_v7  ;;  %v5299_v16 = vld [vmem:[%s6267_s28 + $0x78] sm:$0xf] }
  0x91   : > { %v2281_v52 = vor.u32 %v2280_v25, %v7025_v6  ;;  %v2284_v39 = vshll.u32 %v7015_v35, 16  ;;  %v2298_v19 = vshll.u32 %v7028_v28, 16  ;;  %v2302_v9 = vshrl.u32 %v7028_v28, 16 }
  0x92   : > { %5882 = vmatmul.mubr.msk.bf16.gmra.mxu0 %vm750_vm3, %v9005_v53  ;;  %v2224_v58 = vrot.slane %v2223_v57, 4  ;;  %v2238_v23 = vrot.slane %v2236_v43, 5  ;;  %v2291_v34 = vrot.slane %v2289_v13, 4  ;;  %v2294_v20 = vrot.slane %v2292_v11, 5 }
  0x93   : > { %5885 = vmatprep.mubr.msk.bf16.mxu0 %vm750_vm3, %v9006_v33  ;;  %v9007_v59 = vcombine.low %v8990_v26, %v8989_v38  ;;  %v7056_v7 = vcombine.low %v2205_v10, %v2215_v2  ;;  %v2234_v17 = vrot.slane %v2233_v56, 4  ;;  %v2248_v36 = vrot.slane %v2247_v24, 4  ;;  %v7066_v2 = vld [vmem:[%s6267_s28 + $0x7c] sm:$0xf] }
  0x94   : > { %v7058_v46 = vrot.slane %v2298_v19, 5  ;;  %v9008_v43 = vcombine.low %v8993_v42, %v8992_v48  ;;  %v2258_v60 = vrot.slane %v2257_v45, 4  ;;  %v2262_v57 = vrot.slane %v2260_v51, 5  ;;  %9009 = vst [vmem:[#allocation3_spill] sm:$0xff] %v7066_v2  ;;  %v5302_v19 = vld [vmem:[%s6267_s28 + $0x84] sm:$0xf] }
  0x95   : > { %5848 = vmatmul.mubr.msk.bf16.gmra.mxu1 %vm750_vm3, %v9007_v59  ;;  %v2272_v25 = vrot.slane %v2271_v54, 4  ;;  %v2304_v38 = vrot.slane %v2302_v9, 4  ;;  %v2282_v26 = vrot.slane %v2281_v52, 4  ;;  %v2286_v53 = vrot.slane %v2284_v39, 5 }
  0x96   : > { %5851 = vmatprep.mubr.msk.bf16.mxu1 %vm750_vm3, %v9008_v43  ;;  %v2295_v13 = vor.u32 %v2294_v20, %v2291_v34  ;;  %v2313_v10 = vshrl.u32 %v5296_v3, 16  ;;  %v2229_v56 = vsel %vm6311_vm4, %v2224_v58, %v6995_v63  ;;  %v2316_v24 = vshll.u32 %v5296_v3, 16  ;;  %v6146_v63 = vld [vmem:[%s6267_s28 + $0xc] sm:$0xff]   ;;  %v7100_v34 = vld [vmem:[%s6267_s28 + $0x88] sm:$0xf] }
  0x97   : > { %v2322_v48 = vshll.u32 %v7047_v27, 16  ;;  %v2326_v42 = vshrl.u32 %v7047_v27, 16  ;;  %v2239_v51 = vsel %vm6311_vm4, %v2234_v17, %v2238_v23  ;;  %v2253_v45 = vsel %vm6311_vm4, %v2248_v36, %v7012_v12  ;;  %9010 = vst [vmem:[#allocation5_spill] sm:$0xff] %v7100_v34  ;;  %v7109_v36 = vld [vmem:[%s6267_s28 + $0x74] sm:$0x1] }
  0x98   : > { %v2305_v54 = vor.u32 %v2304_v38, %v7058_v46  ;;  %v2308_v11 = vshll.u32 %v7050_v30, 16  ;;  %v2263_v3 = vsel %vm6311_vm4, %v2258_v60, %v2262_v57  ;;  %v2277_v33 = vsel %vm6311_vm4, %v2272_v25, %v7025_v6  ;;  %9012 = vst [vmem:[#allocation4_spill] sm:$0xff] %v7109_v36  ;;  %v7119_v38 = vld [vmem:[%s6267_s28 + $0x80] sm:$0x1] }
  0x99   : > { %v2337_v52 = vshrl.u32 %v5299_v16, 16  ;;  %v2340_v12 = vshll.u32 %v5299_v16, 16  ;;  %v2287_v18 = vsel %vm6311_vm4, %v2282_v26, %v2286_v53  ;;  %v2296_v4 = vrot.slane %v2295_v13, 4  ;;  %9013 = vst [vmem:[#allocation6_spill] sm:$0xff] %v7119_v38  ;;  %v7122_v26 = vld [vmem:[%s6267_s28 + $0x8c] sm:$0x1] }
  0x9a   : > { %5886 = vmatmul.mubr.msk.bf16.gmra.mxu0 %vm750_vm3, %v5190_v55  ;;  %v2315_v55 = vrot.slane %v2313_v10, 4  ;;  %v2346_v39 = vshll.u32 %v7066_v2, 16  ;;  %v2318_v9 = vrot.slane %v2316_v24, 5  ;;  %v7096_v58 = vrot.slane %v2322_v48, 5  ;;  %9014 = vst [vmem:[#allocation8_spill] sm:$0xff] %v7122_v26  ;;  %v6147_v10 = vld [vmem:[%s6267_s28 + $0x18] sm:$0xff]  }
  0x9b   : > { %5925 = vmatprep.mubr.msk.bf16.mxu0 %vm750_vm3, %v6966_v15  ;;  %v2328_v23 = vrot.slane %v2326_v42, 4  ;;  %v2350_v6 = vshrl.u32 %v7066_v2, 16  ;;  %v9011_v15 = vcombine.low %v8995_v29, %v6576_v37  ;;  %v7106_v20 = vcombine.low %v2229_v56, %v2239_v51  ;;  %v5305_v51 = vld [vmem:[%s6267_s28 + $0x90] sm:$0xf] }
  0x9c   : > { %v2306_v59 = vrot.slane %v2305_v54, 4  ;;  %v2310_v17 = vrot.slane %v2308_v11, 5  ;;  %v2339_v16 = vrot.slane %v2337_v52, 4  ;;  %v2342_v43 = vrot.slane %v2340_v12, 5 }
  0x9d   : > { %5852 = vmatmul.mubr.msk.bf16.gmra.mxu1 %vm750_vm3, %v9011_v15  ;;  %v7112_v60 = vrot.slane %v2346_v39, 5  ;;  %v2352_v57 = vrot.slane %v2350_v6, 4  ;;  %v2361_v25 = vshrl.u32 %v5302_v19, 16  ;;  %v7114_v37 = vcombine.low %v2253_v45, %v2263_v3  ;;  %v7133_v45 = vld [vmem:[%s6267_s28 + $0x94] sm:$0xf] }
  0x9e   : > { %5891 = vmatprep.mubr.msk.bf16.mxu1 %vm750_vm3, %v6146_v63  ;;  %v7116_v29 = vcombine.low %v2277_v33, %v2287_v18  ;;  %v2364_v53 = vshll.u32 %v5302_v19, 16  ;;  %v2370_v13 = vshll.u32 %v7100_v34, 16  ;;  %v2301_v56 = vsel %vm6311_vm4, %v2296_v4, %v7058_v46  ;;  %9015 = vst [vmem:[#allocation7_spill] sm:$0xff] %v7133_v45  ;;  %v7141_v33 = vld [vmem:[%s8928_s1 + $0x10] sm:$0x3]  ;;  %v6148_v46 = vld [vmem:[%s6267_s28 + $0x24] sm:$0xff]  }
  0x9f   : > { %v2319_v24 = vor.u32 %v2318_v9, %v2315_v55  ;;  %v2329_v48 = vor.u32 %v2328_v23, %v7096_v58  ;;  %v2332_v42 = vshll.u32 %v7109_v36, 16  ;;  %v2363_v54 = vrot.slane %v2361_v25, 4  ;;  %9016 = vst [vmem:[#allocation9_spill] sm:$0xff] %v7141_v33 }
  0xa0   : > { %v2366_v11 = vrot.slane %v2364_v53, 5  ;;  %v7135_v63 = vrot.slane %v2370_v13, 5  ;;  %v2374_v3 = vshrl.u32 %v7100_v34, 16  ;;  %v2311_v52 = vsel %vm6311_vm4, %v2306_v59, %v2310_v17 }
  0xa1   : > { %v2343_v12 = vor.u32 %v2342_v43, %v2339_v16  ;;  %v2353_v18 = vor.u32 %v2352_v57, %v7112_v60  ;;  %v2356_v4 = vshll.u32 %v7119_v38, 16  ;;  %v2385_v19 = vshrl.u32 %v5305_v51, 16  ;;  %v7175_v57 = vld [vmem:[%s6267_s28 + $0xa0] sm:$0xf] }
  0xa2   : > { %5926 = vmatmul.mubr.msk.bf16.vlgmr.msra.gmra.mxu0 %vm750_vm3, %v6976_v22  ;;  %v2367_v55 = vor.u32 %v2366_v11, %v2363_v54  ;;  %v2376_v39 = vrot.slane %v2374_v3, 4  ;;  %v2388_v9 = vshll.u32 %v5305_v51, 16  ;;  %v5308_v22 = vld [vmem:[%s6267_s28 + $0x9c] sm:$0xf]  ;;  %v7154_v23 = vrot.slane %v2319_v24, 4  ;;  %9018 = vst [vmem:[#allocation10_spill] sm:$0xff] %v7175_v57 }
  0xa3   : > { %5992 = vmatpush3.bf16.msra.mxu0 %v6970_v32  ;;  %5929 = vmatprep.mubr.msk.bf16.mxu0 %vm750_vm3, %v7010_v62  ;;  %v7156_v6 = vrot.slane %v2332_v42, 5  ;;  %v2380_v15 = vshll.u32 %v7122_v26, 16  ;;  %v2394_v59 = vshll.u32 %v7133_v45, 16  ;;  %v7163_v32 = vld [vmem:[%s8928_s1 + $0xe] sm:$0x3]  ;;  %v7168_v62 = vcombine.low %v2301_v56, %v2311_v52 }
  0xa4   : > { %9017 = vst [vmem:[#allocation11_spill] sm:$0xff] %v7163_v32  ;;  %6104 = vmatprep.subr.msk.bf16.mxu0 %vm799_vm0, %v7141_v33  ;;  %v7170_v17 = vrot.slane %v2329_v48, 4  ;;  %v2377_v16 = vor.u32 %v2376_v39, %v7135_v63  ;;  %v2398_v43 = vshrl.u32 %v7133_v45, 16  ;;  %v7179_v25 = vrot.slane %v2343_v12, 4  ;;  %v7188_v56 = vld [vmem:[%s6267_s28 + $0x98] sm:$0x1] }
  0xa5   : > { %5892 = vmatmul.mubr.msk.bf16.vlgmr.msra.gmra.mxu1 %vm750_vm3, %v6147_v10  ;;  %v7181_v53 = vrot.slane %v2353_v18, 4  ;;  %v7183_v13 = vrot.slane %v2356_v4, 5  ;;  %v7185_v10 = vrot.slane %v2367_v55, 4  ;;  %9019 = vst [vmem:[#allocation12_spill] sm:$0xff] %v7188_v56  ;;  %v2387_v24 = vrot.slane %v2385_v19, 4  ;;  %v6150_v19 = vld [vmem:[%s6267_s28 + $0x3c] sm:$0xff]  }
  0xa6   : > { %5958 = vmatpush3.bf16.msra.mxu1 %v6961_v14  ;;  %5895 = vmatprep.mubr.msk.bf16.mxu1 %vm750_vm3, %v6148_v46  ;;  %v2390_v48 = vrot.slane %v2388_v9, 5  ;;  %v2409_v42 = vshrl.u32 %v5308_v22, 16  ;;  %v2412_v51 = vshll.u32 %v5308_v22, 16  ;;  %v6149_v14 = vld [vmem:[%s6267_s28 + $0x30] sm:$0xff]   ;;  %v7197_v11 = vrot.slane %v2380_v15, 5 }
  0xa7   : > { %6103 = vmatprep.subr.msk.bf16.mxu1 %vm799_vm0, %v7163_v32  ;;  %v7199_v3 = vrot.slane %v2394_v59, 5  ;;  %v2418_v46 = vshll.u32 %v7175_v57, 16  ;;  %v5311_v52 = vld [vmem:[%s6267_s28 + $0xa8] sm:$0xf]  ;;  %v7203_v12 = vrot.slane %v2377_v16, 4  ;;  %v2400_v18 = vrot.slane %v2398_v43, 4 }
  0xa8   : > { %v2404_v4 = vshll.u32 %v7188_v56, 16  ;;  %v2422_v55 = vshrl.u32 %v7175_v57, 16  ;;  %v7208_v39 = vld [vmem:[%s6267_s28 + $0xac] sm:$0xf]  ;;  %v2391_v59 = vor.u32 %v2390_v48, %v2387_v24  ;;  %v7232_v16 = vld [vmem:[%s6267_s28 + $0xa4] sm:$0x1] }
  0xa9   : > { %9020 = vst [vmem:[#allocation13_spill] sm:$0xff] %v7208_v39  ;;  %9021 = vst [vmem:[#allocation2_spill] sm:$0xff] %v7232_v16  ;;  %v2411_v43 = vrot.slane %v2409_v42, 4  ;;  %v2414_v22 = vrot.slane %v2412_v51, 5  ;;  %v2433_v54 = vshrl.u32 %v5311_v52, 16  ;;  %v7234_v9 = vrot.slane %v2418_v46, 5 }
  0xaa   : > { %5930 = vmatmul.mubr.msk.bf16.gmra.mxu0 %vm750_vm3, %v7056_v7  ;;  %v2424_v32 = vrot.slane %v2422_v55, 4  ;;  %v2436_v15 = vshll.u32 %v5311_v52, 16  ;;  %v2442_v33 = vshll.u32 %v7208_v39, 16  ;;  %v5314_v57 = vld [vmem:[%s6267_s28 + $0xb4] sm:$0xf]  ;;  %v2401_v24 = vor.u32 %v2400_v18, %v7199_v3 }
  0xab   : > { %5933 = vmatprep.mubr.msk.bf16.mxu0 %vm750_vm3, %v7106_v20  ;;  %v2383_v20 = vsel %vm6311_vm4, %v7203_v12, %v7197_v11  ;;  %v7244_v48 = vrot.slane %v2404_v4, 5  ;;  %v7247_v42 = vld [vmem:[%s6267_s28 + $0xb0] sm:$0x1]  ;;  %v2435_v51 = vrot.slane %v2433_v54, 4  ;;  %v7250_v46 = vld [vmem:[%s6267_s28 + $0xb8] sm:$0xf]  ;;  %v2415_v18 = vor.u32 %v2414_v22, %v2411_v43 }
  0xac   : > { %9022 = vst [vmem:[#allocation14_spill] sm:$0xff] %v7247_v42  ;;  %9023 = vst [vmem:[#allocation15_spill] sm:$0xff] %v7250_v46  ;;  %v2438_v52 = vrot.slane %v2436_v15, 5  ;;  %v7254_v55 = vrot.slane %v2442_v33, 5  ;;  %v2446_v11 = vshrl.u32 %v7208_v39, 16  ;;  %v7257_v12 = vrot.slane %v2391_v59, 4 }
  0xad   : > { %5896 = vmatmul.mubr.msk.bf16.gmra.mxu1 %vm750_vm3, %v6149_v14  ;;  %v2428_v14 = vshll.u32 %v7232_v16, 16  ;;  %v7260_v4 = vld [vmem:[%s6267_s28 + $0xbc] sm:$0x1]  ;;  %v2457_v54 = vshrl.u32 %v5314_v57, 16  ;;  %v2460_v7 = vshll.u32 %v5314_v57, 16  ;;  %v2425_v56 = vor.u32 %v2424_v32, %v7234_v9  ;;  %v6151_v16 = vld [vmem:[%s6267_s28 + $0x48] sm:$0xff]  }
  0xae   : > { %5899 = vmatprep.mubr.msk.bf16.mxu1 %vm750_vm3, %v6150_v19  ;;  %v2448_v45 = vrot.slane %v2446_v11, 4  ;;  %v2452_v19 = vshll.u32 %v7247_v42, 16  ;;  %v2466_v15 = vshll.u32 %v7250_v46, 16  ;;  %v5317_v33 = vld [vmem:[%s6267_s28 + $0xc0] sm:$0xf]  ;;  %v2439_v26 = vor.u32 %v2438_v52, %v2435_v51  ;;  %v6152_v57 = vld [vmem:[%s6267_s28 + $0x54] sm:$0xff]  }
  0xaf   : > { %v2459_v39 = vrot.slane %v2457_v54, 4  ;;  %v2462_v34 = vrot.slane %v2460_v7, 5  ;;  %v2470_v59 = vshrl.u32 %v7250_v46, 16  ;;  %v7269_v22 = vld [vmem:[%s6267_s28 + $0xc4] sm:$0xf]  ;;  %v2402_v43 = vrot.slane %v2401_v24, 4 }
  0xb0   : > { %v2430_v32 = vrot.slane %v2428_v14, 5  ;;  %v2449_v11 = vor.u32 %v2448_v45, %v7254_v55  ;;  %v2468_v42 = vrot.slane %v2466_v15, 5  ;;  %v2476_v7 = vshll.u32 %v7260_v4, 16  ;;  %v7281_v45 = vld [vmem:[%s6267_s28 + $0xc8] sm:$0x1] }
  0xb1   : > { %v2463_v51 = vor.u32 %v2462_v34, %v2459_v39  ;;  %v2472_v52 = vrot.slane %v2470_v59, 4  ;;  %v2481_v54 = vshrl.u32 %v5317_v33, 16  ;;  %v2416_v46 = vrot.slane %v2415_v18, 4 }
  0xb2   : > { %5934 = vmatmul.mubr.msk.bf16.gmra.mxu0 %vm750_vm3, %v7114_v37  ;;  %v2426_v38 = vrot.slane %v2425_v56, 4  ;;  %v2484_v2 = vshll.u32 %v5317_v33, 16  ;;  %v2490_v37 = vshll.u32 %v7269_v22, 16  ;;  %v2440_v24 = vrot.slane %v2439_v26, 4 }
  0xb3   : > { %5937 = vmatprep.mubr.msk.bf16.mxu0 %vm750_vm3, %v7116_v29  ;;  %v2454_v14 = vrot.slane %v2452_v19, 5  ;;  %v2473_v36 = vor.u32 %v2472_v52, %v2468_v42  ;;  %v2483_v15 = vrot.slane %v2481_v54, 4  ;;  %v2450_v34 = vrot.slane %v2449_v11, 4 }
  0xb4   : > { %v2486_v29 = vrot.slane %v2484_v2, 5  ;;  %v7284_v39 = vrot.slane %v2490_v37, 5  ;;  %v2494_v56 = vshrl.u32 %v7269_v22, 16  ;;  %v9024_v26 = vsel %vm6311_vm4, %v7170_v17, %v7156_v6 }
  0xb5   : > { %5900 = vmatmul.mubr.msk.bf16.gmra.mxu1 %vm750_vm3, %v6151_v16  ;;  %v9025_v16 = vsel %vm6311_vm4, %v7154_v23, %v7096_v58  ;;  %v2464_v19 = vrot.slane %v2463_v51, 4  ;;  %v2474_v33 = vrot.slane %v2473_v36, 4  ;;  %v2478_v2 = vrot.slane %v2476_v7, 5  ;;  %v6153_v23 = vld [vmem:[%s6267_s28 + $0x60] sm:$0xff]  }
  0xb6   : > { %5903 = vmatprep.mubr.msk.bf16.mxu1 %vm750_vm3, %v6152_v57  ;;  %v5329_v18 = vcombine.low %v9025_v16, %v9024_v26  ;;  %v9026_v59 = vsel %vm6311_vm4, %v7181_v53, %v7183_v13  ;;  %v9027_v6 = vsel %vm6311_vm4, %v7179_v25, %v7112_v60  ;;  %v2487_v57 = vor.u32 %v2486_v29, %v2483_v15  ;;  %v5355_v13 = vld [vmem:[%s6267_s28 + $0x24] sm:$0xe]  ;;  %v5358_v26 = vld [vmem:[%s6267_s28 + $0x48] sm:$0xe] }
  0xb7   : > { %v5330_v17 = vcombine.low %v9027_v6, %v9026_v59  ;;  %v2496_v11 = vrot.slane %v2494_v56, 4  ;;  %v2500_v58 = vshll.u32 %v7281_v45, 16  ;;  %v9028_v36 = vsel %vm6311_vm4, %v7185_v10, %v7135_v63  ;;  %v6154_v63 = vld [vmem:[%s6267_s28 + $0x6c] sm:$0xff]   ;;  %v5359_v6 = vld [vmem:[%s6267_s28 + $0x54] sm:$0xe] }
  0xb8   : > { %v5331_v51 = vcombine.low %v9028_v36, %v2383_v20  ;;  %v2397_v53 = vsel %vm6311_vm4, %v7257_v12, %v7199_v3  ;;  %v2407_v60 = vsel %vm6311_vm4, %v2402_v43, %v7244_v48  ;;  %v2421_v25 = vsel %vm6311_vm4, %v2416_v46, %v7234_v9  ;;  %v7337_v12 = vld [vmem:[%s6267_s28 + $0xc] sm:$0xe] }
  0xb9   : > { %v2431_v10 = vsel %vm6311_vm4, %v2426_v38, %v2430_v32  ;;  %v2445_v3 = vsel %vm6311_vm4, %v2440_v24, %v7254_v55  ;;  %v2455_v20 = vsel %vm6311_vm4, %v2450_v34, %v2454_v14  ;;  %v2497_v48 = vor.u32 %v2496_v11, %v7284_v39  ;;  %v5356_v55 = vld [vmem:[%s6267_s28 + $0x30] sm:$0xe]  ;;  %v5357_v14 = vld [vmem:[%s6267_s28 + $0x3c] sm:$0xe] }
  0xba   : > { %5938 = vmatmul.mubr.msk.bf16.gmra.mxu0 %vm750_vm3, %v7168_v62  ;;  %v2469_v62 = vsel %vm6311_vm4, %v2464_v19, %v2468_v42  ;;  %v2479_v38 = vsel %vm6311_vm4, %v2474_v33, %v2478_v2  ;;  %v7344_v9 = vrot.slane %v2487_v57, 4  ;;  %v2864_v46 = vrot.slane %v6828_v49, 5  ;;  %v6155_v57 = vld [vmem:[%s6267_s28 + $0x78] sm:$0xff]  }
  0xbb   : > { %5941 = vmatprep.mubr.msk.bf16.mxu0 %vm750_vm3, %v5329_v18  ;;  %v7348_v43 = vcombine.low %v2397_v53, %v2407_v60  ;;  %v7350_v32 = vrot.slane %v2497_v48, 4  ;;  %v7352_v52 = vrot.slane %v2500_v58, 5  ;;  %v5371_v7 = vrot.slane %v5355_v13, 9  ;;  %v6156_v53 = vld [vmem:[%s6267_s28 + $0x84] sm:$0xff]   ;;  %v5360_v13 = vld [vmem:[%s6267_s28 + $0x60] sm:$0xe] }
  0xbc   : > { %v7355_v54 = vcombine.low %v2421_v25, %v2431_v10  ;;  %v7357_v42 = vcombine.low %v2445_v3, %v2455_v20  ;;  %v5369_v37 = vrot.slane %v7337_v12, 9  ;;  %v2878_v24 = vrot.slane %v6877_v44, 5  ;;  %v6162_v49 = vld [vmem:[%s6267_s28 + $0x18] sm:$0xff]  }
  0xbd   : > { %5904 = vmatmul.mubr.msk.bf16.gmra.mxu1 %vm750_vm3, %v6153_v23  ;;  %v7363_v15 = vcombine.low %v2469_v62, %v2479_v38  ;;  %v2867_v34 = vrot.slane %v6864_v47, 5  ;;  %v2881_v29 = vrot.slane %v6892_v21, 5  ;;  %v5372_v56 = vrot.slane %v5356_v55, 9  ;;  %v5362_v55 = vld [vmem:[%s6267_s28 + $0x78] sm:$0xe] }
  0xbe   : > { %5907 = vmatprep.mubr.msk.bf16.mxu1 %vm750_vm3, %v6154_v63  ;;  %v2493_v16 = vsel %vm6311_vm4, %v7344_v9, %v7284_v39  ;;  %v7374_v44 = vrot.slane %v2864_v46, 4  ;;  %v7378_v18 = vsel %vm6597_vm7, %v5371_v7, %v2878_v24  ;;  %v2880_v19 = vrot.slane %v2878_v24, 4 }
  0xbf   : > { %v2503_v21 = vsel %vm6311_vm4, %v7350_v32, %v7352_v52  ;;  %v2885_v33 = vrot.slane %v6915_v5, 5  ;;  %v2888_v2 = vrot.slane %v6923_v41, 5  ;;  %v5373_v59 = vrot.slane %v5357_v14, 9  ;;  %v6161_v52 = vld [vmem:[%s6267_s28 + $0xc0] sm:$0xff]  }
  0xc0   : > { %v7390_v11 = vsel %vm6597_vm7, %v2880_v19, %v2881_v29  ;;  %v2892_v58 = vrot.slane %v6932_v61, 5  ;;  %v2895_v23 = vrot.slane %v6984_v50, 5  ;;  %v5374_v36 = vrot.slane %v5358_v26, 9  ;;  %v5363_v19 = vld [vmem:[%s6267_s28 + $0x84] sm:$0xe] }
  0xc1   : > { %v5388_v5 = vcombine.low %v7378_v18, %v7390_v11  ;;  %v7400_v41 = vsel %vm6597_vm7, %v5372_v56, %v2885_v33  ;;  %v2887_v60 = vrot.slane %v2885_v33, 4  ;;  %v2899_v25 = vrot.slane %v6950_v1, 5 }
  0xc2   : > { %5942 = vmatmul.mubr.msk.bf16.gmra.mxu0 %vm750_vm3, %v5330_v17  ;;  %v7407_v61 = vsel %vm6597_vm7, %v5373_v59, %v2892_v58  ;;  %v2894_v50 = vrot.slane %v2892_v58, 4  ;;  %v2902_v17 = vrot.slane %v6998_v8, 5  ;;  %v5375_v63 = vrot.slane %v5359_v6, 9  ;;  %v9029_v59 = vld [vmem:[#allocation4_spill] sm:$0xff] }
  0xc3   : > { %5945 = vmatprep.mubr.msk.bf16.mxu0 %vm750_vm3, %v5331_v51  ;;  %v7412_v10 = vsel %vm6597_vm7, %v2887_v60, %v2888_v2  ;;  %v7416_v3 = vsel %vm6597_vm7, %v5374_v36, %v2899_v25  ;;  %v2901_v1 = vrot.slane %v2899_v25, 4  ;;  %v2906_v20 = vrot.slane %v6993_v40, 5  ;;  %v5361_v51 = vld [vmem:[%s6267_s28 + $0x6c] sm:$0xe]  ;;  %v6157_v58 = vld [vmem:[%s6267_s28 + $0x90] sm:$0xff]  }
  0xc4   : > { %v5389_v48 = vcombine.low %v7400_v41, %v7412_v10  ;;  %v7425_v8 = vsel %vm6597_vm7, %v2894_v50, %v2895_v23  ;;  %v2909_v62 = vrot.slane %v7015_v35, 5  ;;  %v5376_v38 = vrot.slane %v5360_v13, 9  ;;  %v9030_v36 = vld [vmem:[#allocation3_spill] sm:$0xff]  ;;  %v5364_v60 = vld [vmem:[%s6267_s28 + $0x90] sm:$0xe]  ;;  %v9031_v50 = vld [vmem:[#allocation6_spill] sm:$0xff] }
  0xc5   : > { %5908 = vmatmul.mubr.msk.bf16.gmra.mxu1 %vm750_vm3, %v6155_v57  ;;  %v5390_v40 = vcombine.low %v7407_v61, %v7425_v8  ;;  %v7434_v7 = vsel %vm6597_vm7, %v2901_v1, %v2902_v17  ;;  %v7438_v24 = vsel %vm6597_vm7, %v5375_v63, %v2906_v20  ;;  %v2908_v14 = vrot.slane %v2906_v20, 4 }
  0xc6   : > { %5911 = vmatprep.mubr.msk.bf16.mxu1 %vm750_vm3, %v6156_v53  ;;  %v5391_v35 = vcombine.low %v7416_v3, %v7434_v7  ;;  %v2913_v29 = vrot.slane %v7028_v28, 5  ;;  %v2916_v56 = vrot.slane %v7050_v30, 5  ;;  %v5377_v26 = vrot.slane %v5361_v51, 9  ;;  %v9032_v51 = vld [vmem:[#allocation5_spill] sm:$0xff]  ;;  %v5495_v3 = vld [vmem:[%s6267_s28 + $0x48] sm:$0xf] }
  0xc7   : > { %v7447_v33 = vsel %vm6597_vm7, %v2908_v14, %v2909_v62  ;;  %v2920_v2 = vrot.slane %v7047_v27, 5  ;;  %v2923_v6 = vrot.slane %v9029_v59, 5  ;;  %v5378_v57 = vrot.slane %v5362_v55, 9  ;;  %v6158_v27 = vld [vmem:[%s6267_s28 + $0x9c] sm:$0xff]   ;;  %v9040_v55 = vld [vmem:[#allocation15_spill] sm:$0xff] }
  0xc8   : > { %v5392_v23 = vcombine.low %v7438_v24, %v7447_v33  ;;  %v7456_v28 = vsel %vm6597_vm7, %v5376_v38, %v2913_v29  ;;  %v2915_v30 = vrot.slane %v2913_v29, 4  ;;  %v2927_v53 = vrot.slane %v9030_v36, 5  ;;  %v5365_v38 = vld [vmem:[%s6267_s28 + $0x9c] sm:$0xe]  ;;  %v9035_v36 = vld [vmem:[#allocation12_spill] sm:$0xff] }
  0xc9   : > { %v7465_v25 = vsel %vm6597_vm7, %v5377_v26, %v2920_v2  ;;  %v2922_v13 = vrot.slane %v2920_v2, 4  ;;  %v2930_v17 = vrot.slane %v9031_v50, 5  ;;  %v5379_v63 = vrot.slane %v5363_v19, 9  ;;  %v5366_v26 = vld [vmem:[%s6267_s28 + $0xa8] sm:$0xe] }
  0xca   : > { %5946 = vmatmul.mubr.msk.bf16.gmra.mxu0 %vm750_vm3, %v7348_v43  ;;  %v7472_v1 = vsel %vm6597_vm7, %v2915_v30, %v2916_v56  ;;  %v7476_v43 = vsel %vm6597_vm7, %v5378_v57, %v2927_v53  ;;  %v2929_v20 = vrot.slane %v2927_v53, 4  ;;  %v2934_v62 = vrot.slane %v9032_v51, 5  ;;  %v5368_v57 = vld [vmem:[%s6267_s28 + $0xc0] sm:$0xe]  ;;  %v6159_v19 = vld [vmem:[%s6267_s28 + $0xa8] sm:$0xff]  }
  0xcb   : > { %5949 = vmatprep.mubr.msk.bf16.mxu0 %vm750_vm3, %v7355_v54  ;;  %v7484_v14 = vsel %vm6597_vm7, %v2922_v13, %v2923_v6  ;;  %v9033_v54 = vld [vmem:[#allocation8_spill] sm:$0xff]  ;;  %v5380_v56 = vrot.slane %v5364_v60, 9  ;;  %v2944_v53 = vrot.slane %v9035_v36, 5  ;;  %v5381_v60 = vrot.slane %v5365_v38, 9  ;;  %v9038_v38 = vld [vmem:[#allocation13_spill] sm:$0xff] }
  0xcc   : > { %v2937_v29 = vrot.slane %v9033_v54, 5  ;;  %v7493_v2 = vsel %vm6597_vm7, %v2929_v20, %v2930_v17  ;;  %v7497_v59 = vsel %vm6597_vm7, %v5379_v63, %v2934_v62  ;;  %v2936_v6 = vrot.slane %v2934_v62, 4  ;;  %v5367_v13 = vld [vmem:[%s6267_s28 + $0xb4] sm:$0xe]  ;;  %v9036_v17 = vld [vmem:[#allocation10_spill] sm:$0xff] }
  0xcd   : > { %5912 = vmatmul.mubr.msk.bf16.gmra.mxu1 %vm750_vm3, %v6157_v58  ;;  %v9034_v58 = vld [vmem:[#allocation7_spill] sm:$0xff]  ;;  %v2948_v63 = vrot.slane %v9036_v17, 5  ;;  %v9037_v20 = vld [vmem:[#allocation2_spill] sm:$0xff]  ;;  %v5382_v62 = vrot.slane %v5366_v26, 9  ;;  %v2955_v36 = vrot.slane %v9038_v38, 5  ;;  %v5383_v26 = vrot.slane %v5367_v13, 9 }
  0xce   : > { %5915 = vmatprep.mubr.msk.bf16.mxu1 %vm750_vm3, %v6158_v27  ;;  %v2941_v30 = vrot.slane %v9034_v58, 5  ;;  %v7507_v50 = vsel %vm6597_vm7, %v2936_v6, %v2937_v29  ;;  %v2951_v51 = vrot.slane %v9037_v20, 5  ;;  %v9039_v17 = vld [vmem:[#allocation14_spill] sm:$0xff]  ;;  %v6160_v27 = vld [vmem:[%s6267_s28 + $0xb4] sm:$0xff]   ;;  %v2868_v39 = vsel %vm6597_vm7, %v7374_v44, %v2867_v34  ;;  %v7724_v7 = vld [vmem:[%s6267_s28 + $0x4c] sm:$0xf] }
  0xcf   : > { %v7522_v29 = vsel %vm6597_vm7, %v5381_v60, %v2948_v63  ;;  %v2950_v6 = vrot.slane %v2948_v63, 4  ;;  %v2958_v20 = vrot.slane %v9039_v17, 5  ;;  %v2957_v38 = vrot.slane %v2955_v36, 4  ;;  %v6179_v44 = vld [vmem:[%s6267_s28 + $0x20] sm:$0x1] }
  0xd0   : > { %v7515_v54 = vsel %vm6597_vm7, %v5380_v56, %v2941_v30  ;;  %v2943_v58 = vrot.slane %v2941_v30, 4  ;;  %v7534_v30 = vsel %vm6597_vm7, %v5382_v62, %v2955_v36  ;;  %v2962_v60 = vrot.slane %v9040_v55, 5 }
  0xd1   : > { %v5384_v63 = vrot.slane %v5368_v57, 9  ;;  %v7550_v55 = vsel %vm6597_vm7, %v2957_v38, %v2958_v20  ;;  %v2969_v57 = vrot.slane %v7269_v22, 5  ;;  %v2865_v22 = vsel %vm6597_vm7, %v5369_v37, %v2864_v46  ;;  %v6164_v38 = vld [vmem:[%s6267_s28 + $0x30] sm:$0xff]  }
  0xd2   : > { %5950 = vmatmul.mubr.msk.bf16.gmra.mxu0 %vm750_vm3, %v7357_v42  ;;  %v7530_v56 = vsel %vm6597_vm7, %v2943_v58, %v2944_v53  ;;  %v7543_v42 = vsel %vm6597_vm7, %v2950_v6, %v2951_v51  ;;  %v2965_v53 = vrot.slane %v7260_v4, 5  ;;  %v2964_v58 = vrot.slane %v2962_v60, 4 }
  0xd3   : > { %5953 = vmatprep.mubr.msk.bf16.mxu0 %vm750_vm3, %v7363_v15  ;;  %v7554_v15 = vsel %vm6597_vm7, %v5383_v26, %v2962_v60  ;;  %v2972_v51 = vrot.slane %v7281_v45, 5  ;;  %v5354_v45 = vld [vmem:[%s6267_s28 + $0x18] sm:$0xe]  ;;  %v7594_v9 = vsel %vm6597_vm7, %v5384_v63, %v2969_v57  ;;  %v2971_v46 = vrot.slane %v2969_v57, 4  ;;  %v6163_v26 = vld [vmem:[%s6267_s28 + $0x24] sm:$0xff]  }
  0xd4   : > { %v7582_v32 = vsel %vm6597_vm7, %v2964_v58, %v2965_v53  ;;  %v5370_v37 = vrot.slane %v5354_v45, 9  ;;  %v5386_v34 = vcombine.low %v2865_v22, %v2868_v39  ;;  %v9041_v60 = vld [vmem:[#allocation9_spill] sm:$0xff] }
  0xd5   : > { %5916 = vmatmul.mubr.msk.bf16.gmra.mxu1 %vm750_vm3, %v6159_v19  ;;  %v5336_v19 = vcombine.low %v2493_v16, %v2503_v21  ;;  %v7599_v47 = vsel %vm6597_vm7, %v2971_v46, %v2972_v51  ;;  %v2874_v21 = vrot.slane %v6179_v44, 5  ;;  %v4628_v53 = vsel %vm799_vm0, %v9041_v60, 0  ;;  %v5483_v63 = vld [vmem:[%s6267_s28 + $0x18] sm:$0xf]  ;;  %v5484_v57 = vld [vmem:[%s6267_s28 + $0x1c] sm:$0xf] }
  0xd6   : > { %5919 = vmatprep.mubr.msk.bf16.mxu1 %vm750_vm3, %v6160_v27  ;;  %v6178_v27 = vld [vmem:[%s6267_s28 + $0x1c] sm:$0xf]  ;;  %v5486_v51 = vld [vmem:[%s6267_s28 + $0x24] sm:$0xf]  ;;  %v3676_v45 = vshrl.u32 %v5483_v63, 16  ;;  %v3685_v39 = vshll.u32 %v5484_v57, 16 }
  0xd7   : > { %v2871_v36 = vrot.slane %v6178_v27, 5  ;;  %v3679_v27 = vshll.u32 %v5483_v63, 16  ;;  %v3700_v46 = vshrl.u32 %v5486_v51, 16  ;;  %v6166_v44 = vld [vmem:[%s6267_s28 + $0x48] sm:$0xff]   ;;  %v5564_v60 = vld [vmem:[%s6267_s28 + $0x18] sm:$0xe] }
  0xd8   : > { %v7640_v63 = vld [vmem:[%s6267_s28 + $0x2c] sm:$0x1] }
  0xd9   : > { %v2873_v16 = vrot.slane %v2871_v36, 4  ;;  %v2872_v17 = vsel %vm6597_vm7, %v5370_v37, %v2871_v36  ;;  %v7624_v36 = vld [vmem:[%s6267_s28 + $0x28] sm:$0xf]  ;;  %v6165_v37 = vld [vmem:[%s6267_s28 + $0x3c] sm:$0xff]   ;;  %v3702_v18 = vrot.slane %v3700_v46, 4 }
  0xda   : > { %5954 = vmatmul.mubr.msk.bf16.gmra.mxu0 %vm750_vm3, %v5336_v19  ;;  %v9042_v19 = vld [vmem:[#allocation11_spill] sm:$0xff] }
  0xdb   : > { %5993 = vmatprep.mubr.msk.bf16.mxu0 %vm750_vm3, %v6162_v49  ;;  %v2875_v20 = vsel %vm6597_vm7, %v2873_v16, %v2874_v21  ;;  %v4158_v22 = vsel %vm799_vm0, %v9042_v19, 0  ;;  %v3689_v49 = vshrl.u32 %v5484_v57, 16  ;;  %v3713_v16 = vshrl.u32 %v7624_v36, 16  ;;  %v5485_v21 = vld [vmem:[%s6267_s28 + $0x20] sm:$0x1] }
  0xdc   : > { %v5387_v58 = vcombine.low %v2872_v17, %v2875_v20  ;;  %v3678_v17 = vrot.slane %v3676_v45, 4  ;;  %v3681_v20 = vrot.slane %v3679_v27, 5  ;;  %v5489_v19 = vld [vmem:[%s6267_s28 + $0x30] sm:$0xf]  ;;  %v3695_v45 = vshll.u32 %v5485_v21, 16 }
  0xdd   : > { %5920 = vmatmul.mubr.msk.bf16.gmra.mxu1 %vm750_vm3, %v6161_v52  ;;  %v3703_v52 = vshll.u32 %v5486_v51, 16  ;;  %v3715_v51 = vrot.slane %v3713_v16, 4  ;;  %v5580_v27 = vrot.slane %v5564_v60, 9  ;;  %v4422_v46 = vrot.slane %v5485_v21, 5  ;;  %v5565_v16 = vld [vmem:[%s6267_s28 + $0x24] sm:$0xe] }
  0xde   : > { %5959 = vmatprep.mubr.msk.bf16.mxu1 %vm750_vm3, %v5386_v34  ;;  %v3709_v34 = vshll.u32 %v7624_v36, 16  ;;  %v6167_v21 = vld [vmem:[%s6267_s28 + $0x54] sm:$0xff]   ;;  %v3727_v10 = vshll.u32 %v5489_v19, 16  ;;  %v6168_v60 = vld [vmem:[%s6267_s28 + $0x60] sm:$0xff]  }
  0xdf   : > { %v3705_v11 = vrot.slane %v3703_v52, 5  ;;  %v3719_v52 = vshll.u32 %v7640_v63, 16 }
  0xe2   : > { %5994 = vmatmul.mubr.msk.bf16.vlgmr.msra.gmra.mxu0 %vm750_vm3, %v6163_v26  ;;  %v7636_v26 = vrot.slane %v3685_v39, 5 }
  0xe3   : > { %6060 = vmatpush3.bf16.msra.mxu0 %v4628_v53  ;;  %5997 = vmatprep.mubr.msk.bf16.mxu0 %vm750_vm3, %v6164_v38  ;;  %v3691_v38 = vrot.slane %v3689_v49, 4  ;;  %v4419_v53 = vrot.slane %v5484_v57, 5  ;;  %v7650_v57 = vld [vmem:[%s6267_s28 + $0x34] sm:$0xf] }
  0xe5   : > { %5960 = vmatmul.mubr.msk.bf16.vlgmr.msra.gmra.mxu1 %vm750_vm3, %v5387_v58  ;;  %v7645_v58 = vrot.slane %v3709_v34, 5  ;;  %v3692_v39 = vor.u32 %v3691_v38, %v7636_v26  ;;  %v4421_v49 = vrot.slane %v4419_v53, 4  ;;  %v3706_v34 = vor.u32 %v3705_v11, %v3702_v18 }
  0xe6   : > { %6026 = vmatpush3.bf16.msra.mxu1 %v4158_v22  ;;  %5963 = vmatprep.mubr.msk.bf16.mxu1 %vm750_vm3, %v5388_v5  ;;  %v7643_v5 = vpop.f32.mrf.mxu0  ;;  %v3682_v22 = vor.u32 %v3681_v20, %v3678_v17  ;;  %v3724_v17 = vshrl.u32 %v5489_v19, 16  ;;  %v3737_v38 = vshrl.u32 %v7650_v57, 16  ;;  %v7675_v61 = vsel %vm6597_vm7, %v5580_v27, %v4419_v53  ;;  %v5492_v19 = vld [vmem:[%s6267_s28 + $0x3c] sm:$0xf] }
  0xe7   : > { %v3716_v41 = vor.u32 %v3715_v51, %v7645_v58  ;;  %v3693_v8 = vrot.slane %v3692_v39, 4  ;;  %v3721_v11 = vrot.slane %v3719_v52, 5  ;;  %v5581_v51 = vrot.slane %v5565_v16, 9  ;;  %v7689_v39 = vld [vmem:[%s6267_s28 + $0x38] sm:$0x1] }
  0xe8   : > { %v7667_v20 = vpop.f32.mrf.mxu0  ;;  %v3683_v18 = vrot.slane %v3682_v22, 4  ;;  %v3707_v12 = vrot.slane %v3706_v34, 4  ;;  %v4429_v22 = vrot.slane %v7640_v63, 5  ;;  %v3739_v52 = vrot.slane %v3737_v38, 4 }
  0xe9   : > { %v3717_v27 = vrot.slane %v3716_v41, 4  ;;  %v3748_v34 = vshrl.u32 %v5492_v19, 16  ;;  %v3751_v16 = vshll.u32 %v5492_v19, 16  ;;  %v7702_v41 = vld [vmem:[%s6267_s28 + $0x40] sm:$0xf] }
  0xea   : > { %5998 = vmatmul.mubr.msk.bf16.gmra.mxu0 %vm750_vm3, %v6165_v37  ;;  %v7686_v53 = vpop.f32.mrf.mxu0  ;;  %v3688_v63 = vsel %vm6311_vm4, %v3683_v18, %v7636_v26  ;;  %v3712_v26 = vsel %vm6311_vm4, %v3707_v12, %v7645_v58  ;;  %v5566_v18 = vld [vmem:[%s6267_s28 + $0x30] sm:$0xe]  ;;  %v3757_v24 = vshll.u32 %v7702_v41, 16  ;;  %v3761_v33 = vshrl.u32 %v7702_v41, 16 }
  0xeb   : > { %6001 = vmatprep.mubr.msk.bf16.mxu0 %vm750_vm3, %v6166_v44  ;;  %v7658_v37 = vpop.f32.mrf.mxu1  ;;  %v4426_v44 = vrot.slane %v7624_v36, 5  ;;  %v3697_v36 = vrot.slane %v3695_v45, 5  ;;  %v3726_v45 = vrot.slane %v3724_v17, 4  ;;  %v3722_v58 = vsel %vm6311_vm4, %v3717_v27, %v3721_v11 }
  0xec   : > { %9043 = vst [vmem:[#allocation4_spill] sm:$0xff] %v7658_v37  ;;  %v7731_v12 = vpop.f32.mrf.mxu0  ;;  %v3753_v19 = vrot.slane %v3751_v16, 5  ;;  %v3785_v11 = vshrl.u32 %v7724_v7, 16 }
  0xed   : > { %5964 = vmatmul.mubr.msk.bf16.gmra.mxu1 %vm750_vm3, %v5389_v48  ;;  %v3733_v48 = vshll.u32 %v7650_v57, 16  ;;  %v7682_v6 = vpop.f32.mrf.mxu1  ;;  %v4428_v4 = vrot.slane %v4426_v44, 4  ;;  %v3698_v17 = vsel %vm6311_vm4, %v3693_v8, %v3697_v36  ;;  %v4433_v36 = vrot.slane %v7650_v57, 5  ;;  %v6170_v8 = vld [vmem:[%s6267_s28 + $0x78] sm:$0xff]  }
  0xee   : > { %5967 = vmatprep.mubr.msk.bf16.mxu1 %vm750_vm3, %v5390_v40  ;;  %v7679_v40 = vsel %vm6597_vm7, %v4421_v49, %v4422_v46  ;;  %9044 = vst [vmem:[#allocation3_spill] sm:$0xff] %v7682_v6  ;;  %v3729_v49 = vrot.slane %v3727_v10, 5  ;;  %v7745_v27 = vcombine.low %v3688_v63, %v3698_v17  ;;  %v7747_v57 = vcombine.low %v3712_v26, %v3722_v58  ;;  %v7761_v17 = vld [vmem:[%s6267_s28 + $0x58] sm:$0xf]  ;;  %v7767_v58 = vld [vmem:[%s6267_s28 + $0x44] sm:$0x1] }
  0xef   : > { %v7691_v46 = vrot.slane %v3733_v48, 5  ;;  %v7708_v10 = vpop.f32.mrf.mxu1  ;;  %v7715_v48 = vsel %vm6597_vm7, %v5581_v51, %v4426_v44  ;;  %v7719_v38 = vsel %vm6597_vm7, %v4428_v4, %v4429_v22  ;;  %v3750_v51 = vrot.slane %v3748_v34, 4  ;;  %v5498_v34 = vld [vmem:[%s6267_s28 + $0x54] sm:$0xf] }
  0xf0   : > { %9045 = vst [vmem:[#allocation6_spill] sm:$0xff] %v7708_v10  ;;  %v3730_v44 = vor.u32 %v3729_v49, %v3726_v45  ;;  %v3775_v22 = vshll.u32 %v5495_v3, 16  ;;  %v4435_v13 = vrot.slane %v4433_v36, 4  ;;  %v4436_v63 = vrot.slane %v7689_v39, 5  ;;  %v5567_v49 = vld [vmem:[%s6267_s28 + $0x3c] sm:$0xe] }
  0xf1   : > { %v3740_v4 = vor.u32 %v3739_v52, %v7691_v46  ;;  %v7743_v45 = vpop.f32.mrf.mxu1  ;;  %v5582_v52 = vrot.slane %v5566_v18, 9  ;;  %v3754_v18 = vor.u32 %v3753_v19, %v3750_v51  ;;  %v9048_v6 = vcombine.low %v7456_v28, %v7472_v1 }
  0xf2   : > { %6002 = vmatmul.mubr.msk.bf16.gmra.mxu0 %vm750_vm3, %v6167_v21  ;;  %v3781_v21 = vshll.u32 %v7724_v7, 16  ;;  %9046 = vst [vmem:[#allocation5_spill] sm:$0xff] %v7743_v45  ;;  %v3777_v45 = vrot.slane %v3775_v22, 5  ;;  %v3796_v51 = vshrl.u32 %v5498_v34, 16  ;;  %v3799_v19 = vshll.u32 %v5498_v34, 16 }
  0xf3   : > { %6005 = vmatprep.mubr.msk.bf16.mxu0 %vm750_vm3, %v6168_v60  ;;  %v3743_v60 = vshll.u32 %v7689_v39, 16  ;;  %v7764_v26 = vrot.slane %v3740_v4, 4  ;;  %v3787_v39 = vrot.slane %v3785_v11, 4  ;;  %v7802_v22 = vsel %vm6597_vm7, %v4435_v13, %v4436_v63 }
  0xf4   : > { %v7772_v10 = vrot.slane %v3781_v21, 5  ;;  %v9050_v21 = vcombine.low %v7465_v25, %v7484_v14  ;;  %v4440_v25 = vrot.slane %v7702_v41, 5  ;;  %v6172_v14 = vld [vmem:[%s6267_s28 + $0x90] sm:$0xff]   ;;  %v5583_v1 = vrot.slane %v5567_v49, 9  ;;  %v5501_v41 = vld [vmem:[%s6267_s28 + $0x60] sm:$0xf] }
  0xf5   : > { %5968 = vmatmul.mubr.msk.bf16.gmra.mxu1 %vm750_vm3, %v5391_v35  ;;  %v6169_v35 = vld [vmem:[%s6267_s28 + $0x6c] sm:$0xff]   ;;  %v7757_v62 = vrot.slane %v3743_v60, 5  ;;  %v3798_v37 = vrot.slane %v3796_v51, 4 }
  0xf6   : > { %5971 = vmatprep.mubr.msk.bf16.mxu1 %vm750_vm3, %v5392_v23  ;;  %v3772_v23 = vshrl.u32 %v5495_v3, 16  ;;  %v7755_v3 = vrot.slane %v3730_v44, 4  ;;  %v3763_v44 = vrot.slane %v3761_v33, 4  ;;  %v3809_v33 = vshrl.u32 %v7761_v17, 16 }
  0xf7   : > { %v7753_v16 = vpop.f32.mrf.mxu0  ;;  %v3788_v13 = vor.u32 %v3787_v39, %v7772_v10  ;;  %v4447_v39 = vrot.slane %v7724_v7, 5  ;;  %v9054_v7 = vcombine.low %v7476_v43, %v7493_v2  ;;  %v9056_v43 = vcombine.low %v7497_v59, %v7507_v50  ;;  %v6173_v2 = vld [vmem:[%s6267_s28 + $0x9c] sm:$0xff]  }
  0xf8   : > { %9047 = vst [vmem:[#allocation8_spill] sm:$0xff] %v7753_v16  ;;  %v3774_v60 = vrot.slane %v3772_v23, 4  ;;  %v6171_v23 = vld [vmem:[%s6267_s28 + $0x84] sm:$0xff]   ;;  %v7829_v16 = vld [vmem:[%s6267_s28 + $0x5c] sm:$0x1]  ;;  %v4454_v59 = vrot.slane %v7761_v17, 5 }
  0xf9   : > { %v7790_v28 = vpop.f32.mrf.mxu0 }
  0xfa   : > { %6006 = vmatmul.mubr.msk.bf16.gmra.mxu0 %vm750_vm3, %v6169_v35  ;;  %v7769_v35 = vrot.slane %v3757_v24, 5  ;;  %v3805_v24 = vshll.u32 %v7761_v17, 16  ;;  %9051 = vst [vmem:[#allocation12_spill] sm:$0xff] %v7790_v28  ;;  %v3801_v28 = vrot.slane %v3799_v19, 5 }
  0xfb   : > { %6009 = vmatprep.mubr.msk.bf16.mxu0 %vm750_vm3, %v6170_v8  ;;  %v7778_v4 = vpop.f32.mrf.mxu1  ;;  %v7781_v8 = vld [vmem:[%s6267_s28 + $0x50] sm:$0x1]  ;;  %v7822_v49 = vpop.f32.mrf.mxu0 }
  0xfc   : > { %9049 = vst [vmem:[#allocation7_spill] sm:$0xff] %v7778_v4  ;;  %v3764_v34 = vor.u32 %v3763_v44, %v7769_v35  ;;  %v7812_v4 = vrot.slane %v3754_v18, 4  ;;  %v7819_v11 = vrot.slane %v3805_v24, 5  ;;  %v3811_v44 = vrot.slane %v3809_v33, 4  ;;  %9053 = vst [vmem:[#allocation2_spill] sm:$0xff] %v7822_v49 }
  0xfd   : > { %5972 = vmatmul.mubr.msk.bf16.gmra.mxu1 %vm750_vm3, %v9048_v6  ;;  %v7798_v6 = vsel %vm6597_vm7, %v5582_v52, %v4433_v36  ;;  %v3778_v36 = vor.u32 %v3777_v45, %v3774_v60  ;;  %v3791_v52 = vshll.u32 %v7781_v8, 16  ;;  %v7817_v63 = vpop.f32.mrf.mxu1  ;;  %v4442_v18 = vrot.slane %v4440_v25, 4  ;;  %v5568_v24 = vld [vmem:[%s6267_s28 + $0x48] sm:$0xe] }
  0xfe   : > { %5975 = vmatprep.mubr.msk.bf16.mxu1 %vm750_vm3, %v9050_v21  ;;  %v3767_v21 = vshll.u32 %v7767_v58, 16  ;;  %9052 = vst [vmem:[#allocation10_spill] sm:$0xff] %v7817_v63  ;;  %v4443_v60 = vrot.slane %v7767_v58, 5  ;;  %v3765_v51 = vrot.slane %v3764_v34, 4  ;;  %v3820_v33 = vshrl.u32 %v5501_v41, 16 }
  0xff   : > { %v7835_v63 = vsel %vm6597_vm7, %v5583_v1, %v4440_v25  ;;  %v3779_v45 = vrot.slane %v3778_v36, 4  ;;  %v3789_v49 = vrot.slane %v3788_v13, 4  ;;  %v3793_v58 = vrot.slane %v3791_v52, 5  ;;  %v7850_v36 = vld [vmem:[%s6267_s28 + $0x64] sm:$0xf]  ;;  %v7857_v13 = vpop.f32.mrf.mxu0 }
 0x100   : > { %v3769_v19 = vrot.slane %v3767_v21, 5  ;;  %v3760_v34 = vsel %vm6311_vm4, %v7812_v4, %v7769_v35  ;;  %v3802_v21 = vor.u32 %v3801_v28, %v3798_v37  ;;  %v3812_v1 = vor.u32 %v3811_v44, %v7819_v11  ;;  %9057 = vst [vmem:[#allocation14_spill] sm:$0xff] %v7857_v13  ;;  %v5569_v28 = vld [vmem:[%s6267_s28 + $0x54] sm:$0xe]  ;;  %v6177_v13 = vld [vmem:[%s6267_s28 + $0xcc] sm:$0xff]  }
 0x101   : > { %v3815_v25 = vshll.u32 %v7829_v16, 16  ;;  %v7861_v52 = vsel %vm6597_vm7, %v4442_v18, %v4443_v60  ;;  %v5584_v35 = vrot.slane %v5568_v24, 9  ;;  %v4449_v37 = vrot.slane %v4447_v39, 4 }
 0x102   : > { %6010 = vmatmul.mubr.msk.bf16.gmra.mxu0 %vm750_vm3, %v6171_v23  ;;  %v3823_v23 = vshll.u32 %v5501_v41, 16  ;;  %v4450_v4 = vrot.slane %v7781_v8, 5  ;;  %v6174_v41 = vld [vmem:[%s6267_s28 + $0xa8] sm:$0xff]   ;;  %v3770_v44 = vsel %vm6311_vm4, %v3765_v51, %v3769_v19  ;;  %v3822_v50 = vrot.slane %v3820_v33, 4 }
 0x103   : > { %6013 = vmatprep.mubr.msk.bf16.mxu0 %vm750_vm3, %v6172_v14  ;;  %v7841_v14 = vpop.f32.mrf.mxu1  ;;  %v3794_v18 = vsel %vm6311_vm4, %v3789_v49, %v3793_v58  ;;  %v3829_v60 = vshll.u32 %v7850_v36, 16  ;;  %v3833_v8 = vshrl.u32 %v7850_v36, 16  ;;  %v3813_v51 = vrot.slane %v3812_v1, 4  ;;  %v7879_v33 = vld [vmem:[%s6267_s28 + $0x68] sm:$0x1] }
 0x104   : > { %9055 = vst [vmem:[#allocation13_spill] sm:$0xff] %v7841_v14  ;;  %v3803_v14 = vrot.slane %v3802_v21, 4  ;;  %v3817_v17 = vrot.slane %v3815_v25, 5  ;;  %v5585_v19 = vrot.slane %v5569_v28, 9  ;;  %v9060_v49 = vsel %vm6311_vm4, %v7764_v26, %v7757_v62  ;;  %v5504_v25 = vld [vmem:[%s6267_s28 + $0x6c] sm:$0xf] }
 0x105   : > { %5976 = vmatmul.mubr.msk.bf16.gmra.mxu1 %vm750_vm3, %v9054_v7  ;;  %v3825_v7 = vrot.slane %v3823_v23, 5  ;;  %v7876_v24 = vpop.f32.mrf.mxu1  ;;  %v7900_v21 = vsel %vm6597_vm7, %v5584_v35, %v4447_v39  ;;  %v7904_v1 = vsel %vm6597_vm7, %v4449_v37, %v4450_v4  ;;  %v7907_v62 = vcombine.low %v3760_v34, %v3770_v44  ;;  %v5570_v4 = vld [vmem:[%s6267_s28 + $0x60] sm:$0xe]  ;;  %v5510_v44 = vld [vmem:[%s6267_s28 + $0x84] sm:$0xf] }
 0x106   : > { %5979 = vmatprep.mubr.msk.bf16.mxu1 %vm750_vm3, %v9056_v43  ;;  %v3784_v43 = vsel %vm6311_vm4, %v3779_v45, %v7772_v10  ;;  %9058 = vst [vmem:[#allocation15_spill] sm:$0xff] %v7876_v24  ;;  %v9061_v45 = vsel %vm6311_vm4, %v7755_v3, %v7691_v46  ;;  %v4456_v46 = vrot.slane %v4454_v59, 4  ;;  %v4457_v3 = vrot.slane %v7829_v16, 5 }
 0x107   : > { %v7894_v23 = vcombine.low %v9061_v45, %v9060_v49  ;;  %9062 = vst [vmem:[#allocation11_spill] sm:$0xff] %v7907_v62  ;;  %v3826_v26 = vor.u32 %v3825_v7, %v3822_v50  ;;  %v7914_v28 = vcombine.low %v3784_v43, %v3794_v18  ;;  %v7916_v39 = vrot.slane %v3829_v60, 5 }
 0x108   : > { %v7882_v10 = vpop.f32.mrf.mxu0  ;;  %v7918_v35 = vrot.slane %v3833_v8, 4  ;;  %v3839_v37 = vshll.u32 %v7879_v33, 16  ;;  %v9064_v34 = vcombine.low %v7515_v54, %v7530_v56  ;;  %v3808_v50 = vsel %vm6311_vm4, %v3803_v14, %v7819_v11  ;;  %v5507_v54 = vld [vmem:[%s6267_s28 + $0x78] sm:$0xf] }
 0x109   : > { %9059 = vst [vmem:[#allocation9_spill] sm:$0xff] %v7882_v10  ;;  %9063 = vst [vmem:[#allocation16_spill] sm:$0xff] %v7914_v28  ;;  %v3818_v7 = vsel %vm6311_vm4, %v3813_v51, %v3817_v17  ;;  %v7938_v43 = vsel %vm6597_vm7, %v5585_v19, %v4454_v59  ;;  %v9066_v56 = vcombine.low %v7522_v29, %v7543_v42  ;;  %v3844_v60 = vshrl.u32 %v5504_v25, 16  ;;  %v7950_v51 = vld [vmem:[%s6267_s28 + $0x7c] sm:$0xf]  ;;  %v6176_v59 = vld [vmem:[%s6267_s28 + $0xc0] sm:$0xff]  }
 0x10a   : > { %6014 = vmatmul.mubr.msk.bf16.gmra.mxu0 %vm750_vm3, %v6173_v2  ;;  %v7912_v2 = vld [vmem:[%s6267_s28 + $0x70] sm:$0xf]  ;;  %v7945_v18 = vpop.f32.mrf.mxu0  ;;  %v3847_v8 = vshll.u32 %v5504_v25, 16  ;;  %v7955_v17 = vsel %vm6597_vm7, %v4456_v46, %v4457_v3  ;;  %v7957_v29 = vrot.slane %v3826_v26, 4  ;;  %v5586_v42 = vrot.slane %v5570_v4, 9 }
 0x10b   : > { %6017 = vmatprep.mubr.msk.bf16.mxu0 %vm750_vm3, %v6174_v41  ;;  %v6175_v41 = vld [vmem:[%s6267_s28 + $0xb4] sm:$0xff]   ;;  %9067 = vst [vmem:[#allocation18_spill] sm:$0xff] %v7945_v18  ;;  %v3853_v11 = vshll.u32 %v7912_v2, 16  ;;  %v3857_v14 = vshrl.u32 %v7912_v2, 16  ;;  %v4461_v19 = vrot.slane %v7850_v36, 5  ;;  %v7960_v49 = vcombine.low %v3808_v50, %v3818_v7 }
 0x10c   : > { %v3836_v45 = vor.u32 %v7918_v35, %v7916_v39  ;;  %v7964_v25 = vrot.slane %v3839_v37, 5  ;;  %v3868_v46 = vshrl.u32 %v5507_v54, 16  ;;  %v3871_v3 = vshll.u32 %v5507_v54, 16  ;;  %v7976_v4 = vld [vmem:[%s6267_s28 + $0x88] sm:$0xf]  ;;  %v7979_v35 = vpop.f32.mrf.mxu0 }
 0x10d   : > { %5980 = vmatmul.mubr.msk.bf16.gmra.mxu1 %vm750_vm3, %v9064_v34  ;;  %v7926_v16 = vpop.f32.mrf.mxu1  ;;  %9068 = vst [vmem:[#allocation19_spill] sm:$0xff] %v7960_v49  ;;  %v4464_v34 = vrot.slane %v7879_v33, 5  ;;  %v3877_v36 = vshll.u32 %v7950_v51, 16  ;;  %v3881_v26 = vshrl.u32 %v7950_v51, 16  ;;  %9070 = vst [vmem:[#allocation21_spill] sm:$0xff] %v7979_v35  ;;  %v3846_v33 = vrot.slane %v3844_v60, 4 }
 0x10e   : > { %9065 = vst [vmem:[#allocation17_spill] sm:$0xff] %v7926_v16  ;;  %5983 = vmatprep.mubr.msk.bf16.mxu1 %vm750_vm3, %v9066_v56  ;;  %v7968_v56 = vld [vmem:[%s6267_s28 + $0x74] sm:$0x1]  ;;  %v3849_v37 = vrot.slane %v3847_v8, 5  ;;  %v7981_v50 = vrot.slane %v3853_v11, 5  ;;  %v3859_v7 = vrot.slane %v3857_v14, 4  ;;  %v9071_v54 = vcombine.low %v7534_v30, %v7550_v55  ;;  %v8009_v49 = vpop.f32.mrf.mxu0 }
 0x10f   : > { %v7971_v58 = vpop.f32.mrf.mxu1  ;;  %v4463_v16 = vrot.slane %v4461_v19, 4  ;;  %v7994_v60 = vld [vmem:[%s6267_s28 + $0x80] sm:$0x1]  ;;  %v7997_v8 = vld [vmem:[%s6267_s28 + $0x6c] sm:$0xe]  ;;  %v3892_v11 = vshrl.u32 %v5510_v44, 16 }
 0x110   : > { %9069 = vst [vmem:[#allocation20_spill] sm:$0xff] %v7971_v58  ;;  %v7990_v58 = vsel %vm6597_vm7, %v5586_v42, %v4461_v19  ;;  %v3895_v14 = vshll.u32 %v5510_v44, 16  ;;  %v3905_v24 = vshrl.u32 %v7976_v4, 16  ;;  %v3870_v19 = vrot.slane %v3868_v46, 4  ;;  %9073 = vst [vmem:[#allocation23_spill] sm:$0xff] %v8009_v49 }
 0x111   : > { %v8005_v42 = vpop.f32.mrf.mxu1  ;;  %v3873_v35 = vrot.slane %v3871_v3, 5  ;;  %v8007_v18 = vrot.slane %v3877_v36, 5  ;;  %v3883_v10 = vrot.slane %v3881_v26, 4  ;;  %v9074_v44 = vcombine.low %v7554_v15, %v7582_v32  ;;  %v8028_v32 = vld [vmem:[%s6267_s28 + $0x8c] sm:$0x1] }
 0x112   : > { %6018 = vmatmul.mubr.msk.bf16.gmra.mxu0 %vm750_vm3, %v6175_v41  ;;  %v3863_v41 = vshll.u32 %v7968_v56, 16  ;;  %9072 = vst [vmem:[#allocation22_spill] sm:$0xff] %v8005_v42  ;;  %v3850_v30 = vor.u32 %v3849_v37, %v3846_v33  ;;  %v3860_v55 = vor.u32 %v3859_v7, %v7981_v50  ;;  %v3887_v46 = vshll.u32 %v7994_v60, 16  ;;  %v5572_v33 = vld [vmem:[%s6267_s28 + $0x78] sm:$0xe] }
 0x113   : > { %6021 = vmatprep.mubr.msk.bf16.mxu0 %vm750_vm3, %v6176_v59  ;;  %v3901_v59 = vshll.u32 %v7976_v4, 16  ;;  %v8019_v3 = vrot.slane %v3836_v45, 4  ;;  %v8023_v36 = vsel %vm6597_vm7, %v4463_v16, %v4464_v34  ;;  %v5587_v26 = vrot.slane %v7997_v8, 9  ;;  %v8033_v42 = vpop.f32.mrf.mxu1  ;;  %v5513_v8 = vld [vmem:[%s6267_s28 + $0x90] sm:$0xf] }
 0x114   : > { %v4475_v15 = vrot.slane %v7950_v51, 5  ;;  %v3894_v37 = vrot.slane %v3892_v11, 4  ;;  %v3897_v7 = vrot.slane %v3895_v14, 5  ;;  %9075 = vst [vmem:[#allocation24_spill] sm:$0xff] %v8033_v42  ;;  %v3865_v45 = vrot.slane %v3863_v41, 5 }
 0x115   : > { %5984 = vmatmul.mubr.msk.bf16.gmra.mxu1 %vm750_vm3, %v9071_v54  ;;  %v4468_v54 = vrot.slane %v7912_v2, 5  ;;  %v8031_v2 = vrot.slane %v3901_v59, 5  ;;  %v4471_v49 = vrot.slane %v7968_v56, 5  ;;  %v3874_v16 = vor.u32 %v3873_v35, %v3870_v19  ;;  %v8042_v59 = vld [vmem:[%s6267_s28 + $0x94] sm:$0xf] }
 0x116   : > { %5987 = vmatprep.mubr.msk.bf16.mxu1 %vm750_vm3, %v9074_v44  ;;  %v3907_v44 = vrot.slane %v3905_v24, 4  ;;  %v3884_v34 = vor.u32 %v3883_v10, %v8007_v18  ;;  %v3851_v51 = vrot.slane %v3850_v30, 4  ;;  %v3861_v11 = vrot.slane %v3860_v55, 4 }
 0x117   : > { %v4470_v62 = vrot.slane %v4468_v54, 4  ;;  %v3889_v14 = vrot.slane %v3887_v46, 5  ;;  %v9076_v24 = vcombine.low %v7675_v61, %v7679_v40  ;;  %v5588_v56 = vrot.slane %v5572_v33, 9 }
 0x118   : > { %v4477_v35 = vrot.slane %v4475_v15, 4  ;;  %v4478_v10 = vrot.slane %v7994_v60, 5  ;;  %v3911_v41 = vshll.u32 %v8028_v32, 16  ;;  %v3908_v30 = vor.u32 %v3907_v44, %v8031_v2 }
 0x119   : > { %v3916_v55 = vshrl.u32 %v5513_v8, 16  ;;  %v3919_v46 = vshll.u32 %v5513_v8, 16  ;;  %v9078_v61 = vcombine.low %v7594_v9, %v7599_v47  ;;  %v3875_v40 = vrot.slane %v3874_v16, 4 }
 0x11a   : > { %v8038_v28 = vpop.f32.mrf.mxu0  ;;  %6022 = vmatmul.mubr.msk.bf16.gmra.mxu0 %vm750_vm3, %v6177_v13  ;;  %v3898_v13 = vor.u32 %v3897_v7, %v3894_v37  ;;  %v3885_v33 = vrot.slane %v3884_v34, 4  ;;  %v3925_v60 = vshll.u32 %v8042_v59, 16  ;;  %v3842_v37 = vsel %vm6311_vm4, %v8019_v3, %v7964_v25 }
 0x11b   : > { %6061 = vmatprep.mubr.msk.bf16.mxu0 %vm750_vm3, %v9076_v24  ;;  %v3929_v24 = vshrl.u32 %v8042_v59, 16  ;;  %v3856_v9 = vsel %vm6311_vm4, %v3851_v51, %v7981_v50  ;;  %v8074_v47 = vsel %vm6597_vm7, %v5587_v26, %v4468_v54  ;;  %v8078_v7 = vsel %vm6597_vm7, %v4470_v62, %v4471_v49  ;;  %v5573_v54 = vld [vmem:[%s6267_s28 + $0x84] sm:$0xe]  ;;  %v9117_v31 = vld [vmem:[#allocation24_spill] sm:$0xff] }
 0x11c   : > { %v8050_v19 = vpop.f32.mrf.mxu0  ;;  %v8086_v25 = vsel %vm6597_vm7, %v5588_v56, %v4475_v15  ;;  %v8090_v50 = vsel %vm6597_vm7, %v4477_v35, %v4478_v10  ;;  %v3913_v3 = vrot.slane %v3911_v41, 5  ;;  %v3899_v62 = vrot.slane %v3898_v13, 4  ;;  %v8114_v13 = vld [vmem:[%s6267_s28 + $0x98] sm:$0x1] }
 0x11d   : > { %9077 = vst [vmem:[#allocation25_spill] sm:$0xff] %v8050_v19  ;;  %v8053_v42 = vpop.f32.mrf.mxu1  ;;  %5988 = vmatmul.mubr.msk.bf16.gmra.mxu1 %vm750_vm3, %v9078_v61  ;;  %v3909_v49 = vrot.slane %v3908_v30, 4  ;;  %v3918_v16 = vrot.slane %v3916_v55, 4  ;;  %v3921_v34 = vrot.slane %v3919_v46, 5  ;;  %v3880_v15 = vsel %vm6311_vm4, %v3875_v40, %v8007_v18  ;;  %v5516_v30 = vld [vmem:[%s6267_s28 + $0x9c] sm:$0xf] }
 0x11e   : > { %v8061_v19 = vpop.f32.mrf.mxu0  ;;  %6027 = vmatprep.mubr.msk.bf16.mxu1 %vm750_vm3, %v7745_v27  ;;  %v3866_v27 = vsel %vm6311_vm4, %v3861_v11, %v3865_v45  ;;  %v3890_v45 = vsel %vm6311_vm4, %v3885_v33, %v3889_v14  ;;  %v8102_v51 = vrot.slane %v3925_v60, 5  ;;  %v3931_v11 = vrot.slane %v3929_v24, 4  ;;  %v8145_v24 = vld [vmem:[%s6267_s28 + $0xa0] sm:$0xf] }
 0x11f   : > { %v8080_v44 = vpop.f32.mrf.mxu1  ;;  %v9079_v35 = vcombine.low %v7715_v48, %v7719_v38  ;;  %v5602_v10 = vcombine.low %v7938_v43, %v7955_v17  ;;  %v5603_v41 = vcombine.low %v7990_v58, %v8023_v36  ;;  %v5589_v18 = vrot.slane %v5573_v54, 9 }
 0x120   : > { %v8093_v26 = vpop.f32.mrf.mxu0  ;;  %v4482_v14 = vrot.slane %v7976_v4, 5  ;;  %v9080_v48 = vcombine.low %v7798_v6, %v7802_v22  ;;  %v9081_v38 = vsel %vm6311_vm4, %v7957_v29, %v7916_v39  ;;  %v8130_v61 = vcombine.low %v3856_v9, %v3866_v27  ;;  %v5574_v29 = vld [vmem:[%s6267_s28 + $0x90] sm:$0xe]  ;;  %v9088_v4 = vld [vmem:[#allocation2_spill] sm:$0xff] }
 0x121   : > { %v8095_v8 = vpop.f32.mrf.mxu1  ;;  %v8128_v46 = vcombine.low %v9081_v38, %v3842_v37  ;;  %v8136_v60 = vcombine.low %v3880_v15, %v3890_v45  ;;  %v3904_v6 = vsel %vm6311_vm4, %v3899_v62, %v8031_v2  ;;  %v3914_v22 = vsel %vm6311_vm4, %v3909_v49, %v3913_v3 }
 0x122   : > { %v5859_v56 = vpop.f32.mrf.mxu0  ;;  %6062 = vmatmul.mubr.msk.bf16.vlgmr.msra.gmra.mxu0 %vm750_vm3, %v9079_v35  ;;  %v3922_v39 = vor.u32 %v3921_v34, %v3918_v16  ;;  %v3932_v9 = vor.u32 %v3931_v11, %v8102_v51  ;;  %v3935_v27 = vshll.u32 %v8114_v13, 16  ;;  %v3940_v54 = vshrl.u32 %v5516_v30, 16 }
 0x123   : > { %v8117_v55 = vpop.f32.mrf.mxu1  ;;  %6065 = vmatprep.mubr.msk.bf16.mxu0 %vm750_vm3, %v9080_v48  ;;  %v3943_v15 = vshll.u32 %v5516_v30, 16  ;;  %v8156_v3 = vsel %vm6597_vm7, %v5589_v18, %v4482_v14  ;;  %v4484_v62 = vrot.slane %v4482_v14, 4  ;;  %v4485_v49 = vrot.slane %v8028_v32, 5 }
 0x124   : > { %v1554_v33 = vpop.f32.mrf.mxu0  ;;  %v5590_v16 = vrot.slane %v5574_v29, 9  ;;  %v4489_v34 = vrot.slane %v8042_v59, 5  ;;  %v3949_v11 = vshll.u32 %v8145_v24, 16  ;;  %v3953_v35 = vshrl.u32 %v8145_v24, 16 }
 0x125   : > { %v5825_v37 = vpop.f32.mrf.mxu1  ;;  %6028 = vmatmul.mubr.msk.bf16.vlgmr.msra.gmra.mxu1 %vm750_vm3, %v7747_v57  ;;  %v8165_v48 = vcombine.low %v3904_v6, %v3914_v22  ;;  %v8167_v18 = vrot.slane %v3922_v39, 4  ;;  %v3933_v32 = vrot.slane %v3932_v9, 4  ;;  %v3937_v38 = vrot.slane %v3935_v27, 5  ;;  %v5519_v22 = vld [vmem:[%s6267_s28 + $0xa8] sm:$0xf] }
 0x126   : > { %v1138_v45 = vadd.f32 %v5825_v37, %v7643_v5  ;;  %v5860_v2 = vpop.f32.mrf.mxu0  ;;  %6031 = vmatprep.mubr.msk.bf16.mxu1 %vm750_vm3, %v7894_v23  ;;  %v3942_v29 = vrot.slane %v3940_v54, 4  ;;  %v3945_v59 = vrot.slane %v3943_v15, 5  ;;  %v4492_v6 = vrot.slane %v8114_v13, 5  ;;  %v8193_v27 = vld [vmem:[%s6267_s28 + $0xac] sm:$0xf] }
 0x127   : > { %v1129_v57 = vpop.f32.mrf.mxu1  ;;  %v3955_v9 = vrot.slane %v3953_v35, 4  ;;  %v9085_v35 = vld [vmem:[#allocation8_spill] sm:$0xff] }
 0x128   : > { %v8162_v5 = vadd.f32 %v5859_v56, %v1138_v45  ;;  %v1130_v23 = vadd.f32 %v1129_v57, %v7667_v20  ;;  %v1557_v30 = vpop.f32.mrf.mxu0  ;;  %v9082_v45 = vcombine.low %v7835_v63, %v7861_v52  ;;  %v8178_v20 = vsel %vm6597_vm7, %v4484_v62, %v4485_v49  ;;  %v5575_v62 = vld [vmem:[%s6267_s28 + $0x9c] sm:$0xe] }
 0x129   : > { %v5826_v14 = vpop.f32.mrf.mxu1  ;;  %v4491_v63 = vrot.slane %v4489_v34, 4  ;;  %v8190_v52 = vrot.slane %v3949_v11, 5  ;;  %v4496_v49 = vrot.slane %v8145_v24, 5  ;;  %v3973_v24 = vshll.u32 %v8193_v27, 16 }
 0x12a   : > { %v8169_v37 = vadd.f32 %v1554_v33, %v1130_v23  ;;  %v1141_v40 = vadd.f32 %v5826_v14, %v7686_v53  ;;  %v5863_v56 = vpop.f32.mrf.mxu0  ;;  %6066 = vmatmul.mubr.msk.bf16.gmra.mxu0 %vm750_vm3, %v9082_v45  ;;  %v9083_v33 = vcombine.low %v7900_v21, %v7904_v1  ;;  %v8188_v53 = vsel %vm6597_vm7, %v5590_v16, %v4489_v34  ;;  %v5518_v1 = vld [vmem:[%s6267_s28 + $0xa4] sm:$0x1]  ;;  %v9084_v16 = vld [vmem:[#allocation11_spill] sm:$0xff] }
 0x12b   : > { %v1132_v39 = vpop.f32.mrf.mxu1  ;;  %v3928_v21 = vsel %vm6311_vm4, %v8167_v18, %v8102_v51  ;;  %v3964_v34 = vshrl.u32 %v5519_v22, 16  ;;  %v9086_v51 = vld [vmem:[#allocation16_spill] sm:$0xff]  ;;  %v3977_v18 = vshrl.u32 %v8193_v27, 16 }
 0x12c   : > { %6069 = vmatprep.mubr.msk.bf16.mxu0 %vm750_vm3, %v9083_v33  ;;  %v8195_v54 = vadd.f32 %v5860_v2, %v1141_v40  ;;  %v1133_v13 = vadd.f32 %v1132_v39, %v7731_v12  ;;  %v1570_v15 = vpop.f32.mrf.mxu0  ;;  %v3938_v40 = vsel %vm6311_vm4, %v3933_v32, %v3937_v38  ;;  %v3946_v2 = vor.u32 %v3945_v59, %v3942_v29  ;;  %v9087_v59 = vld [vmem:[#allocation12_spill] sm:$0xff] }
 0x12d   : > { %v5829_v57 = vpop.f32.mrf.mxu1  ;;  %6032 = vmatmul.mubr.msk.bf16.gmra.mxu1 %vm750_vm3, %v9084_v16  ;;  %v3967_v12 = vshll.u32 %v5519_v22, 16  ;;  %v8218_v39 = vsel %vm6597_vm7, %v4491_v63, %v4492_v6  ;;  %v3956_v32 = vor.u32 %v3955_v9, %v8190_v52  ;;  %v3959_v38 = vshll.u32 %v5518_v1, 16 }
 0x12e   : > { %v8209_v11 = vadd.f32 %v1557_v30, %v1133_v13  ;;  %v1154_v23 = vadd.f32 %v5829_v57, %v9085_v35  ;;  %v5864_v14 = vpop.f32.mrf.mxu0  ;;  %6035 = vmatprep.mubr.msk.bf16.mxu1 %vm750_vm3, %v9086_v51  ;;  %v5591_v30 = vrot.slane %v5575_v62, 9  ;;  %v4498_v13 = vrot.slane %v4496_v49, 4 }
 0x12f   : > { %v1145_v45 = vpop.f32.mrf.mxu1  ;;  %v4499_v57 = vrot.slane %v5518_v1, 5  ;;  %v8226_v51 = vrot.slane %v3946_v2, 4  ;;  %v3966_v6 = vrot.slane %v3964_v34, 4  ;;  %v3969_v63 = vrot.slane %v3967_v12, 5  ;;  %v8236_v1 = vld [vmem:[%s6267_s28 + $0xb0] sm:$0x1] }
 0x130   : > { %v8221_v29 = vadd.f32 %v5863_v56, %v1154_v23  ;;  %v1146_v22 = vadd.f32 %v1145_v45, %v9087_v59  ;;  %v1573_v33 = vpop.f32.mrf.mxu0  ;;  %v8238_v23 = vrot.slane %v3973_v24, 5  ;;  %v3979_v2 = vrot.slane %v3977_v18, 4  ;;  %v9089_v12 = vld [vmem:[#allocation14_spill] sm:$0xff] }
 0x131   : > { %v5830_v16 = vpop.f32.mrf.mxu1  ;;  %v8248_v43 = vrot.slane %v3956_v32, 4  ;;  %v8250_v17 = vrot.slane %v3959_v38, 5  ;;  %v8258_v58 = vsel %vm6597_vm7, %v5591_v30, %v4496_v49  ;;  %v8262_v36 = vsel %vm6597_vm7, %v4498_v13, %v4499_v57  ;;  %v8274_v30 = vld [vmem:[%s6267_s28 + $0xb8] sm:$0xf] }
 0x132   : > { %v8228_v9 = vadd.f32 %v1570_v15, %v1146_v22  ;;  %v1157_v62 = vadd.f32 %v5830_v16, %v9088_v4  ;;  %v5867_v56 = vpop.f32.mrf.mxu0  ;;  %6070 = vmatmul.mubr.msk.bf16.gmra.mxu0 %vm750_vm3, %v5602_v10  ;;  %v8244_v15 = vcombine.low %v3928_v21, %v3938_v40  ;;  %v5576_v10 = vld [vmem:[%s6267_s28 + $0xa8] sm:$0xe]  ;;  %v3970_v32 = vor.u32 %v3969_v63, %v3966_v6  ;;  %v9091_v22 = vld [vmem:[#allocation9_spill] sm:$0xff] }
 0x133   : > { %v1148_v45 = vpop.f32.mrf.mxu1  ;;  %6073 = vmatprep.mubr.msk.bf16.mxu0 %vm750_vm3, %v5603_v41  ;;  %v5522_v41 = vld [vmem:[%s6267_s28 + $0xb4] sm:$0xf]  ;;  %v9090_v40 = vld [vmem:[#allocation19_spill] sm:$0xff]  ;;  %v3983_v38 = vshll.u32 %v8236_v1, 16  ;;  %v4503_v49 = vrot.slane %v8193_v27, 5  ;;  %v3980_v16 = vor.u32 %v3979_v2, %v8238_v23  ;;  %v3962_v27 = vsel %vm6311_vm4, %v8248_v43, %v8250_v17 }
 0x134   : > { %v8253_v34 = vadd.f32 %v5864_v14, %v1157_v62  ;;  %v1149_v24 = vadd.f32 %v1148_v45, %v9089_v12  ;;  %v1586_v18 = vpop.f32.mrf.mxu0  ;;  %v5592_v62 = vrot.slane %v5576_v10, 9  ;;  %v3988_v6 = vshrl.u32 %v5522_v41, 16 }
 0x135   : > { %v5833_v21 = vpop.f32.mrf.mxu1  ;;  %6036 = vmatmul.mubr.msk.bf16.gmra.mxu1 %vm750_vm3, %v9090_v40  ;;  %v3991_v63 = vshll.u32 %v5522_v41, 16  ;;  %v3997_v2 = vshll.u32 %v8274_v30, 16  ;;  %v4001_v10 = vshrl.u32 %v8274_v30, 16  ;;  %v5525_v40 = vld [vmem:[%s6267_s28 + $0xc0] sm:$0xf]  ;;  %v3971_v4 = vrot.slane %v3970_v32, 4 }
 0x136   : > { %v8276_v59 = vadd.f32 %v1573_v33, %v1149_v24  ;;  %v1170_v13 = vadd.f32 %v5833_v21, %v9091_v22  ;;  %v5868_v57 = vpop.f32.mrf.mxu0  ;;  %6039 = vmatprep.mubr.msk.bf16.mxu1 %vm750_vm3, %v8128_v46  ;;  %v9093_v24 = vld [vmem:[#allocation18_spill] sm:$0xff]  ;;  %v3985_v43 = vrot.slane %v3983_v38, 5  ;;  %v4505_v17 = vrot.slane %v4503_v49, 4 }
 0x137   : > { %v1161_v45 = vpop.f32.mrf.mxu1  ;;  %v4506_v33 = vrot.slane %v8236_v1, 5  ;;  %v8304_v14 = vsel %vm6597_vm7, %v5592_v62, %v4503_v49  ;;  %v8307_v32 = vld [vmem:[%s6267_s28 + $0xc4] sm:$0xf]  ;;  %v9097_v1 = vcombine.low %v8086_v25, %v8090_v50  ;;  %v8319_v62 = vrot.slane %v3997_v2, 5 }
 0x138   : > { %v8288_v12 = vadd.f32 %v5867_v56, %v1170_v13  ;;  %v1162_v21 = vadd.f32 %v1161_v45, %v9093_v24  ;;  %v1589_v46 = vpop.f32.mrf.mxu0  ;;  %v9095_v56 = vld [vmem:[#allocation21_spill] sm:$0xff]  ;;  %v9096_v45 = vcombine.low %v8074_v47, %v8078_v7  ;;  %v3981_v24 = vrot.slane %v3980_v16, 4  ;;  %v9098_v16 = vld [vmem:[#allocation23_spill] sm:$0xff] }
 0x139   : > { %v5834_v22 = vpop.f32.mrf.mxu1  ;;  %v4012_v47 = vshrl.u32 %v5525_v40, 16  ;;  %v4015_v7 = vshll.u32 %v5525_v40, 16  ;;  %v3976_v25 = vsel %vm6311_vm4, %v3971_v4, %v8238_v23  ;;  %v8328_v50 = vsel %vm6597_vm7, %v4505_v17, %v4506_v33  ;;  %v5577_v40 = vld [vmem:[%s6267_s28 + $0xb4] sm:$0xe] }
 0x13a   : > { %9092 = vst [vmem:[#allocation11_spill] sm:$0xff] %v8288_v12  ;;  %v8295_v35 = vadd.f32 %v1586_v18, %v1162_v21  ;;  %v1173_v41 = vadd.f32 %v5834_v22, %v9095_v56  ;;  %v5871_v13 = vpop.f32.mrf.mxu0  ;;  %6074 = vmatmul.mubr.msk.bf16.gmra.mxu0 %vm750_vm3, %v9096_v45  ;;  %v8314_v18 = vld [vmem:[%s6267_s28 + $0xbc] sm:$0x1]  ;;  %v3990_v21 = vrot.slane %v3988_v6, 4  ;;  %v3993_v22 = vrot.slane %v3991_v63, 5 }
 0x13b   : > { %v1164_v38 = vpop.f32.mrf.mxu1  ;;  %6077 = vmatprep.mubr.msk.bf16.mxu0 %vm750_vm3, %v9097_v1  ;;  %v4025_v6 = vshrl.u32 %v8307_v32, 16  ;;  %v4007_v23 = vshll.u32 %v8314_v18, 16  ;;  %v4510_v17 = vrot.slane %v8274_v30, 5  ;;  %v9099_v1 = vld [vmem:[#allocation25_spill] sm:$0xff] }
 0x13c   : > { %9094 = vst [vmem:[#allocation8_spill] sm:$0xff] %v8295_v35  ;;  %v8316_v56 = vadd.f32 %v5868_v57, %v1173_v41  ;;  %v1165_v45 = vadd.f32 %v1164_v38, %v9098_v16  ;;  %v1602_v49 = vpop.f32.mrf.mxu0  ;;  %v4003_v35 = vrot.slane %v4001_v10, 4  ;;  %v4021_v57 = vshll.u32 %v8307_v32, 16 }
 0x13d   : > { %v5837_v12 = vpop.f32.mrf.mxu1  ;;  %6040 = vmatmul.mubr.msk.bf16.gmra.mxu1 %vm750_vm3, %v8130_v61  ;;  %v3986_v61 = vsel %vm6311_vm4, %v3981_v24, %v3985_v43  ;;  %v3994_v33 = vor.u32 %v3993_v22, %v3990_v21  ;;  %v4014_v41 = vrot.slane %v4012_v47, 4  ;;  %v4017_v38 = vrot.slane %v4015_v7, 5 }
 0x13e   : > { %v8332_v63 = vadd.f32 %v1589_v46, %v1165_v45  ;;  %v1186_v2 = vadd.f32 %v5837_v12, %v8038_v28  ;;  %v5872_v10 = vpop.f32.mrf.mxu0  ;;  %6043 = vmatprep.mubr.msk.bf16.mxu1 %vm750_vm3, %v8136_v60  ;;  %v9100_v60 = vsel %vm6311_vm4, %v8226_v51, %v8190_v52  ;;  %v4004_v24 = vor.u32 %v4003_v35, %v8319_v62 }
 0x13f   : > { %v1177_v4 = vpop.f32.mrf.mxu1  ;;  %v8350_v43 = vcombine.low %v9100_v60, %v3962_v27  ;;  %v8353_v30 = vcombine.low %v3976_v25, %v3986_v61  ;;  %v8357_v22 = vrot.slane %v4021_v57, 5  ;;  %v4027_v47 = vrot.slane %v4025_v6, 4  ;;  %v5527_v27 = vld [vmem:[%s6267_s28 + $0xc8] sm:$0x1] }
 0x140   : > { %v8342_v46 = vadd.f32 %v5871_v13, %v1186_v2  ;;  %v1178_v28 = vadd.f32 %v1177_v4, %v9099_v1  ;;  %v1605_v12 = vpop.f32.mrf.mxu0  ;;  %v5609_v13 = vcombine.low %v8304_v14, %v8328_v50  ;;  %v9101_v52 = vcombine.low %v8156_v3, %v8178_v20  ;;  %v5528_v14 = vld [vmem:[%s6267_s28 + $0xcc] sm:$0xf]  ;;  %v8378_v20 = vld [vmem:[%s6267_s28 + $0xd0] sm:$0xf]  ;;  %v5578_v4 = vld [vmem:[%s6267_s28 + $0xc0] sm:$0xe] }
 0x141   : > { %v5838_v21 = vpop.f32.mrf.mxu1  ;;  %v8366_v35 = vrot.slane %v4007_v23, 5  ;;  %v5593_v51 = vrot.slane %v5577_v40, 9  ;;  %v9102_v50 = vcombine.low %v8188_v53, %v8218_v39  ;;  %v4513_v57 = vrot.slane %v8314_v18, 5 }
 0x142   : > { %v8359_v7 = vadd.f32 %v1602_v49, %v1178_v28  ;;  %v1189_v16 = vadd.f32 %v5838_v21, %v8061_v19  ;;  %v5875_v45 = vpop.f32.mrf.mxu0  ;;  %6078 = vmatmul.mubr.msk.bf16.gmra.mxu0 %vm750_vm3, %v9101_v52  ;;  %v8374_v49 = vrot.slane %v3994_v33, 4  ;;  %v4512_v19 = vrot.slane %v4510_v17, 4 }
 0x143   : > { %v1180_v25 = vpop.f32.mrf.mxu1  ;;  %6081 = vmatprep.mubr.msk.bf16.mxu0 %vm750_vm3, %v9102_v50  ;;  %v4018_v3 = vor.u32 %v4017_v38, %v4014_v41  ;;  %v8383_v23 = vrot.slane %v4004_v24, 4  ;;  %v4517_v53 = vrot.slane %v8307_v32, 5  ;;  %v4028_v33 = vor.u32 %v4027_v47, %v8357_v22 }
 0x144   : > { %v8380_v6 = vadd.f32 %v5872_v10, %v1189_v16  ;;  %v1181_v2 = vadd.f32 %v1180_v25, %v8093_v26  ;;  %v1618_v61 = vpop.f32.mrf.mxu0  ;;  %v4031_v18 = vshll.u32 %v5527_v27, 16  ;;  %v4036_v40 = vshrl.u32 %v5528_v14, 16  ;;  %v9105_v10 = vld [vmem:[#allocation4_spill] sm:$0xff]  ;;  %v9106_v16 = vld [vmem:[#allocation3_spill] sm:$0xff] }
 0x145   : > { %v5841_v39 = vpop.f32.mrf.mxu1  ;;  %6044 = vmatmul.mubr.msk.bf16.gmra.mxu1 %vm750_vm3, %v8165_v48  ;;  %v4039_v41 = vshll.u32 %v5528_v14, 16  ;;  %v4045_v28 = vshll.u32 %v8378_v20, 16  ;;  %v4049_v32 = vshrl.u32 %v8378_v20, 16  ;;  %v4511_v48 = vsel %vm6597_vm7, %v5593_v51, %v4510_v17  ;;  %v9107_v17 = vld [vmem:[#allocation6_spill] sm:$0xff] }
 0x146   : > { %9103 = vst [vmem:[#allocation16_spill] sm:$0xff] %v8380_v6  ;;  %v8390_v38 = vadd.f32 %v1605_v12, %v1181_v2  ;;  %v1202_v1 = vadd.f32 %v5841_v39, %v9105_v10  ;;  %v5876_v26 = vpop.f32.mrf.mxu0  ;;  %6047 = vmatprep.mubr.msk.bf16.mxu1 %vm750_vm3, %v8244_v15  ;;  %v4514_v24 = vsel %vm6597_vm7, %v4512_v19, %v4513_v57  ;;  %v4019_v21 = vrot.slane %v4018_v3, 4 }
 0x147   : > { %v1193_v60 = vpop.f32.mrf.mxu1  ;;  %v5594_v12 = vrot.slane %v5578_v4, 9  ;;  %v4519_v25 = vrot.slane %v4517_v53, 4  ;;  %v4520_v15 = vrot.slane %v5527_v27, 5  ;;  %v4029_v2 = vrot.slane %v4028_v33, 4  ;;  %v5530_v33 = vld [vmem:[%s6267_s28 + $0xd4] sm:$0x1] }
 0x148   : > { %9104 = vst [vmem:[#allocation12_spill] sm:$0xff] %v8390_v38  ;;  %v8401_v47 = vadd.f32 %v5875_v45, %v1202_v1  ;;  %v1194_v52 = vadd.f32 %v1193_v60, %v9106_v16  ;;  %v1621_v14 = vpop.f32.mrf.mxu0  ;;  %v4033_v39 = vrot.slane %v4031_v18, 5  ;;  %v4038_v10 = vrot.slane %v4036_v40, 4  ;;  %v9109_v18 = vld [vmem:[#allocation5_spill] sm:$0xff] }
 0x149   : > { %v5842_v50 = vpop.f32.mrf.mxu1  ;;  %v4041_v38 = vrot.slane %v4039_v41, 5  ;;  %v9108_v45 = vcombine.low %v8258_v58, %v8262_v36  ;;  %v8411_v57 = vrot.slane %v4045_v28, 5  ;;  %v4051_v27 = vrot.slane %v4049_v32, 4 }
 0x14a   : > { %v8404_v6 = vadd.f32 %v1618_v61, %v1194_v52  ;;  %v1205_v51 = vadd.f32 %v5842_v50, %v9107_v17  ;;  %v5879_v19 = vpop.f32.mrf.mxu0  ;;  %v4000_v61 = vsel %vm6311_vm4, %v8374_v49, %v8319_v62  ;;  %v4010_v4 = vsel %vm6311_vm4, %v8383_v23, %v8366_v35  ;;  %v5579_v62 = vld [vmem:[%s6267_s28 + $0xcc] sm:$0xe] }
 0x14b   : > { %6082 = vmatmul.mubr.msk.bf16.gmra.mxu0 %vm750_vm3, %v9108_v45  ;;  %v1196_v3 = vpop.f32.mrf.mxu1  ;;  %v4524_v58 = vrot.slane %v8378_v20, 5  ;;  %v4521_v1 = vsel %vm6597_vm7, %v4519_v25, %v4520_v15  ;;  %v5610_v35 = vcombine.low %v4511_v48, %v4514_v24  ;;  %v4024_v20 = vsel %vm6311_vm4, %v4019_v21, %v8357_v22  ;;  %v9111_v25 = vld [vmem:[#allocation10_spill] sm:$0xff] }
 0x14c   : > { %6085 = vmatprep.mubr.msk.bf16.mxu0 %vm750_vm3, %v5609_v13  ;;  %v8424_v36 = vadd.f32 %v5876_v26, %v1205_v51  ;;  %v1197_v40 = vadd.f32 %v1196_v3, %v9109_v18  ;;  %v1634_v41 = vpop.f32.mrf.mxu0  ;;  %v4518_v13 = vsel %vm6597_vm7, %v5594_v12, %v4517_v53  ;;  %v4034_v23 = vsel %vm6311_vm4, %v4029_v2, %v4033_v39  ;;  %v9110_v53 = vld [vmem:[#allocation7_spill] sm:$0xff] }
 0x14d   : > { %v5845_v49 = vpop.f32.mrf.mxu1  ;;  %6048 = vmatmul.mubr.msk.bf16.gmra.mxu1 %vm750_vm3, %v8350_v43  ;;  %v4042_v26 = vor.u32 %v4041_v38, %v4038_v10  ;;  %v4052_v12 = vor.u32 %v4051_v27, %v8411_v57  ;;  %v4055_v43 = vshll.u32 %v5530_v33, 16  ;;  %v5611_v24 = vcombine.low %v4518_v13, %v4521_v1 }
 0x14e   : > { %v8439_v28 = vadd.f32 %v1621_v14, %v1197_v40  ;;  %v1218_v32 = vadd.f32 %v5845_v49, %v9110_v53  ;;  %v5880_v60 = vpop.f32.mrf.mxu0  ;;  %6051 = vmatprep.mubr.msk.bf16.mxu1 %vm750_vm3, %v8353_v30  ;;  %v5595_v16 = vrot.slane %v5579_v62, 9  ;;  %v4526_v52 = vrot.slane %v4524_v58, 4  ;;  %v9112_v30 = vld [vmem:[#allocation13_spill] sm:$0xff] }
 0x14f   : > { %v1209_v48 = vpop.f32.mrf.mxu1  ;;  %v4527_v22 = vrot.slane %v5530_v33, 5  ;;  %v5545_v50 = vcombine.low %v4000_v61, %v4010_v4  ;;  %v5546_v2 = vcombine.low %v4024_v20, %v4034_v23  ;;  %v4043_v39 = vrot.slane %v4042_v26, 4  ;;  %v9113_v33 = vld [vmem:[#allocation15_spill] sm:$0xff]  ;;  %v9114_v62 = vld [vmem:[#allocation17_spill] sm:$0xff]  ;;  %v9115_v26 = vld [vmem:[#allocation20_spill] sm:$0xff] }
 0x150   : > { %v8445_v21 = vadd.f32 %v5879_v19, %v1218_v32  ;;  %v1210_v38 = vadd.f32 %v1209_v48, %v9111_v25  ;;  %v1637_v14 = vpop.f32.mrf.mxu0  ;;  %v4053_v45 = vrot.slane %v4052_v12, 4  ;;  %v4057_v27 = vrot.slane %v4055_v43, 5  ;;  %v9116_v43 = vld [vmem:[#allocation22_spill] sm:$0xff] }
 0x151   : > { %v5846_v15 = vpop.f32.mrf.mxu1  ;;  %v4525_v19 = vsel %vm6597_vm7, %v5595_v16, %v4524_v58  ;;  %v4528_v61 = vsel %vm6597_vm7, %v4526_v52, %v4527_v22  ;;  %v4048_v13 = vsel %vm6311_vm4, %v4043_v39, %v8411_v57 }
 0x152   : > { %v8448_v10 = vadd.f32 %v1634_v41, %v1210_v38  ;;  %v1221_v17 = vadd.f32 %v5846_v15, %v9112_v30  ;;  %v5883_v51 = vpop.f32.mrf.mxu0  ;;  %v4058_v0 = vsel %vm6311_vm4, %v4053_v45, %v4057_v27 }
 0x153   : > { %6086 = vmatmul.mubr.msk.bf16.gmra.mxu0 %vm750_vm3, %v5610_v35  ;;  %v1212_v3 = vpop.f32.mrf.mxu1  ;;  %v5612_v35 = vcombine.low %v4525_v19, %v4528_v61  ;;  %v5547_v12 = vcombine.low %v4048_v13, %v4058_v0 }
 0x154   : > { %6089 = vmatprep.mubr.msk.bf16.mxu0 %vm750_vm3, %v5611_v24  ;;  %v8457_v4 = vadd.f32 %v5880_v60, %v1221_v17  ;;  %v1213_v18 = vadd.f32 %v1212_v3, %v9113_v33  ;;  %v1650_v40 = vpop.f32.mrf.mxu0 }
 0x155   : > { %v5849_v41 = vpop.f32.mrf.mxu1  ;;  %6052 = vmatmul.mubr.msk.bf16.gmra.mxu1 %vm750_vm3, %v5545_v50 }
 0x156   : > { %v8464_v1 = vadd.f32 %v1637_v14, %v1213_v18  ;;  %v1234_v49 = vadd.f32 %v5849_v41, %v9114_v62  ;;  %v5884_v58 = vpop.f32.mrf.mxu0  ;;  %6055 = vmatprep.mubr.msk.bf16.mxu1 %vm750_vm3, %v5546_v2 }
 0x157   : > { %v1225_v20 = vpop.f32.mrf.mxu1 }
 0x158   : > { %v8470_v23 = vadd.f32 %v5883_v51, %v1234_v49  ;;  %v1226_v53 = vadd.f32 %v1225_v20, %v9115_v26  ;;  %v1653_v32 = vpop.f32.mrf.mxu0 }
 0x159   : > { %v5850_v60 = vpop.f32.mrf.mxu1 }
 0x15a   : > { %v8473_v57 = vadd.f32 %v1650_v40, %v1226_v53  ;;  %v1237_v48 = vadd.f32 %v5850_v60, %v9116_v43  ;;  %v5887_v24 = vpop.f32.mrf.mxu0 }
 0x15b   : > { %6090 = vmatmul.mubr.msk.bf16.gmra.mxu0 %vm750_vm3, %v5612_v35  ;;  %v1228_v16 = vpop.f32.mrf.mxu1 }
 0x15c   : > { %v8477_v52 = vadd.f32 %v5884_v58, %v1237_v48  ;;  %v1229_v22 = vadd.f32 %v1228_v16, %v9117_v31  ;;  %v1666_v25 = vpop.f32.mrf.mxu0 }
 0x15d   : > { %v5853_v38 = vpop.f32.mrf.mxu1  ;;  %6056 = vmatmul.mubr.msk.bf16.gmra.mxu1 %vm750_vm3, %v5547_v12 }
 0x15e   : > { %v8481_v14 = vadd.f32 %v1653_v32, %v1229_v22  ;;  %v1250_v15 = vadd.f32 %v5853_v38, %v8053_v42  ;;  %v5888_v50 = vpop.f32.mrf.mxu0 }
 0x15f   : > { %v1241_v2 = vpop.f32.mrf.mxu1 }
 0x160   : > { %v8484_v39 = vadd.f32 %v5887_v24, %v1250_v15  ;;  %v1242_v30 = vadd.f32 %v1241_v2, %v8080_v44  ;;  %v1669_v17 = vpop.f32.mrf.mxu0 }
 0x161   : > { %v5854_v51 = vpop.f32.mrf.mxu1 }
 0x162   : > { %v8487_v45 = vadd.f32 %v1666_v25, %v1242_v30  ;;  %v1253_v27 = vadd.f32 %v5854_v51, %v8095_v8  ;;  %v5927_v3 = vpop.f32.mrf.mxu0  ;;  %v9118_v30 = vld [vmem:[#allocation11_spill] sm:$0xff] }
 0x163   : > { %v1244_v19 = vpop.f32.mrf.mxu1 }
 0x164   : > { %v8490_v61 = vadd.f32 %v5888_v50, %v1253_v27  ;;  %v1245_v33 = vadd.f32 %v1244_v19, %v8117_v55  ;;  %v2639_v18 = vpop.f32.mrf.mxu0 }
 0x165   : > { %v5893_v42 = vpop.f32.mrf.mxu1 }
 0x166   : > { %v8493_v40 = vadd.f32 %v1669_v17, %v1245_v33  ;;  %v2042_v41 = vadd.f32 %v5893_v42, %v8162_v5  ;;  %v5928_v13 = vpop.f32.mrf.mxu0 }
 0x167   : > { %v1913_v44 = vpop.f32.mrf.mxu1 }
 0x168   : > { %v8496_v62 = vadd.f32 %v5927_v3, %v2042_v41  ;;  %v2040_v49 = vadd.f32 %v1913_v44, %v8169_v37  ;;  %v2642_v58 = vpop.f32.mrf.mxu0  ;;  %v9119_v3 = vld [vmem:[#allocation8_spill] sm:$0xff] }
 0x169   : > { %v5894_v8 = vpop.f32.mrf.mxu1 }
 0x16a   : > { %v8499_v0 = vadd.f32 %v2639_v18, %v2040_v49  ;;  %v2043_v35 = vadd.f32 %v5894_v8, %v8195_v54  ;;  %v5931_v20 = vpop.f32.mrf.mxu0 }
 0x16b   : > { %v1916_v55 = vpop.f32.mrf.mxu1 }
 0x16c   : > { %v8502_v26 = vadd.f32 %v5928_v13, %v2043_v35  ;;  %v2041_v53 = vadd.f32 %v1916_v55, %v8209_v11  ;;  %v2655_v32 = vpop.f32.mrf.mxu0 }
 0x16d   : > { %v5897_v5 = vpop.f32.mrf.mxu1 }
 0x16e   : > { %v8505_v60 = vadd.f32 %v2642_v58, %v2041_v53  ;;  %v2046_v12 = vadd.f32 %v5897_v5, %v8221_v29  ;;  %v5932_v43 = vpop.f32.mrf.mxu0 }
 0x16f   : > { %v1929_v37 = vpop.f32.mrf.mxu1 }
 0x170   : > { %v8508_v48 = vadd.f32 %v5931_v20, %v2046_v12  ;;  %v2044_v24 = vadd.f32 %v1929_v37, %v8228_v9  ;;  %v2658_v16 = vpop.f32.mrf.mxu0 }
 0x171   : > { %v5898_v54 = vpop.f32.mrf.mxu1 }
 0x172   : > { %v8511_v31 = vadd.f32 %v2655_v32, %v2044_v24  ;;  %v2047_v22 = vadd.f32 %v5898_v54, %v8253_v34  ;;  %v5935_v25 = vpop.f32.mrf.mxu0  ;;  %v9121_v54 = vld [vmem:[#allocation12_spill] sm:$0xff] }
 0x173   : > { %v1932_v11 = vpop.f32.mrf.mxu1 }
 0x174   : > { %v8514_v38 = vadd.f32 %v5932_v43, %v2047_v22  ;;  %v2045_v15 = vadd.f32 %v1932_v11, %v8276_v59  ;;  %v2671_v50 = vpop.f32.mrf.mxu0  ;;  %v9120_v43 = vld [vmem:[#allocation16_spill] sm:$0xff] }
 0x175   : > { %v5901_v29 = vpop.f32.mrf.mxu1 }
 0x176   : > { %v8517_v2 = vadd.f32 %v2658_v16, %v2045_v15  ;;  %v2050_v17 = vadd.f32 %v5901_v29, %v9118_v30  ;;  %v5936_v51 = vpop.f32.mrf.mxu0 }
 0x177   : > { %v1945_v9 = vpop.f32.mrf.mxu1 }
 0x178   : > { %v8520_v27 = vadd.f32 %v5935_v25, %v2050_v17  ;;  %v2048_v19 = vadd.f32 %v1945_v9, %v9119_v3  ;;  %v2674_v33 = vpop.f32.mrf.mxu0 }
 0x179   : > { %v5902_v34 = vpop.f32.mrf.mxu1 }
 0x17a   : > { %v8523_v18 = vadd.f32 %v2671_v50, %v2048_v19  ;;  %v2051_v42 = vadd.f32 %v5902_v34, %v8316_v56  ;;  %v5939_v41 = vpop.f32.mrf.mxu0 }
 0x17b   : > { %v1948_v59 = vpop.f32.mrf.mxu1 }
 0x17c   : > { %v8526_v13 = vadd.f32 %v5936_v51, %v2051_v42  ;;  %v2049_v44 = vadd.f32 %v1948_v59, %v8332_v63  ;;  %v2687_v49 = vpop.f32.mrf.mxu0 }
 0x17d   : > { %v5905_v58 = vpop.f32.mrf.mxu1 }
 0x17e   : > { %v8529_v8 = vadd.f32 %v2674_v33, %v2049_v44  ;;  %v2054_v35 = vadd.f32 %v5905_v58, %v8342_v46  ;;  %v5940_v20 = vpop.f32.mrf.mxu0 }
 0x17f   : > { %v1961_v55 = vpop.f32.mrf.mxu1 }
 0x180   : > { %v8532_v53 = vadd.f32 %v5939_v41, %v2054_v35  ;;  %v2052_v32 = vadd.f32 %v1961_v55, %v8359_v7  ;;  %v2690_v5 = vpop.f32.mrf.mxu0 }
 0x181   : > { %v5906_v56 = vpop.f32.mrf.mxu1 }
 0x182   : > { %v8535_v12 = vadd.f32 %v2687_v49, %v2052_v32  ;;  %v2055_v37 = vadd.f32 %v5906_v56, %v9120_v43  ;;  %v5943_v24 = vpop.f32.mrf.mxu0 }
 0x183   : > { %v1964_v63 = vpop.f32.mrf.mxu1 }
 0x184   : > { %v8538_v16 = vadd.f32 %v5940_v20, %v2055_v37  ;;  %v2053_v22 = vadd.f32 %v1964_v63, %v9121_v54  ;;  %v2703_v25 = vpop.f32.mrf.mxu0 }
 0x185   : > { %v5909_v46 = vpop.f32.mrf.mxu1 }
 0x186   : > { %v8541_v11 = vadd.f32 %v2690_v5, %v2053_v22  ;;  %v2058_v15 = vadd.f32 %v5909_v46, %v8401_v47  ;;  %v5944_v50 = vpop.f32.mrf.mxu0 }
 0x187   : > { %v1977_v7 = vpop.f32.mrf.mxu1 }
 0x188   : > { %v8544_v29 = vadd.f32 %v5943_v24, %v2058_v15  ;;  %v2056_v30 = vadd.f32 %v1977_v7, %v8404_v6  ;;  %v2706_v17 = vpop.f32.mrf.mxu0 }
 0x189   : > { %v5910_v51 = vpop.f32.mrf.mxu1 }
 0x18a   : > { %v8547_v9 = vadd.f32 %v2703_v25, %v2056_v30  ;;  %v2059_v3 = vadd.f32 %v5910_v51, %v8424_v36  ;;  %v5947_v19 = vpop.f32.mrf.mxu0 }
 0x18b   : > { %v1980_v33 = vpop.f32.mrf.mxu1 }
 0x18c   : > { %v8550_v34 = vadd.f32 %v5944_v50, %v2059_v3  ;;  %v2057_v42 = vadd.f32 %v1980_v33, %v8439_v28  ;;  %v2719_v41 = vpop.f32.mrf.mxu0 }
 0x18d   : > { %v5913_v47 = vpop.f32.mrf.mxu1 }
 0x18e   : > { %9122 = vst [vmem:[#allocation2_spill] sm:$0xff] %v8550_v34  ;;  %v8553_v59 = vadd.f32 %v2706_v17, %v2057_v42  ;;  %v2062_v44 = vadd.f32 %v5913_v47, %v8445_v21  ;;  %v5948_v49 = vpop.f32.mrf.mxu0 }
 0x18f   : > { %v1993_v6 = vpop.f32.mrf.mxu1 }
 0x190   : > { %9123 = vst [vmem:[#allocation14_spill] sm:$0xff] %v8553_v59  ;;  %v8556_v58 = vadd.f32 %v5947_v19, %v2062_v44  ;;  %v2060_v35 = vadd.f32 %v1993_v6, %v8448_v10  ;;  %v2722_v20 = vpop.f32.mrf.mxu0 }
 0x191   : > { %v5914_v36 = vpop.f32.mrf.mxu1 }
 0x192   : > { %9124 = vst [vmem:[#allocation19_spill] sm:$0xff] %v8556_v58  ;;  %v8559_v55 = vadd.f32 %v2719_v41, %v2060_v35  ;;  %v2063_v32 = vadd.f32 %v5914_v36, %v8457_v4  ;;  %v5951_v5 = vpop.f32.mrf.mxu0 }
 0x193   : > { %v1996_v28 = vpop.f32.mrf.mxu1 }
 0x194   : > { %9125 = vst [vmem:[#allocation9_spill] sm:$0xff] %v8559_v55  ;;  %v8562_v56 = vadd.f32 %v5948_v49, %v2063_v32  ;;  %v2061_v43 = vadd.f32 %v1996_v28, %v8464_v1  ;;  %v2735_v37 = vpop.f32.mrf.mxu0 }
 0x195   : > { %v5917_v21 = vpop.f32.mrf.mxu1 }
 0x196   : > { %9126 = vst [vmem:[#allocation18_spill] sm:$0xff] %v8562_v56  ;;  %v8565_v24 = vadd.f32 %v2722_v20, %v2061_v43  ;;  %v2066_v63 = vadd.f32 %v5917_v21, %v8470_v23  ;;  %v5952_v54 = vpop.f32.mrf.mxu0 }
 0x197   : > { %v2009_v10 = vpop.f32.mrf.mxu1 }
 0x198   : > { %9127 = vst [vmem:[#allocation21_spill] sm:$0xff] %v8565_v24  ;;  %v8568_v22 = vadd.f32 %v5951_v5, %v2066_v63  ;;  %v2064_v25 = vadd.f32 %v2009_v10, %v8473_v57  ;;  %v2738_v46 = vpop.f32.mrf.mxu0 }
 0x199   : > { %v5918_v4 = vpop.f32.mrf.mxu1 }
 0x19a   : > { %9128 = vst [vmem:[#allocation23_spill] sm:$0xff] %v8568_v22  ;;  %v8571_v15 = vadd.f32 %v2735_v37, %v2064_v25  ;;  %v2067_v50 = vadd.f32 %v5918_v4, %v8477_v52  ;;  %v5955_v7 = vpop.f32.mrf.mxu0 }
 0x19b   : > { %v2012_v1 = vpop.f32.mrf.mxu1 }
 0x19c   : > { %9129 = vst [vmem:[#allocation25_spill] sm:$0xff] %v8571_v15  ;;  %v8574_v30 = vadd.f32 %v5952_v54, %v2067_v50  ;;  %v2065_v17 = vadd.f32 %v2012_v1, %v8481_v14  ;;  %v2751_v51 = vpop.f32.mrf.mxu0 }
 0x19d   : > { %v5921_v23 = vpop.f32.mrf.mxu1 }
 0x19e   : > { %9130 = vst [vmem:[#allocation4_spill] sm:$0xff] %v8574_v30  ;;  %v8577_v3 = vadd.f32 %v2738_v46, %v2065_v17  ;;  %v2070_v19 = vadd.f32 %v5921_v23, %v8484_v39  ;;  %v5956_v33 = vpop.f32.mrf.mxu0 }
 0x19f   : > { %v2025_v57 = vpop.f32.mrf.mxu1 }
 0x1a0   : > { %9131 = vst [vmem:[#allocation3_spill] sm:$0xff] %v8577_v3  ;;  %v8580_v42 = vadd.f32 %v5955_v7, %v2070_v19  ;;  %v2068_v41 = vadd.f32 %v2025_v57, %v8487_v45  ;;  %v2754_v47 = vpop.f32.mrf.mxu0 }
 0x1a1   : > { %v5922_v52 = vpop.f32.mrf.mxu1 }
 0x1a2   : > { %9132 = vst [vmem:[#allocation6_spill] sm:$0xff] %v8580_v42  ;;  %v8583_v44 = vadd.f32 %v2751_v51, %v2068_v41  ;;  %v2071_v49 = vadd.f32 %v5922_v52, %v8490_v61  ;;  %v8586_v6 = vpop.f32.mrf.mxu0 }
 0x1a3   : > { %v2028_v14 = vpop.f32.mrf.mxu1 }
 0x1a4   : > { %9133 = vst [vmem:[#allocation5_spill] sm:$0xff] %v8583_v44  ;;  %v8588_v35 = vadd.f32 %v5956_v33, %v2071_v49  ;;  %v2069_v20 = vadd.f32 %v2028_v14, %v8493_v40  ;;  %v8591_v39 = vpop.f32.mrf.mxu0 }
 0x1a5   : > { %v5961_v36 = vpop.f32.mrf.mxu1 }
 0x1a6   : > { %9134 = vst [vmem:[#allocation7_spill] sm:$0xff] %v8588_v35  ;;  %v8593_v32 = vadd.f32 %v2754_v47, %v2069_v20  ;;  %v8595_v5 = vpop.f32.mrf.mxu0 }
 0x1a7   : > { %v3109_v45 = vpop.f32.mrf.mxu1 }
 0x1a8   : > { %9135 = vst [vmem:[#allocation10_spill] sm:$0xff] %v8593_v32  ;;  %v8597_v28 = vpop.f32.mrf.mxu0 }
 0x1a9   : > { %v5962_v43 = vpop.f32.mrf.mxu1 }
 0x1aa   : > { %v8599_v37 = vpop.f32.mrf.mxu0 }
 0x1ab   : > { %v8601_v61 = vpop.f32.mrf.mxu1 }
 0x1ac   : > { %v8603_v21 = vpop.f32.mrf.mxu0 }
 0x1ad   : > { %v8605_v63 = vpop.f32.mrf.mxu1 }
 0x1ae   : > { %v8607_v40 = vpop.f32.mrf.mxu0 }
 0x1af   : > { %v8609_v54 = vpop.f32.mrf.mxu1 }
 0x1b0   : > { %v8611_v10 = vpop.f32.mrf.mxu0 }
 0x1b1   : > { %v8613_v25 = vpop.f32.mrf.mxu1 }
 0x1b2   : > { %v8615_v46 = vpop.f32.mrf.mxu0 }
 0x1b3   : > { %v8617_v4 = vpop.f32.mrf.mxu1 }
 0x1b4   : > { %v8619_v50 = vpop.f32.mrf.mxu0 }
 0x1b5   : > { %v8621_v7 = vpop.f32.mrf.mxu1 }
 0x1b6   : > { %v8623_v1 = vpop.f32.mrf.mxu0 }
 0x1b7   : > { %v8625_v17 = vpop.f32.mrf.mxu1 }
 0x1b8   : > { %v8627_v51 = vpop.f32.mrf.mxu0 }
 0x1b9   : > { %v8629_v23 = vpop.f32.mrf.mxu1 }
 0x1ba   : > { %v8631_v19 = vpop.f32.mrf.mxu0 }
 0x1bb   : > { %v8633_v33 = vpop.f32.mrf.mxu1 }
 0x1bc   : > { %v8635_v57 = vpop.f32.mrf.mxu0 }
 0x1bd   : > { %v8637_v41 = vpop.f32.mrf.mxu1 }
 0x1be   : > { %v8639_v47 = vpop.f32.mrf.mxu0 }
 0x1bf   : > { %v8641_v52 = vpop.f32.mrf.mxu1 }
 0x1c0   : > { %v8643_v49 = vpop.f32.mrf.mxu0 }
 0x1c1   : > { %v8645_v14 = vpop.f32.mrf.mxu1 }
 0x1c2   : > { %v8647_v20 = vpop.f32.mrf.mxu0 }
 0x1c3   : > { %9136 = vst [vmem:[#allocation13_spill] sm:$0xff] %v8647_v20  ;;  %v8649_v32 = vpop.f32.mrf.mxu1 }
 0x1c4   : > { %v8651_v35 = vpop.f32.mrf.mxu0 }
 0x1c5   : > { %9137 = vst [vmem:[#allocation15_spill] sm:$0xff] %v8651_v35  ;;  %v8653_v44 = vpop.f32.mrf.mxu1 }
 0x1c6   : > { %v8655_v42 = vpop.f32.mrf.mxu0 }
 0x1c7   : > { %9138 = vst [vmem:[#allocation17_spill] sm:$0xff] %v8655_v42  ;;  %v8657_v3 = vpop.f32.mrf.mxu1 }
 0x1c8   : > { %v8659_v30 = vpop.f32.mrf.mxu0 }
 0x1c9   : > { %9139 = vst [vmem:[#allocation20_spill] sm:$0xff] %v8659_v30  ;;  %v8661_v15 = vpop.f32.mrf.mxu1 }
 0x1ca   : > { %9140 = vst [vmem:[#allocation22_spill] sm:$0xff] %v8661_v15  ;;  %v8663_v22 = vpop.f32.mrf.mxu0 }
 0x1cb   : > { %9141 = vst [vmem:[#allocation24_spill] sm:$0xff] %v8663_v22  ;;  %v8665_v24 = vpop.f32.mrf.mxu1 }
 0x1cc   : > { %9142 = vst [vmem:[#allocation11_spill] sm:$0xff] %v8665_v24  ;;  %v8667_v56 = vpop.f32.mrf.mxu0 }
 0x1cd   : > { %9143 = vst [vmem:[#allocation8_spill] sm:$0xff] %v8667_v56  ;;  %v8669_v55 = vpop.f32.mrf.mxu1 }
 0x1ce   : > { %9144 = vst [vmem:[#allocation16_spill] sm:$0xff] %v8669_v55  ;;  %v8671_v58 = vpop.f32.mrf.mxu0 }
 0x1cf   : > { %9145 = vst [vmem:[#allocation12_spill] sm:$0xff] %v8671_v58  ;;  %v8673_v59 = vpop.f32.mrf.mxu1 }
 0x1d0   : > { %9146 = vst [vmem:[#allocation26_spill] sm:$0xff] %v8673_v59  ;;  %v8675_v35 = vpop.f32.mrf.mxu0 }
 0x1d1   : > { %9147 = vst [vmem:[#allocation27_spill] sm:$0xff] %v8675_v35  ;;  %v8677_v42 = vpop.f32.mrf.mxu1 }
 0x1d2   : > { %9148 = vst [vmem:[#allocation28_spill] sm:$0xff] %v8677_v42  ;;  %v8679_v34 = vpop.f32.mrf.mxu0 }
 0x1d3   : > { %9149 = vst [vmem:[#allocation29_spill] sm:$0xff] %v8679_v34  ;;  %v8681_v30 = vpop.f32.mrf.mxu1 }
 0x1d4   : > { %9150 = vst [vmem:[#allocation30_spill] sm:$0xff] %v8681_v30  ;;  %v8683_v15 = vpop.f32.mrf.mxu0 }
 0x1d5   : > { %9151 = vst [vmem:[#allocation31_spill] sm:$0xff] %v8683_v15  ;;  %v8685_v22 = vpop.f32.mrf.mxu1 }
 0x1d6   : > { %9152 = vst [vmem:[#allocation32_spill] sm:$0xff] %v8685_v22  ;;  %v8687_v24 = vpop.f32.mrf.mxu0 }
 0x1d7   : > { %9153 = vst [vmem:[#allocation33_spill] sm:$0xff] %v8687_v24  ;;  %v8689_v56 = vpop.f32.mrf.mxu1  ;;  %v3238_v24 = vadd.f32 %v5961_v36, %v8496_v62  ;;  %v3237_v62 = vadd.f32 %v8601_v61, %v8505_v60  ;;  %v8733_v60 = vld [vmem:[%s8930_s3] ss:$0 sm:$0xff] }
 0x1d8   : > { %9154 = vst [vmem:[#allocation34_spill] sm:$0xff] %v8689_v56  ;;  %v8691_v55 = vpop.f32.mrf.mxu0 }
 0x1d9   : > { %9155 = vst [vmem:[#allocation35_spill] sm:$0xff] %v8691_v55  ;;  %v8693_v58 = vpop.f32.mrf.mxu1  ;;  %v3236_v55 = vadd.f32 %v3109_v45, %v8499_v0  ;;  %v8723_v0 = vld [vmem:[%s8929_s2] ss:$0 sm:$0xff] }
 0x1da   : > { %9156 = vst [vmem:[#allocation36_spill] sm:$0xff] %v8693_v58  ;;  %v8695_v59 = vpop.f32.mrf.mxu0 }
 0x1db   : > { %9157 = vst [vmem:[#allocation37_spill] sm:$0xff] %v8695_v59  ;;  %v8697_v35 = vpop.f32.mrf.mxu1 }
 0x1dc   : > { %9158 = vst [vmem:[#allocation38_spill] sm:$0xff] %v8697_v35  ;;  %v8699_v42 = vpop.f32.mrf.mxu0  ;;  %v3597_v35 = vadd.f32 %v8586_v6, %v3238_v24 }
 0x1dd   : > { %9159 = vst [vmem:[#allocation39_spill] sm:$0xff] %v8699_v42  ;;  %v8701_v34 = vpop.f32.mrf.mxu1  ;;  %v3239_v42 = vadd.f32 %v5962_v43, %v8502_v26 }
 0x1de   : > { %9160 = vst [vmem:[#allocation40_spill] sm:$0xff] %v8701_v34  ;;  %v8703_v30 = vpop.f32.mrf.mxu0 }
 0x1df   : > { %9161 = vst [vmem:[#allocation41_spill] sm:$0xff] %v8703_v30  ;;  %v8705_v15 = vpop.f32.mrf.mxu1  ;;  %v3595_v30 = vadd.f32 %v8591_v39, %v3236_v55  ;;  %v3598_v24 = vadd.f32 %v8595_v5, %v3239_v42  ;;  %v3240_v55 = vadd.f32 %v8609_v54, %v8511_v31  ;;  %v3596_v39 = vadd.f32 %v8597_v28, %v3237_v62 }
 0x1e0   : > { %v8708_v22 = vpop.f32.mrf.mxu0 }
 0x1e1   : > { %9162 = vst [vmem:[#allocation42_spill] sm:$0xff] %v8708_v22  ;;  %v8710_v56 = vpop.f32.mrf.mxu1  ;;  %v3599_v28 = vadd.f32 %v8603_v21, %v3240_v55 }
 0x1e2   : > { %v6063_v58 = vpop.f32.mrf.mxu0 }
 0x1e3   : > { %v8713_v59 = vpop.f32.mrf.mxu1 }
 0x1e4   : > { %9163 = vst [vmem:[#allocation43_spill] sm:$0xff] %v8713_v59  ;;  %v4664_v34 = vpop.f32.mrf.mxu0  ;;  %v3242_v59 = vadd.f32 %v8605_v63, %v8508_v48  ;;  %v3243_v48 = vadd.f32 %v8613_v25, %v8514_v38 }
 0x1e5   : > { %v6029_v20 = vpop.f32.mrf.mxu1 }
 0x1e6   : > { %v4323_v36 = vadd.f32 %v6029_v20, %v3597_v35  ;;  %v6064_v22 = vpop.f32.mrf.mxu0 }
 0x1e7   : > { %v4194_v45 = vpop.f32.mrf.mxu1 }
 0x1e8   : > { %v4793_v6 = vadd.f32 %v6063_v58, %v4323_v36  ;;  %v4321_v26 = vadd.f32 %v4194_v45, %v3595_v30  ;;  %v4667_v43 = vpop.f32.mrf.mxu0  ;;  %v3601_v45 = vadd.f32 %v8599_v37, %v3242_v59  ;;  %v3602_v37 = vadd.f32 %v8607_v40, %v3243_v48 }
 0x1e9   : > { %v6030_v35 = vpop.f32.mrf.mxu1 }
 0x1ea   : > { %v4832_v42 = vmul.f32 %v8723_v0, %v4793_v6  ;;  %v4791_v58 = vadd.f32 %v4664_v34, %v4321_v26  ;;  %v4324_v30 = vadd.f32 %v6030_v35, %v3598_v24  ;;  %v6067_v5 = vpop.f32.mrf.mxu0  ;;  %v3241_v34 = vadd.f32 %v8617_v4, %v8517_v2 }
 0x1eb   : > { %v4197_v61 = vpop.f32.mrf.mxu1  ;;  %v3246_v2 = vadd.f32 %v8621_v7, %v8520_v27 }
 0x1ec   : > { %v4871_v31 = vadd.f32 %v8733_v60, %v4832_v42  ;;  %v4830_v63 = vmul.f32 %v8723_v0, %v4791_v58  ;;  %v4794_v54 = vadd.f32 %v6064_v22, %v4324_v30  ;;  %v4322_v20 = vadd.f32 %v4197_v61, %v3596_v39  ;;  %v4680_v36 = vpop.f32.mrf.mxu0 }
 0x1ed   : > { %v6033_v38 = vpop.f32.mrf.mxu1  ;;  %v3600_v42 = vadd.f32 %v8611_v10, %v3241_v34  ;;  %v3605_v61 = vadd.f32 %v8615_v46, %v3246_v2  ;;  %v3245_v34 = vadd.f32 %v8633_v33, %v8529_v8  ;;  %v3250_v8 = vadd.f32 %v8637_v41, %v8532_v53 }
 0x1ee   : > { %v4903_v25 = vmax.f32 %v4871_v31, 0.0  ;;  %v4869_v62 = vadd.f32 %v8733_v60, %v4830_v63  ;;  %v4833_v22 = vmul.f32 %v8723_v0, %v4794_v54  ;;  %v4792_v24 = vadd.f32 %v4667_v43, %v4322_v20  ;;  %v6068_v59 = vpop.f32.mrf.mxu0 }
 0x1ef   : > { %v4327_v21 = vadd.f32 %v6033_v38, %v3601_v45  ;;  %v4210_v4 = vpop.f32.mrf.mxu1  ;;  %v3244_v31 = vadd.f32 %v8625_v17, %v8523_v18  ;;  %v3247_v63 = vadd.f32 %v8629_v23, %v8526_v13 }
 0x1f0   : > { %4935 = vst [vmem:[%s8749_s25 + $0x10] sm:$0xff] %v4903_v25  ;;  %v4901_v6 = vmax.f32 %v4869_v62, 0.0  ;;  %v4872_v26 = vadd.f32 %v8733_v60, %v4833_v22  ;;  %v4831_v55 = vmul.f32 %v8723_v0, %v4792_v24  ;;  %v4325_v35 = vadd.f32 %v4210_v4, %v3599_v28  ;;  %v4683_v39 = vpop.f32.mrf.mxu0 }
 0x1f1   : > { %v4797_v43 = vadd.f32 %v6067_v5, %v4327_v21  ;;  %v6034_v58 = vpop.f32.mrf.mxu1  ;;  %v3603_v62 = vadd.f32 %v8619_v50, %v3244_v31  ;;  %v3606_v22 = vadd.f32 %v8623_v1, %v3247_v63  ;;  %v3248_v50 = vadd.f32 %v8641_v52, %v8535_v12 }
 0x1f2   : > { %4933 = vst [vmem:[%s8749_s25] sm:$0xff] %v4901_v6  ;;  %v4904_v40 = vmax.f32 %v4872_v26, 0.0  ;;  %v4870_v30 = vadd.f32 %v8733_v60, %v4831_v55  ;;  %v4795_v27 = vadd.f32 %v4680_v36, %v4325_v35  ;;  %v4328_v7 = vadd.f32 %v6034_v58, %v3602_v37  ;;  %v6071_v48 = vpop.f32.mrf.mxu0 }
 0x1f3   : > { %v4836_v10 = vmul.f32 %v8723_v0, %v4797_v43  ;;  %v4213_v5 = vpop.f32.mrf.mxu1  ;;  %v3604_v6 = vadd.f32 %v8627_v51, %v3245_v34 }
 0x1f4   : > { %4936 = vst [vmem:[%s8749_s25 + $0x18] sm:$0xff] %v4904_v40  ;;  %v4902_v54 = vmax.f32 %v4870_v30, 0.0  ;;  %v4834_v20 = vmul.f32 %v8723_v0, %v4795_v27  ;;  %v4798_v45 = vadd.f32 %v6068_v59, %v4328_v7  ;;  %v4326_v36 = vadd.f32 %v4213_v5, %v3600_v42  ;;  %v4696_v28 = vpop.f32.mrf.mxu0 }
 0x1f5   : > { %v4875_v46 = vadd.f32 %v8733_v60, %v4836_v10  ;;  %v6037_v38 = vpop.f32.mrf.mxu1  ;;  %v3609_v42 = vadd.f32 %v8631_v19, %v3250_v8  ;;  %v3607_v27 = vadd.f32 %v8635_v57, %v3248_v50  ;;  %v3251_v7 = vadd.f32 %v8645_v14, %v8538_v16  ;;  %v9166_v8 = vld [vmem:[#allocation22_spill] sm:$0xff] }
 0x1f6   : > { %4934 = vst [vmem:[%s8749_s25 + $0x8] sm:$0xff] %v4902_v54  ;;  %v4873_v18 = vadd.f32 %v8733_v60, %v4834_v20  ;;  %v4837_v13 = vmul.f32 %v8723_v0, %v4798_v45  ;;  %v4796_v17 = vadd.f32 %v4683_v39, %v4326_v36  ;;  %v4331_v23 = vadd.f32 %v6037_v38, %v3605_v61  ;;  %v6072_v25 = vpop.f32.mrf.mxu0 }
 0x1f7   : > { %v4907_v33 = vmax.f32 %v4875_v46, 0.0  ;;  %v4226_v24 = vpop.f32.mrf.mxu1  ;;  %v3254_v20 = vadd.f32 %v8653_v44, %v8544_v29  ;;  %v3252_v29 = vadd.f32 %v8657_v3, %v8547_v9 }
 0x1f8   : > { %v4905_v59 = vmax.f32 %v4873_v18, 0.0  ;;  %v4876_v37 = vadd.f32 %v8733_v60, %v4837_v13  ;;  %v4835_v2 = vmul.f32 %v8723_v0, %v4796_v17  ;;  %v4801_v21 = vadd.f32 %v6071_v48, %v4331_v23  ;;  %v4699_v4 = vpop.f32.mrf.mxu0 }
 0x1f9   : > { %4939 = vst [vmem:[%s8749_s25 + $0x30] sm:$0xff] %v4907_v33  ;;  %v4329_v1 = vadd.f32 %v4226_v24, %v3603_v62  ;;  %v6038_v26 = vpop.f32.mrf.mxu1  ;;  %v3249_v48 = vadd.f32 %v8649_v32, %v8541_v11 }
 0x1fa   : > { %4937 = vst [vmem:[%s8749_s25 + $0x20] sm:$0xff] %v4905_v59  ;;  %v4908_v53 = vmax.f32 %v4876_v37, 0.0  ;;  %v4874_v41 = vadd.f32 %v8733_v60, %v4835_v2  ;;  %v4840_v55 = vmul.f32 %v8723_v0, %v4801_v21  ;;  %v4332_v35 = vadd.f32 %v6038_v26, %v3606_v22  ;;  %v6075_v39 = vpop.f32.mrf.mxu0  ;;  %v9165_v22 = vld [vmem:[#allocation2_spill] sm:$0xff]  ;;  %v9167_v2 = vld [vmem:[#allocation15_spill] sm:$0xff] }
 0x1fb   : > { %v4799_v43 = vadd.f32 %v4696_v28, %v4329_v1  ;;  %v4229_v58 = vpop.f32.mrf.mxu1  ;;  %v3610_v28 = vadd.f32 %v8639_v47, %v3251_v7  ;;  %v3608_v34 = vadd.f32 %v8643_v49, %v3249_v48  ;;  %v3255_v47 = vadd.f32 %v9166_v8, %v9165_v22  ;;  %v9180_v22 = vld [vmem:[#allocation21_spill] sm:$0xff]  ;;  %v9181_v8 = vld [vmem:[#allocation30_spill] sm:$0xff] }
 0x1fc   : > { %4940 = vst [vmem:[%s8749_s25 + $0x38] sm:$0xff] %v4908_v53  ;;  %v4906_v51 = vmax.f32 %v4874_v41, 0.0  ;;  %v4879_v12 = vadd.f32 %v8733_v60, %v4840_v55  ;;  %v4802_v52 = vadd.f32 %v6072_v25, %v4332_v35  ;;  %v4330_v40 = vadd.f32 %v4229_v58, %v3604_v6  ;;  %v4712_v30 = vpop.f32.mrf.mxu0  ;;  %v9164_v25 = vld [vmem:[#allocation13_spill] sm:$0xff]  ;;  %v9171_v58 = vld [vmem:[#allocation19_spill] sm:$0xff] }
 0x1fd   : > { %v4838_v19 = vmul.f32 %v8723_v0, %v4799_v43  ;;  %v6041_v61 = vpop.f32.mrf.mxu1  ;;  %v3613_v62 = vadd.f32 %v9164_v25, %v3254_v20  ;;  %v3611_v21 = vadd.f32 %v9167_v2, %v3252_v29  ;;  %v9168_v55 = vld [vmem:[#allocation17_spill] sm:$0xff]  ;;  %v9179_v25 = vld [vmem:[#allocation8_spill] sm:$0xff] }
 0x1fe   : > { %4938 = vst [vmem:[%s8749_s25 + $0x28] sm:$0xff] %v4906_v51  ;;  %v4911_v31 = vmax.f32 %v4879_v12, 0.0  ;;  %v4841_v63 = vmul.f32 %v8723_v0, %v4802_v52  ;;  %v4800_v10 = vadd.f32 %v4699_v4, %v4330_v40  ;;  %v4335_v5 = vadd.f32 %v6041_v61, %v3609_v42  ;;  %v6076_v54 = vpop.f32.mrf.mxu0  ;;  %v9170_v42 = vld [vmem:[#allocation11_spill] sm:$0xff]  ;;  %v9172_v51 = vld [vmem:[#allocation16_spill] sm:$0xff]  ;;  %v9173_v61 = vld [vmem:[#allocation9_spill] sm:$0xff] }
 0x1ff   : > { %v4877_v57 = vadd.f32 %v8733_v60, %v4838_v19  ;;  %v4242_v45 = vpop.f32.mrf.mxu1  ;;  %v3614_v35 = vadd.f32 %v9168_v55, %v3255_v47  ;;  %v3258_v12 = vadd.f32 %v9172_v51, %v9171_v58  ;;  %v3257_v47 = vadd.f32 %v9181_v8, %v9180_v22  ;;  %v9182_v2 = vld [vmem:[#allocation12_spill] sm:$0xff]  ;;  %v9183_v55 = vld [vmem:[#allocation27_spill] sm:$0xff]  ;;  %v9186_v58 = vld [vmem:[#allocation25_spill] sm:$0xff] }
 0x200   : > { %4943 = vst [vmem:[%s8749_s25 + $0x50] sm:$0xff] %v4911_v31  ;;  %v4880_v16 = vadd.f32 %v8733_v60, %v4841_v63  ;;  %v4839_v11 = vmul.f32 %v8723_v0, %v4800_v10  ;;  %v4805_v32 = vadd.f32 %v6075_v39, %v4335_v5  ;;  %v4333_v14 = vadd.f32 %v4242_v45, %v3607_v27  ;;  %v4715_v36 = vpop.f32.mrf.mxu0  ;;  %v9169_v39 = vld [vmem:[#allocation14_spill] sm:$0xff]  ;;  %v9196_v8 = vld [vmem:[#allocation40_spill] sm:$0xff] }
 0x201   : > { %v4909_v44 = vmax.f32 %v4877_v57, 0.0  ;;  %v6042_v46 = vpop.f32.mrf.mxu1  ;;  %v3253_v43 = vadd.f32 %v9170_v42, %v9169_v39  ;;  %v9174_v31 = vld [vmem:[#allocation26_spill] sm:$0xff]  ;;  %v9184_v39 = vld [vmem:[#allocation23_spill] sm:$0xff]  ;;  %v9185_v42 = vld [vmem:[#allocation32_spill] sm:$0xff] }
 0x202   : > { %v4912_v38 = vmax.f32 %v4880_v16, 0.0  ;;  %v4878_v18 = vadd.f32 %v8733_v60, %v4839_v11  ;;  %v4844_v13 = vmul.f32 %v8723_v0, %v4805_v32  ;;  %v4803_v17 = vadd.f32 %v4712_v30, %v4333_v14  ;;  %v6079_v23 = vpop.f32.mrf.mxu0  ;;  %v9175_v11 = vld [vmem:[#allocation20_spill] sm:$0xff]  ;;  %v9187_v51 = vld [vmem:[#allocation34_spill] sm:$0xff] }
 0x203   : > { %4941 = vst [vmem:[%s8749_s25 + $0x40] sm:$0xff] %v4909_v44  ;;  %v4336_v49 = vadd.f32 %v6042_v46, %v3610_v28  ;;  %v4245_v33 = vpop.f32.mrf.mxu1  ;;  %v3256_v63 = vadd.f32 %v9174_v31, %v9173_v61  ;;  %v3612_v32 = vadd.f32 %v9175_v11, %v3253_v43  ;;  %v9176_v14 = vld [vmem:[#allocation24_spill] sm:$0xff]  ;;  %v9177_v28 = vld [vmem:[#allocation18_spill] sm:$0xff]  ;;  %v3262_v43 = vadd.f32 %v9185_v42, %v9184_v39  ;;  %v9190_v11 = vld [vmem:[#allocation29_spill] sm:$0xff] }
 0x204   : > { %4944 = vst [vmem:[%s8749_s25 + $0x58] sm:$0xff] %v4912_v38  ;;  %v4910_v9 = vmax.f32 %v4878_v18, 0.0  ;;  %v4883_v3 = vadd.f32 %v8733_v60, %v4844_v13  ;;  %v4842_v24 = vmul.f32 %v8723_v0, %v4803_v17  ;;  %v4334_v59 = vadd.f32 %v4245_v33, %v3608_v34  ;;  %v4728_v37 = vpop.f32.mrf.mxu0  ;;  %v9178_v34 = vld [vmem:[#allocation28_spill] sm:$0xff]  ;;  %v9195_v22 = vld [vmem:[#allocation6_spill] sm:$0xff]  ;;  %v9199_v39 = vld [vmem:[#allocation5_spill] sm:$0xff] }
 0x205   : > { %v4806_v4 = vadd.f32 %v6076_v54, %v4336_v49  ;;  %v6045_v6 = vpop.f32.mrf.mxu1  ;;  %v3259_v29 = vadd.f32 %v9178_v34, %v9177_v28  ;;  %v9188_v61 = vld [vmem:[#allocation4_spill] sm:$0xff]  ;;  %v9192_v28 = vld [vmem:[#allocation3_spill] sm:$0xff]  ;;  %v9193_v34 = vld [vmem:[#allocation38_spill] sm:$0xff]  ;;  %v3264_v42 = vadd.f32 %v8705_v15, %v9199_v39 }
 0x206   : > { %4942 = vst [vmem:[%s8749_s25 + $0x48] sm:$0xff] %v4910_v9  ;;  %v4915_v50 = vmax.f32 %v4883_v3, 0.0  ;;  %v4881_v1 = vadd.f32 %v8733_v60, %v4842_v24  ;;  %v4804_v26 = vadd.f32 %v4715_v36, %v4334_v59  ;;  %v4339_v53 = vadd.f32 %v6045_v6, %v3613_v62  ;;  %v6080_v41 = vpop.f32.mrf.mxu0  ;;  %v9189_v31 = vld [vmem:[#allocation36_spill] sm:$0xff] }
 0x207   : > { %v4845_v52 = vmul.f32 %v8723_v0, %v4806_v4  ;;  %v4258_v40 = vpop.f32.mrf.mxu1  ;;  %v3617_v36 = vadd.f32 %v9176_v14, %v3258_v12  ;;  %v3615_v62 = vadd.f32 %v9179_v25, %v3256_v63  ;;  %v3260_v12 = vadd.f32 %v9187_v51, %v9186_v58  ;;  %v9191_v14 = vld [vmem:[#allocation31_spill] sm:$0xff]  ;;  %v9194_v25 = vld [vmem:[#allocation33_spill] sm:$0xff] }
 0x208   : > { %4947 = vst [vmem:[%s8749_s25 + $0x70] sm:$0xff] %v4915_v50  ;;  %v4913_v30 = vmax.f32 %v4881_v1, 0.0  ;;  %v4843_v27 = vmul.f32 %v8723_v0, %v4804_v26  ;;  %v4809_v7 = vadd.f32 %v6079_v23, %v4339_v53  ;;  %v4337_v48 = vadd.f32 %v4258_v40, %v3611_v21  ;;  %v4731_v19 = vpop.f32.mrf.mxu0 }
 0x209   : > { %v4884_v10 = vadd.f32 %v8733_v60, %v4845_v52  ;;  %v6046_v5 = vpop.f32.mrf.mxu1  ;;  %v3618_v21 = vadd.f32 %v9182_v2, %v3259_v29  ;;  %v3263_v63 = vadd.f32 %v9189_v31, %v9188_v61  ;;  %v3261_v29 = vadd.f32 %v9193_v34, %v9192_v28  ;;  %v9197_v2 = vld [vmem:[#allocation35_spill] sm:$0xff]  ;;  %v9205_v34 = vld [vmem:[#allocation42_spill] sm:$0xff] }
 0x20a   : > { %4945 = vst [vmem:[%s8749_s25 + $0x60] sm:$0xff] %v4913_v30  ;;  %v4882_v54 = vadd.f32 %v8733_v60, %v4843_v27  ;;  %v4848_v20 = vmul.f32 %v8723_v0, %v4809_v7  ;;  %v4807_v57 = vadd.f32 %v4728_v37, %v4337_v48  ;;  %v4340_v45 = vadd.f32 %v6046_v5, %v3614_v35 }
 0x20b   : > { %v6083_v16 = vpop.f32.mrf.mxu0  ;;  %v4916_v44 = vmax.f32 %v4884_v10, 0.0  ;;  %v4261_v46 = vpop.f32.mrf.mxu1  ;;  %v3616_v35 = vadd.f32 %v9183_v55, %v3257_v47  ;;  %v3266_v47 = vadd.f32 %v9196_v8, %v9195_v22  ;;  %v9198_v55 = vld [vmem:[#allocation37_spill] sm:$0xff] }
 0x20c   : > { %v4914_v38 = vmax.f32 %v4882_v54, 0.0  ;;  %v4887_v18 = vadd.f32 %v8733_v60, %v4848_v20  ;;  %v4846_v13 = vmul.f32 %v8723_v0, %v4807_v57  ;;  %v4810_v17 = vadd.f32 %v6080_v41, %v4340_v45 }
 0x20d   : > { %v4744_v23 = vpop.f32.mrf.mxu0  ;;  %4948 = vst [vmem:[%s8749_s25 + $0x78] sm:$0xff] %v4916_v44  ;;  %v4338_v49 = vadd.f32 %v4261_v46, %v3612_v32  ;;  %v6049_v33 = vpop.f32.mrf.mxu1  ;;  %v3621_v32 = vadd.f32 %v9190_v11, %v3262_v43  ;;  %v9200_v43 = vld [vmem:[#allocation7_spill] sm:$0xff] }
 0x20e   : > { %4946 = vst [vmem:[%s8749_s25 + $0x68] sm:$0xff] %v4914_v38  ;;  %v4919_v9 = vmax.f32 %v4887_v18, 0.0  ;;  %v4885_v3 = vadd.f32 %v8733_v60, %v4846_v13  ;;  %v4849_v24 = vmul.f32 %v8723_v0, %v4810_v17  ;;  %v4343_v59 = vadd.f32 %v6049_v33, %v3617_v36 }
 0x20f   : > { %v6084_v37 = vpop.f32.mrf.mxu0  ;;  %v4808_v4 = vadd.f32 %v4731_v19, %v4338_v49  ;;  %v4274_v6 = vpop.f32.mrf.mxu1  ;;  %v3619_v36 = vadd.f32 %v9191_v14, %v3260_v12  ;;  %v3267_v58 = vadd.f32 %v8710_v56, %v9200_v43 }
 0x210   : > { %4951 = vst [vmem:[%s8749_s25 + $0x90] sm:$0xff] %v4919_v9  ;;  %v4917_v50 = vmax.f32 %v4885_v3, 0.0  ;;  %v4888_v1 = vadd.f32 %v8733_v60, %v4849_v24  ;;  %v4813_v26 = vadd.f32 %v6083_v16, %v4343_v59  ;;  %v4341_v53 = vadd.f32 %v4274_v6, %v3615_v62 }
 0x211   : > { %v4747_v41 = vpop.f32.mrf.mxu0  ;;  %v4847_v52 = vmul.f32 %v8723_v0, %v4808_v4  ;;  %v6050_v40 = vpop.f32.mrf.mxu1  ;;  %v3622_v62 = vadd.f32 %v9194_v25, %v3263_v63 }
 0x212   : > { %4949 = vst [vmem:[%s8749_s25 + $0x80] sm:$0xff] %v4917_v50  ;;  %v4920_v30 = vmax.f32 %v4888_v1, 0.0  ;;  %v4852_v27 = vmul.f32 %v8723_v0, %v4813_v26  ;;  %v4811_v7 = vadd.f32 %v4744_v23, %v4341_v53  ;;  %v4344_v48 = vadd.f32 %v6050_v40, %v3618_v21 }
 0x213   : > { %v6087_v19 = vpop.f32.mrf.mxu0  ;;  %v4886_v10 = vadd.f32 %v8733_v60, %v4847_v52  ;;  %v4277_v5 = vpop.f32.mrf.mxu1  ;;  %v3620_v21 = vadd.f32 %v9197_v2, %v3261_v29 }
 0x214   : > { %4952 = vst [vmem:[%s8749_s25 + $0x98] sm:$0xff] %v4920_v30  ;;  %v4891_v54 = vadd.f32 %v8733_v60, %v4852_v27  ;;  %v4850_v20 = vmul.f32 %v8723_v0, %v4811_v7  ;;  %v4814_v57 = vadd.f32 %v6084_v37, %v4344_v48  ;;  %v4342_v45 = vadd.f32 %v4277_v5, %v3616_v35  ;;  %v9201_v7 = vld [vmem:[#allocation10_spill] sm:$0xff]  ;;  %v9202_v48 = vld [vmem:[#allocation43_spill] sm:$0xff] }
 0x215   : > { %v4760_v16 = vpop.f32.mrf.mxu0  ;;  %v4918_v44 = vmax.f32 %v4886_v10, 0.0  ;;  %v6053_v46 = vpop.f32.mrf.mxu1  ;;  %v3625_v35 = vadd.f32 %v9198_v55, %v3266_v47 }
 0x216   : > { %v4923_v38 = vmax.f32 %v4891_v54, 0.0  ;;  %v4889_v18 = vadd.f32 %v8733_v60, %v4850_v20  ;;  %v4853_v13 = vmul.f32 %v8723_v0, %v4814_v57  ;;  %v4812_v17 = vadd.f32 %v4747_v41, %v4342_v45  ;;  %v9203_v54 = vld [vmem:[#allocation39_spill] sm:$0xff]  ;;  %v9204_v57 = vld [vmem:[#allocation41_spill] sm:$0xff] }
 0x217   : > { %v6088_v23 = vpop.f32.mrf.mxu0  ;;  %4950 = vst [vmem:[%s8749_s25 + $0x88] sm:$0xff] %v4918_v44  ;;  %v4347_v49 = vadd.f32 %v6053_v46, %v3621_v32  ;;  %v4290_v33 = vpop.f32.mrf.mxu1  ;;  %v3623_v20 = vadd.f32 %v9203_v54, %v3264_v42  ;;  %v3626_v45 = vadd.f32 %v9204_v57, %v3267_v58 }
 0x218   : > { %4955 = vst [vmem:[%s8749_s25 + $0xb0] sm:$0xff] %v4923_v38  ;;  %v4921_v9 = vmax.f32 %v4889_v18, 0.0  ;;  %v4892_v3 = vadd.f32 %v8733_v60, %v4853_v13  ;;  %v4851_v24 = vmul.f32 %v8723_v0, %v4812_v17  ;;  %v4345_v59 = vadd.f32 %v4290_v33, %v3619_v36 }
 0x219   : > { %v4763_v37 = vpop.f32.mrf.mxu0  ;;  %v4817_v4 = vadd.f32 %v6087_v19, %v4347_v49  ;;  %v6054_v6 = vpop.f32.mrf.mxu1  ;;  %v3265_v19 = vadd.f32 %v9202_v48, %v9201_v7 }
 0x21a   : > { %4953 = vst [vmem:[%s8749_s25 + $0xa0] sm:$0xff] %v4921_v9  ;;  %v4924_v50 = vmax.f32 %v4892_v3, 0.0  ;;  %v4890_v1 = vadd.f32 %v8733_v60, %v4851_v24  ;;  %v4815_v26 = vadd.f32 %v4760_v16, %v4345_v59  ;;  %v4348_v53 = vadd.f32 %v6054_v6, %v3622_v62 }
 0x21b   : > { %v6091_v41 = vpop.f32.mrf.mxu0  ;;  %v4856_v51 = vmul.f32 %v8723_v0, %v4817_v4  ;;  %v4293_v12 = vpop.f32.mrf.mxu1  ;;  %v3624_v29 = vadd.f32 %v9205_v34, %v3265_v19 }
 0x21c   : > { %4956 = vst [vmem:[%s8749_s25 + $0xb8] sm:$0xff] %v4924_v50  ;;  %v4922_v52 = vmax.f32 %v4890_v1, 0.0  ;;  %v4854_v40 = vmul.f32 %v8723_v0, %v4815_v26  ;;  %v4818_v30 = vadd.f32 %v6088_v23, %v4348_v53  ;;  %v4346_v27 = vadd.f32 %v4293_v12, %v3620_v21 }
 0x21d   : > { %v4895_v61 = vadd.f32 %v8733_v60, %v4856_v51  ;;  %v6057_v31 = vpop.f32.mrf.mxu1  ;;  %v4776_v15 = vpop.f32.mrf.mxu0 }
 0x21e   : > { %4954 = vst [vmem:[%s8749_s25 + $0xa8] sm:$0xff] %v4922_v52  ;;  %v4893_v56 = vadd.f32 %v8733_v60, %v4854_v40  ;;  %v4857_v63 = vmul.f32 %v8723_v0, %v4818_v30  ;;  %v4816_v10 = vadd.f32 %v4763_v37, %v4346_v27  ;;  %v4351_v5 = vadd.f32 %v6057_v31, %v3625_v35 }
 0x21f   : > { %v4927_v16 = vmax.f32 %v4895_v61, 0.0  ;;  %v4306_v11 = vpop.f32.mrf.mxu1  ;;  %v6092_v38 = vpop.f32.mrf.mxu0 }
 0x220   : > { %v4925_v32 = vmax.f32 %v4893_v56, 0.0  ;;  %v4896_v14 = vadd.f32 %v8733_v60, %v4857_v63  ;;  %v4855_v36 = vmul.f32 %v8723_v0, %v4816_v10  ;;  %v4821_v28 = vadd.f32 %v6091_v41, %v4351_v5 }
 0x221   : > { %4959 = vst [vmem:[%s8749_s25 + $0xd0] sm:$0xff] %v4927_v16  ;;  %v4349_v44 = vadd.f32 %v4306_v11, %v3623_v20  ;;  %v6058_v46 = vpop.f32.mrf.mxu1  ;;  %v4779_v9 = vpop.f32.mrf.mxu0 }
 0x222   : > { %4957 = vst [vmem:[%s8749_s25 + $0xc0] sm:$0xff] %v4925_v32  ;;  %v4928_v18 = vmax.f32 %v4896_v14, 0.0  ;;  %v4894_v13 = vadd.f32 %v8733_v60, %v4855_v36  ;;  %v4860_v17 = vmul.f32 %v8723_v0, %v4821_v28  ;;  %v4352_v23 = vadd.f32 %v6058_v46, %v3626_v45 }
 0x223   : > { %v4819_v25 = vadd.f32 %v4776_v15, %v4349_v44  ;;  %v4309_v62 = vpop.f32.mrf.mxu1 }
 0x224   : > { %4960 = vst [vmem:[%s8749_s25 + $0xd8] sm:$0xff] %v4928_v18  ;;  %v4926_v22 = vmax.f32 %v4894_v13, 0.0  ;;  %v4899_v8 = vadd.f32 %v8733_v60, %v4860_v17  ;;  %v4822_v47 = vadd.f32 %v6092_v38, %v4352_v23  ;;  %v4350_v49 = vadd.f32 %v4309_v62, %v3624_v29 }
 0x225   : > { %v4858_v33 = vmul.f32 %v8723_v0, %v4819_v25 }
 0x226   : > { %4958 = vst [vmem:[%s8749_s25 + $0xc8] sm:$0xff] %v4926_v22  ;;  %v4931_v3 = vmax.f32 %v4899_v8, 0.0  ;;  %v4861_v24 = vmul.f32 %v8723_v0, %v4822_v47  ;;  %v4820_v59 = vadd.f32 %v4779_v9, %v4350_v49 }
 0x227   : > { %v4897_v37 = vadd.f32 %v8733_v60, %v4858_v33 }
 0x228   : > { %4963 = vst [vmem:[%s8749_s25 + $0xf0] sm:$0xff] %v4931_v3  ;;  %v4900_v2 = vadd.f32 %v8733_v60, %v4861_v24  ;;  %v4859_v21 = vmul.f32 %v8723_v0, %v4820_v59 }
 0x229   : > { %v4929_v4 = vmax.f32 %v4897_v37, 0.0 }
 0x22a   : > { %v4932_v6 = vmax.f32 %v4900_v2, 0.0  ;;  %v4898_v50 = vadd.f32 %v8733_v60, %v4859_v21 }
 0x22b   : > { %4961 = vst [vmem:[%s8749_s25 + $0xe0] sm:$0xff] %v4929_v4 }
 0x22c   : > { %4964 = vst [vmem:[%s8749_s25 + $0xf8] sm:$0xff] %v4932_v6  ;;  %v4930_v1 = vmax.f32 %v4898_v50, 0.0 }
 0x22e   : > { %4962 = vst [vmem:[%s8749_s25 + $0xe8] sm:$0xff] %v4930_v1 }
 0x22f PF: > { %s14_s17 = sadd.s32 1, %s6202_s17   ;;  %s9206_s15 = smov %s6198_s16 }
 0x230   : > { %p11_p5 = scmp.ge.s32.totalorder %s14_s17, 4   ;;  %s9207_s16 = smov %s9209_s18 }
 0x232   :  { %13 = sbr.rel (!%p11_p5) target bundleno = 2 (0x2), region = 85 }

</bundles_post_ra>
